<compile_context>
chip_gen: v7x
topology: tpu7x:2x2x1
jax: 0.10.0
libtpu: 0.0.40
codegen_flags: <defaults>
</compile_context>

<pallas_src>
import math
import functools

import jax
import jax.numpy as jnp
from jax.experimental import pallas as pl
from jax.experimental.pallas import tpu as pltpu


# ---------------------------------------------------------------------------
# tiling helpers (generation-aware, consistent budget <-> declared limit)
# ---------------------------------------------------------------------------
def _vmem_capacity_bytes():
    try:
        return int(pltpu.get_tpu_info().vmem_capacity_bytes)
    except Exception:
        return 64 << 20          # conservative default (v7x per-TC VMEM)


def _edge_working_set_bytes(T, N, D):
    """Rough per-tile working set of the GRIT layer kernel for a dst tile T."""
    edge = T * N * D
    live_f32 = 8 * edge * 4              # Ew/Eb/score/e_t/e_new/... live f32
    live_bf16 = 3 * edge * 2             # e_t_bf, p_bf, matmul staging
    pipe_bf16 = 2 * 2 * edge * 2         # e in + e out, double-buffered, bf16
    resident = 6 * N * D * 4             # K, V, weights resident per core
    return live_f32 + live_bf16 + pipe_bf16 + resident + (4 << 20)


def pick_t_dst(N, D, vmem_bytes=None):
    """Largest dst tile (multiple of 8, divisor of N, even grid when possible)
    whose edge-path working set fits the generation's VMEM budget."""
    if vmem_bytes is None:
        vmem_bytes = _vmem_capacity_bytes()
    # v7x has 64 MiB per TC -> stay conservative; v5e/v6e have 128 MiB -> use it.
    frac = 0.45 if vmem_bytes <= (64 << 20) else 0.65
    budget = int(vmem_bytes * frac)
    candidates = [t for t in range(8, N + 1, 8) if N % t == 0]
    if not candidates:
        return N
    # prefer an even grid of >= 2 tiles so both v7x TensorCores get work
    pref = [t for t in candidates if (N // t) >= 2 and (N // t) % 2 == 0] or candidates
    fitting = [t for t in pref if _edge_working_set_bytes(t, N, D) <= budget]
    if fitting:
        return max(fitting)
    # TODO(synk): src-axis tiling (online softmax) needed when even T=8 overflows.
    return min(candidates)


def _edge_vmem_limit(T, N, D, vmem_bytes=None):
    if vmem_bytes is None:
        vmem_bytes = _vmem_capacity_bytes()
    # ceiling: ~56/64 MiB on v7x, ~100/128 MiB on v5e/v6e
    ceiling = int(vmem_bytes * (56.0 / 64.0 if vmem_bytes <= (64 << 20) else 100.0 / 128.0))
    need = _edge_working_set_bytes(T, N, D)
    return int(min(max(need, 32 << 20), ceiling))


# ---------------------------------------------------------------------------
# RRWP linear node / edge encoders (FeatureEncoder embedding-sum stays in glue)
# ---------------------------------------------------------------------------
def encoder_kernel(x_emb_ref, rrwp_n_ref, rrwp_e_ref, w_abs_ref, w_rel_ref,
                   x_out_ref, e_out_ref):
    # x = node_embedding + Linear(rrwp_node)     (RRWPLinearNodeEncoder, no bias)
    x_out_ref[...] = x_emb_ref[...] + jnp.dot(
        rrwp_n_ref[...], w_abs_ref[...], preferred_element_type=jnp.float32)
    # dense full-graph edge_attr = Linear(rrwp_edge)  (RRWPLinearEdgeEncoder,
    # no bias, pad_to_full_graph with fill_value=0, no prior edge_attr).
    # bf16 operands (rrwp_e read bf16) halve the DMA-bound (N,N,K) traffic.
    re = rrwp_e_ref[...]                              # (T, N, K) bf16
    t, n, k = re.shape
    e = jnp.dot(re.reshape(t * n, k), w_rel_ref[...],
                preferred_element_type=jnp.float32)
    e_out_ref[...] = e.reshape(t, n, -1).astype(e_out_ref.dtype)


def run_encoder(x_emb, rrwp_n, rrwp_e_bf, w_abs, w_rel_bf, t_dst):
    N, D = x_emb.shape
    K = rrwp_n.shape[1]
    T = t_dst
    assert N % T == 0
    grid = (N // T,)
    return pl.pallas_call(
        encoder_kernel,
        grid=grid,
        out_shape=(jax.ShapeDtypeStruct((N, D), jnp.float32),
                   jax.ShapeDtypeStruct((N, N, D), jnp.bfloat16)),
        in_specs=[
            pl.BlockSpec((T, D), lambda i: (i, 0)),
            pl.BlockSpec((T, K), lambda i: (i, 0)),
            pl.BlockSpec((T, N, K), lambda i: (i, 0, 0)),
            pl.BlockSpec((K, D), lambda i: (0, 0)),
            pl.BlockSpec((K, D), lambda i: (0, 0)),
        ],
        out_specs=(pl.BlockSpec((T, D), lambda i: (i, 0)),
                   pl.BlockSpec((T, N, D), lambda i: (i, 0, 0))),
        compiler_params=pltpu.CompilerParams(
            dimension_semantics=("parallel",),
            vmem_limit_bytes=_edge_vmem_limit(T, N, D)),
        cost_estimate=pl.CostEstimate(
            flops=int(2 * N * N * K * D + 2 * N * K * D),
            transcendentals=0,
            bytes_accessed=int(2 * N * N * K + 2 * N * N * D + 12 * N * D)),
    )(x_emb, rrwp_n, rrwp_e_bf, w_abs, w_rel_bf)


# ---------------------------------------------------------------------------
# Per-layer hoisted Q/K/V projections (computed once, not per dst tile)
# ---------------------------------------------------------------------------
def qkv_kernel(x_ref, wq_ref, wk_ref, wv_ref, small_ref, q_ref, k_ref, v_ref):
    x = x_ref[...]
    bq = small_ref[...][0:1]
    q_ref[...] = jnp.dot(x, wq_ref[...], preferred_element_type=jnp.float32) + bq
    k_ref[...] = jnp.dot(x, wk_ref[...], preferred_element_type=jnp.float32)   # no bias
    v_ref[...] = jnp.dot(x, wv_ref[...],                                       # no bias
                         preferred_element_type=jnp.float32).astype(v_ref.dtype)


def run_qkv(x, p, t_dst):
    N, D = x.shape
    T = t_dst
    assert N % T == 0
    grid = (N // T,)

    def full2(a):
        return pl.BlockSpec(a.shape, lambda i: (0, 0))

    return pl.pallas_call(
        qkv_kernel,
        grid=grid,
        out_shape=(jax.ShapeDtypeStruct((N, D), jnp.float32),     # Q
                   jax.ShapeDtypeStruct((N, D), jnp.float32),     # K
                   jax.ShapeDtypeStruct((N, D), jnp.bfloat16)),   # V (MXU operand)
        in_specs=[pl.BlockSpec((T, D), lambda i: (i, 0)),
                  full2(p["wq"]), full2(p["wk"]), full2(p["wv"]), full2(p["small"])],
        out_specs=(pl.BlockSpec((T, D), lambda i: (i, 0)),
                   pl.BlockSpec((T, D), lambda i: (i, 0)),
                   pl.BlockSpec((T, D), lambda i: (i, 0))),
        compiler_params=pltpu.CompilerParams(
            dimension_semantics=("parallel",)),
    )(x, p["wq"], p["wk"], p["wv"], p["small"])


# ---------------------------------------------------------------------------
# One GritTransformerLayer (GRIT attention on the dense full graph), dst-tiled
# ---------------------------------------------------------------------------
def grit_layer_kernel(q_ref, k_ref, v_ref, x_ref, e_ref,
                      wewb_ref, aw_ref, srep_ref, verow_ref,
                      logdeg_ref, woh_ref, woe_ref,
                      w1_ref, b1_ref, w2_ref, small_ref,
                      x_out_ref, e_out_ref):

    # packed small parameters, one (16, D) block
    sp = small_ref[...]
    bew, beb = sp[1:2], sp[2:3]
    dc0, dc1 = sp[3:4], sp[4:5]
    boh, boe = sp[5:6], sp[6:7]
    bn1h_s, bn1h_b = sp[7:8], sp[8:9]
    bn1e_s, bn1e_b = sp[9:10], sp[10:11]
    b2 = sp[11:12]
    bn2h_s, bn2h_b = sp[12:13], sp[13:14]

    q = q_ref[...]                       # (T, D) f32   Q tile (hoisted, bias applied)
    k = k_ref[...]                       # (N, D) f32   K (hoisted, src side)
    v_bf = v_ref[...]                    # (N, D) bf16  V (hoisted)
    x_t = x_ref[...]                     # (T, D) f32   residual
    e_b = e_ref[...]                     # (T, N, D) bf16, [dst, src, :]
    t, n, d = e_b.shape
    tn = t * n
    nh = aw_ref.shape[1]                 # num heads

    # --- fused edge projections: one bf16 (T*N, D) @ (D, 2D) pass (v6e/v7x MXU width)
    ewb = jnp.dot(e_b.reshape(tn, d), wewb_ref[...],
                  preferred_element_type=jnp.float32).reshape(t, n, 2 * d)
    Ew = ewb[:, :, :d] + bew[None]
    Eb = ewb[:, :, d:] + beb[None]

    # score[dst, src, :] = (Q[dst] + K[src]) * Ew ; signed sqrt ; + Eb ; relu
    score = (q[:, None, :] + k[None, :, :]) * Ew
    r = jnp.sqrt(jnp.abs(score))
    score = jnp.where(score >= 0.0, r, -r)
    e_t = jax.nn.relu(score + Eb)                          # wE, (T, N, D) f32
    e_t_bf = e_t.astype(jnp.bfloat16)

    # --- per-head logits (bf16 operands, f32 accum), then (T, H, N) lane-dense layout
    logits = jnp.dot(e_t_bf.reshape(tn, d), aw_ref[...],
                     preferred_element_type=jnp.float32).reshape(t, n, nh)
    logits = jnp.clip(logits, -5.0, 5.0)                   # clamp=5
    logits = jnp.swapaxes(logits, 1, 2)                    # (T, H, N)
    m = jnp.max(logits, axis=-1, keepdims=True)
    p = jnp.exp(logits - m)                                # unnormalized attention
    denom = jnp.sum(p, axis=-1) + 1e-16                    # (T, H) pyg_softmax denom
    p_bf = p.astype(jnp.bfloat16)

    # --- attn . V and attn . e_t on the MXU (no srep expansion, no edge-size reductions)
    srep = srep_ref[...]                                   # (H, D) head->lane 0/1 mask
    wv_full = jnp.dot(p_bf.reshape(t * nh, n), v_bf,
                      preferred_element_type=jnp.float32).reshape(t, nh, d)
    rowv_full = jnp.einsum('thn,tnd->thd', p_bf, e_t_bf,
                           preferred_element_type=jnp.float32)
    wV = jnp.sum(wv_full * srep[None], axis=1)             # (T, D)
    rowV = jnp.sum(rowv_full * srep[None], axis=1)         # (T, D)

    # deferred softmax normalization: node-sized reciprocal (EUP) + head->lane expand
    inv = pl.reciprocal(denom, approx=True)                # (T, H)
    scale = jnp.dot(inv, srep, preferred_element_type=jnp.float32)   # (T, D)
    wV = wV * scale
    rowV = rowV * scale

    # edge_enhance: h_attn = wV + rowV @ VeRow (block-diag per head)
    h_attn = wV + jnp.dot(rowV, verow_ref[...], preferred_element_type=jnp.float32)

    # degree scaler: h <- h*c0 + (h*log_deg)*c1
    h_attn = h_attn * (dc0 + logdeg_ref[...] * dc1)

    h_new = jnp.dot(h_attn, woh_ref[...], preferred_element_type=jnp.float32) + boh   # O_h
    e_new = jnp.dot(e_t_bf.reshape(tn, d), woe_ref[...],                              # O_e
                    preferred_element_type=jnp.float32).reshape(t, n, d) + boe[None]

    # residuals + BatchNorm1d (eval: per-feature affine scale/shift)
    h_new = x_t + h_new
    e_new = e_b.astype(jnp.float32) + e_new
    h_new = h_new * bn1h_s + bn1h_b
    e_new = e_new * bn1e_s[None] + bn1e_b[None]

    # FFN on h + residual + BN2
    ff = jax.nn.relu(jnp.dot(h_new, w1_ref[...],
                             preferred_element_type=jnp.float32) + b1_ref[...])
    ff = jnp.dot(ff, w2_ref[...], preferred_element_type=jnp.float32) + b2
    h2 = h_new + ff
    h2 = h2 * bn2h_s + bn2h_b

    x_out_ref[...] = h2
    e_out_ref[...] = e_new.astype(e_out_ref.dtype)


def run_grit_layer(q, k, v_bf, x, e, p, t_dst):
    N, D = x.shape
    H = p["aw_bf16"].shape[1]
    T = t_dst
    assert N % T == 0
    grid = (N // T,)

    def full2(a):
        return pl.BlockSpec(a.shape, lambda i: (0, 0))

    args = (q, k, v_bf, x, e,
            p["wewb_bf16"], p["aw_bf16"], p["srep"], p["verow_blk"],
            p["log_deg"],
            p["woh"], p["woe_bf16"],
            p["w1"], p["b1"], p["w2"],
            p["small"])
    in_specs = [
        pl.BlockSpec((T, D), lambda i: (i, 0)),          # q tile
        pl.BlockSpec((N, D), lambda i: (0, 0)),          # k (full, src side)
        pl.BlockSpec((N, D), lambda i: (0, 0)),          # v (full, bf16)
        pl.BlockSpec((T, D), lambda i: (i, 0)),          # x tile (residual)
        pl.BlockSpec((T, N, D), lambda i: (i, 0, 0)),    # e tile (bf16)
        full2(p["wewb_bf16"]), full2(p["aw_bf16"]), full2(p["srep"]),
        full2(p["verow_blk"]),
        pl.BlockSpec((T, 1), lambda i: (i, 0)),          # log_deg tile
        full2(p["woh"]), full2(p["woe_bf16"]),
        full2(p["w1"]), full2(p["b1"]), full2(p["w2"]),
        full2(p["small"]),
    ]
    out_specs = (pl.BlockSpec((T, D), lambda i: (i, 0)),
                 pl.BlockSpec((T, N, D), lambda i: (i, 0, 0)))

    flops = int(6 * N * N * D * D + 6 * N * N * D * H + 30 * N * D * D)
    transcendentals = int(N * N * (D + H))
    bytes_accessed = int(4 * N * N * D + 20 * N * D + 10 * D * D)

    return pl.pallas_call(
        grit_layer_kernel,
        grid=grid,
        out_shape=(jax.ShapeDtypeStruct((N, D), jnp.float32),
                   jax.ShapeDtypeStruct((N, N, D), jnp.bfloat16)),
        in_specs=in_specs,
        out_specs=out_specs,
        input_output_aliases={4: 1},                       # e_new written in place of e
        compiler_params=pltpu.CompilerParams(
            dimension_semantics=("parallel",),
            vmem_limit_bytes=_edge_vmem_limit(T, N, D)),
        cost_estimate=pl.CostEstimate(flops=flops,
                                      transcendentals=transcendentals,
                                      bytes_accessed=bytes_accessed),
    )(*args)


# ---------------------------------------------------------------------------
# post_mp head (DIY_NodeHead: GraphGym MLP with has_act=False)
# ---------------------------------------------------------------------------
# TODO(synk): cfg.gnn.layers_post_mp is assumed to be 1 (a single Linear layer).
def head_kernel(x_ref, w_ref, b_ref, out_ref):
    out_ref[...] = jnp.dot(x_ref[...], w_ref[...],
                           preferred_element_type=jnp.float32) + b_ref[...]


def run_head(x, w, b):
    N = x.shape[0]
    dim_out = w.shape[1]
    # TODO(synk): output last dim (dim_out=3) is not lane-dense; negligible at head size.
    return pl.pallas_call(
        head_kernel,
        out_shape=jax.ShapeDtypeStruct((N, dim_out), jnp.float32),
        in_specs=[pl.BlockSpec(memory_space=pltpu.MemorySpace.VMEM)] * 3,
        out_specs=pl.BlockSpec(memory_space=pltpu.MemorySpace.VMEM),
    )(x, w, b)


# ---------------------------------------------------------------------------
# Parameter initialization (deterministic, synthetic)
# ---------------------------------------------------------------------------
def _nrm(key, shape, scale=0.1):
    return jax.random.normal(key, shape, jnp.float32) * scale


def init_layer_params(key, N, D, H):
    dh = D // H
    ks = jax.random.split(key, 20)
    eyeH = jnp.eye(H, dtype=jnp.float32)
    bn_scale = jnp.full((1, D), 1.0 / math.sqrt(1.0 + 1e-5), jnp.float32)
    bn_shift = jnp.zeros((1, D), jnp.float32)

    aw = _nrm(ks[8], (H, dh))                 # Aw, per-head attention vector
    verow = _nrm(ks[9], (H, dh, dh))          # VeRow, per-head matrix
    deg_coef = _nrm(ks[10], (2, D))

    bq = _nrm(ks[1], (1, D), 0.05)
    bew = _nrm(ks[5], (1, D), 0.05)
    beb = _nrm(ks[7], (1, D), 0.05)
    boh = _nrm(ks[12], (1, D), 0.05)
    boe = _nrm(ks[14], (1, D), 0.05)
    b2 = _nrm(ks[18], (1, D), 0.05)

    # packed (16, D) block of all D-wide row parameters (biases, BN affine, deg coef)
    small = jnp.concatenate(
        [bq, bew, beb,
         deg_coef[0:1], deg_coef[1:2],
         boh, boe,
         bn_scale, bn_shift,          # BN1 (h)
         bn_scale, bn_shift,          # BN1 (e)
         b2,
         bn_scale, bn_shift,          # BN2 (h)
         jnp.zeros((2, D), jnp.float32)], axis=0)

    wew = _nrm(ks[4], (D, D))
    web = _nrm(ks[6], (D, D))

    return {
        "wq": _nrm(ks[0], (D, D)),
        "wk": _nrm(ks[2], (D, D)),
        "wv": _nrm(ks[3], (D, D)),
        # fused [wEw | wEb] edge projection, bf16 (one 2D-wide MXU pass per tile)
        "wewb_bf16": jnp.concatenate([wew, web], axis=1).astype(jnp.bfloat16),
        "woe_bf16": _nrm(ks[13], (D, D)).astype(jnp.bfloat16),
        # head-batched reorganizations: block-diagonal Aw (D,H) in bf16, head->lane
        # 0/1 mask Srep (H,D), block-diagonal VeRow (D,D).
        "aw_bf16": (aw[:, :, None] * eyeH[:, None, :]).reshape(D, H).astype(jnp.bfloat16),
        "srep": jnp.repeat(eyeH, dh, axis=1),
        "verow_blk": (verow[:, :, None, :] * eyeH[:, None, :, None]).reshape(D, D),
        # TODO(synk): log_deg assumes full-graph in-degree = N (log(N+1)); verify
        # against the reference GRIT degree definition on the padded graph.
        "log_deg": jnp.full((N, 1), math.log(N + 1.0), jnp.float32),
        "woh": _nrm(ks[11], (D, D)),
        "w1": _nrm(ks[15], (D, 2 * D)),
        "b1": _nrm(ks[16], (1, 2 * D), 0.05),
        "w2": _nrm(ks[17], (2 * D, D)),
        "small": small,
    }


def init_params(key, N, D, H, K, F, dim_out, n_layers):
    hyper_params = [8, 8, 6, 8, 6, 8, 8, 10, 9, 9][:F]   # NodeEncoder cardinalities
    keys = jax.random.split(key, 8 + F + n_layers)
    emb_tables = [_nrm(keys[i], (hyper_params[i], D), 0.2) for i in range(F)]
    layers = [init_layer_params(keys[F + i], N, D, H) for i in range(n_layers)]
    params = {
        "emb_tables": emb_tables,
        "w_abs": _nrm(keys[F + n_layers + 0], (K, D)),
        "w_rel_bf16": _nrm(keys[F + n_layers + 1], (K, D)).astype(jnp.bfloat16),
        "layers": layers,
        "w_head": _nrm(keys[F + n_layers + 2], (D, dim_out)),
        "b_head": _nrm(keys[F + n_layers + 3], (1, dim_out), 0.05),
        "binary_label": jax.random.randint(keys[F + n_layers + 4], (N,), 0, 2, jnp.int32),
        "mask": (jnp.arange(N) % 2) == 0,     # 'train_mask'
    }
    return params, hyper_params


# ---------------------------------------------------------------------------
# Full GritTransformer forward
# ---------------------------------------------------------------------------
@functools.partial(jax.jit, static_argnames=("t_dst",))
def _grit_embed_and_head(x_tok, rrwp_n, rrwp_e, params, t_dst):
    N = x_tok.shape[0]
    D = params["w_abs"].shape[1]

    # FeatureEncoder / NodeEncoder: sum of per-feature embeddings (plain JAX glue).
    x_emb = jnp.zeros((N, D), jnp.float32)
    for i, tbl in enumerate(params["emb_tables"]):
        x_emb = x_emb + tbl[x_tok[:, i]]

    # bf16 RRWP edge PE halves the DMA-bound (N,N,K) encoder read.
    rrwp_e_bf = rrwp_e.astype(jnp.bfloat16)

    x, e = run_encoder(x_emb, rrwp_n, rrwp_e_bf,
                       params["w_abs"], params["w_rel_bf16"], t_dst)
    for lp in params["layers"]:
        q, k, v_bf = run_qkv(x, lp, t_dst)        # hoisted per-layer Q/K/V
        x, e = run_grit_layer(q, k, v_bf, x, e, lp, t_dst)
    return run_head(x, params["w_head"], params["b_head"])


def grit_transformer_forward(x_tok, rrwp_n, rrwp_e, params, t_dst=None):
    if t_dst is None:
        t_dst = pick_t_dst(x_tok.shape[0], params["w_abs"].shape[1])
    logits = _grit_embed_and_head(x_tok, rrwp_n, rrwp_e, params, t_dst=t_dst)
    # DIY_NodeHead._apply_index: select masked nodes (plain JAX glue)
    pred = logits[params["mask"]]
    label = params["binary_label"][params["mask"]]
    return pred, label


if __name__ == "__main__":
    N, D, H, K, F, DIM_OUT, N_LAYERS = 16, 32, 4, 5, 3, 3, 2
    T_DST = 8   # 2-step (even) dst grid at toy size; production uses pick_t_dst()

    key = jax.random.PRNGKey(0)
    k_params, k_tok, k_rn, k_re = jax.random.split(key, 4)
    params, cards = init_params(k_params, N, D, H, K, F, DIM_OUT, N_LAYERS)

    # batch.x: categorical node features (one column per NodeEncoder table)
    x_tok = jnp.stack(
        [jax.random.randint(jax.random.fold_in(k_tok, i), (N,), 0, cards[i], jnp.int32)
         for i in range(F)], axis=1)                            # (N, F)
    rrwp_n = jax.random.uniform(k_rn, (N, K), jnp.float32)      # batch.rrwp
    rrwp_e = jax.random.uniform(k_re, (N, N, K), jnp.float32)   # dense batch.rrwp_val

    pred, label = grit_transformer_forward(x_tok, rrwp_n, rrwp_e, params, t_dst=T_DST)
    jax.block_until_ready((pred, label))
    assert pred.shape == (int(params["mask"].sum()), DIM_OUT)
    print("KERNEL_OK")
</pallas_src>

<mosaic_0001>
module attributes {stable_mosaic.version = 11 : i64} {
  func.func @qkv_kernel(%arg0: i32, %arg1: memref<8x32xf32, #tpu.memory_space<vmem>>, %arg2: memref<32x32xf32, #tpu.memory_space<vmem>>, %arg3: memref<32x32xf32, #tpu.memory_space<vmem>>, %arg4: memref<32x32xf32, #tpu.memory_space<vmem>>, %arg5: memref<16x32xf32, #tpu.memory_space<vmem>>, %arg6: memref<8x32xf32, #tpu.memory_space<vmem>>, %arg7: memref<8x32xf32, #tpu.memory_space<vmem>>, %arg8: memref<8x32xbf16, #tpu.memory_space<vmem>>) attributes {dimension_semantics = [#tpu.dimension_semantics<parallel>], iteration_bounds = array<i64: 2>, scalar_prefetch = 0 : i64, scratch_operands = 0 : i64, tpu.core_type = #tpu.core_type<tc>, window_params = [{transform_indices = @transform_0, window_bounds = array<i64: 8, 32>}, {pipeline_mode = #tpu.pipeline_mode<synchronous>, transform_indices = @transform_1, window_bounds = array<i64: 32, 32>}, {pipeline_mode = #tpu.pipeline_mode<synchronous>, transform_indices = @transform_2, window_bounds = array<i64: 32, 32>}, {pipeline_mode = #tpu.pipeline_mode<synchronous>, transform_indices = @transform_3, window_bounds = array<i64: 32, 32>}, {pipeline_mode = #tpu.pipeline_mode<synchronous>, transform_indices = @transform_4, window_bounds = array<i64: 16, 32>}, {transform_indices = @transform_5, window_bounds = array<i64: 8, 32>}, {transform_indices = @transform_6, window_bounds = array<i64: 8, 32>}, {transform_indices = @transform_7, window_bounds = array<i64: 8, 32>}]} {
    %c0 = arith.constant 0 : index
    %c0_0 = arith.constant 0 : index
    %0 = vector.load %arg1[%c0, %c0_0] : memref<8x32xf32, #tpu.memory_space<vmem>>, vector<8x32xf32>
    %c0_1 = arith.constant 0 : index
    %c0_2 = arith.constant 0 : index
    %1 = vector.load %arg5[%c0_1, %c0_2] : memref<16x32xf32, #tpu.memory_space<vmem>>, vector<16x32xf32>
    %2 = vector.extract_strided_slice %1 {offsets = [0, 0], sizes = [1, 32], strides = [1, 1]} : vector<16x32xf32> to vector<1x32xf32>
    %c0_3 = arith.constant 0 : index
    %c0_4 = arith.constant 0 : index
    %3 = vector.load %arg2[%c0_3, %c0_4] : memref<32x32xf32, #tpu.memory_space<vmem>>, vector<32x32xf32>
    %cst = arith.constant dense<0.000000e+00> : vector<8x32xf32>
    %4 = tpu.matmul %0, %3, %cst {dimension_numbers = #tpu.dot_dimension_numbers<[1], [0], [0], [1], [0, 0, 1, 1], [], []>} : vector<8x32xf32>, vector<32x32xf32>, vector<8x32xf32> -> vector<8x32xf32>
    %5 = vector.broadcast %2 : vector<1x32xf32> to vector<8x32xf32>
    %6 = arith.addf %4, %5 : vector<8x32xf32>
    %c0_5 = arith.constant 0 : index
    %c0_6 = arith.constant 0 : index
    %7 = vector.load %arg6[%c0_5, %c0_6] : memref<8x32xf32, #tpu.memory_space<vmem>>, vector<8x32xf32>
    tpu.vector_store %arg6[%c0_5, %c0_6], %6 {strides = array<i32>} : memref<8x32xf32, #tpu.memory_space<vmem>>, vector<8x32xf32>,
    %c0_7 = arith.constant 0 : index
    %c0_8 = arith.constant 0 : index
    %8 = vector.load %arg3[%c0_7, %c0_8] : memref<32x32xf32, #tpu.memory_space<vmem>>, vector<32x32xf32>
    %cst_9 = arith.constant dense<0.000000e+00> : vector<8x32xf32>
    %9 = tpu.matmul %0, %8, %cst_9 {dimension_numbers = #tpu.dot_dimension_numbers<[1], [0], [0], [1], [0, 0, 1, 1], [], []>} : vector<8x32xf32>, vector<32x32xf32>, vector<8x32xf32> -> vector<8x32xf32>
    %c0_10 = arith.constant 0 : index
    %c0_11 = arith.constant 0 : index
    %10 = vector.load %arg7[%c0_10, %c0_11] : memref<8x32xf32, #tpu.memory_space<vmem>>, vector<8x32xf32>
    tpu.vector_store %arg7[%c0_10, %c0_11], %9 {strides = array<i32>} : memref<8x32xf32, #tpu.memory_space<vmem>>, vector<8x32xf32>,
    %c0_12 = arith.constant 0 : index
    %c0_13 = arith.constant 0 : index
    %11 = vector.load %arg4[%c0_12, %c0_13] : memref<32x32xf32, #tpu.memory_space<vmem>>, vector<32x32xf32>
    %cst_14 = arith.constant dense<0.000000e+00> : vector<8x32xf32>
    %12 = tpu.matmul %0, %11, %cst_14 {dimension_numbers = #tpu.dot_dimension_numbers<[1], [0], [0], [1], [0, 0, 1, 1], [], []>} : vector<8x32xf32>, vector<32x32xf32>, vector<8x32xf32> -> vector<8x32xf32>
    %13 = arith.truncf %12 : vector<8x32xf32> to vector<8x32xbf16>
    %c0_15 = arith.constant 0 : index
    %c0_16 = arith.constant 0 : index
    %14 = vector.load %arg8[%c0_15, %c0_16] : memref<8x32xbf16, #tpu.memory_space<vmem>>, vector<8x32xbf16>
    tpu.vector_store %arg8[%c0_15, %c0_16], %13 {strides = array<i32>} : memref<8x32xbf16, #tpu.memory_space<vmem>>, vector<8x32xbf16>,
    return
  }
  func.func @transform_0(%arg0: i32) -> (i32, i32) {
    %c0_i32 = arith.constant 0 : i32
    %c0_i32_0 = arith.constant 0 : i32
    return %arg0, %c0_i32 : i32, i32
  }
  func.func @transform_1(%arg0: i32) -> (i32, i32) {
    %c0_i32 = arith.constant 0 : i32
    %c0_i32_0 = arith.constant 0 : i32
    %c0_i32_1 = arith.constant 0 : i32
    return %c0_i32, %c0_i32_0 : i32, i32
  }
  func.func @transform_2(%arg0: i32) -> (i32, i32) {
    %c0_i32 = arith.constant 0 : i32
    %c0_i32_0 = arith.constant 0 : i32
    %c0_i32_1 = arith.constant 0 : i32
    return %c0_i32, %c0_i32_0 : i32, i32
  }
  func.func @transform_3(%arg0: i32) -> (i32, i32) {
    %c0_i32 = arith.constant 0 : i32
    %c0_i32_0 = arith.constant 0 : i32
    %c0_i32_1 = arith.constant 0 : i32
    return %c0_i32, %c0_i32_0 : i32, i32
  }
  func.func @transform_4(%arg0: i32) -> (i32, i32) {
    %c0_i32 = arith.constant 0 : i32
    %c0_i32_0 = arith.constant 0 : i32
    %c0_i32_1 = arith.constant 0 : i32
    return %c0_i32, %c0_i32_0 : i32, i32
  }
  func.func @transform_5(%arg0: i32) -> (i32, i32) {
    %c0_i32 = arith.constant 0 : i32
    %c0_i32_0 = arith.constant 0 : i32
    return %arg0, %c0_i32 : i32, i32
  }
  func.func @transform_6(%arg0: i32) -> (i32, i32) {
    %c0_i32 = arith.constant 0 : i32
    %c0_i32_0 = arith.constant 0 : i32
    return %arg0, %c0_i32 : i32, i32
  }
  func.func @transform_7(%arg0: i32) -> (i32, i32) {
    %c0_i32 = arith.constant 0 : i32
    %c0_i32_0 = arith.constant 0 : i32
    return %arg0, %c0_i32 : i32, i32
  }
}

module attributes {stable_mosaic.version = 11 : i64} {
  func.func @encoder_kernel(%arg0: i32, %arg1: memref<8x32xf32, #tpu.memory_space<vmem>>, %arg2: memref<8x5xf32, #tpu.memory_space<vmem>>, %arg3: memref<8x16x5xbf16, #tpu.memory_space<vmem>>, %arg4: memref<5x32xf32, #tpu.memory_space<vmem>>, %arg5: memref<5x32xbf16, #tpu.memory_space<vmem>>, %arg6: memref<8x32xf32, #tpu.memory_space<vmem>>, %arg7: memref<8x16x32xbf16, #tpu.memory_space<vmem>>) attributes {dimension_semantics = [#tpu.dimension_semantics<parallel>], iteration_bounds = array<i64: 2>, scalar_prefetch = 0 : i64, scratch_operands = 0 : i64, tpu.core_type = #tpu.core_type<tc>, window_params = [{transform_indices = @transform_0, window_bounds = array<i64: 8, 32>}, {transform_indices = @transform_1, window_bounds = array<i64: 8, 5>}, {transform_indices = @transform_2, window_bounds = array<i64: 8, 16, 5>}, {pipeline_mode = #tpu.pipeline_mode<synchronous>, transform_indices = @transform_3, window_bounds = array<i64: 5, 32>}, {pipeline_mode = #tpu.pipeline_mode<synchronous>, transform_indices = @transform_4, window_bounds = array<i64: 5, 32>}, {transform_indices = @transform_5, window_bounds = array<i64: 8, 32>}, {transform_indices = @transform_6, window_bounds = array<i64: 8, 16, 32>}]} {
    %c0 = arith.constant 0 : index
    %c0_0 = arith.constant 0 : index
    %0 = vector.load %arg1[%c0, %c0_0] : memref<8x32xf32, #tpu.memory_space<vmem>>, vector<8x32xf32>
    %c0_1 = arith.constant 0 : index
    %c0_2 = arith.constant 0 : index
    %1 = vector.load %arg2[%c0_1, %c0_2] : memref<8x5xf32, #tpu.memory_space<vmem>>, vector<8x5xf32>
    %c0_3 = arith.constant 0 : index
    %c0_4 = arith.constant 0 : index
    %2 = vector.load %arg4[%c0_3, %c0_4] : memref<5x32xf32, #tpu.memory_space<vmem>>, vector<5x32xf32>
    %cst = arith.constant dense<0.000000e+00> : vector<8x32xf32>
    %3 = tpu.matmul %1, %2, %cst {dimension_numbers = #tpu.dot_dimension_numbers<[1], [0], [0], [1], [0, 0, 1, 1], [], []>} : vector<8x5xf32>, vector<5x32xf32>, vector<8x32xf32> -> vector<8x32xf32>
    %4 = arith.addf %0, %3 : vector<8x32xf32>
    %c0_5 = arith.constant 0 : index
    %c0_6 = arith.constant 0 : index
    %5 = vector.load %arg6[%c0_5, %c0_6] : memref<8x32xf32, #tpu.memory_space<vmem>>, vector<8x32xf32>
    tpu.vector_store %arg6[%c0_5, %c0_6], %4 {strides = array<i32>} : memref<8x32xf32, #tpu.memory_space<vmem>>, vector<8x32xf32>,
    %c0_7 = arith.constant 0 : index
    %c0_8 = arith.constant 0 : index
    %c0_9 = arith.constant 0 : index
    %6 = vector.load %arg3[%c0_7, %c0_8, %c0_9] : memref<8x16x5xbf16, #tpu.memory_space<vmem>>, vector<8x16x5xbf16>
    %7 = vector.shape_cast %6 : vector<8x16x5xbf16> to vector<128x5xbf16>
    %c0_10 = arith.constant 0 : index
    %c0_11 = arith.constant 0 : index
    %8 = vector.load %arg5[%c0_10, %c0_11] : memref<5x32xbf16, #tpu.memory_space<vmem>>, vector<5x32xbf16>
    %cst_12 = arith.constant dense<0.000000e+00> : vector<128x32xf32>
    %9 = tpu.matmul %7, %8, %cst_12 {dimension_numbers = #tpu.dot_dimension_numbers<[1], [0], [0], [1], [0, 0, 1, 1], [], []>} : vector<128x5xbf16>, vector<5x32xbf16>, vector<128x32xf32> -> vector<128x32xf32>
    %10 = vector.shape_cast %9 : vector<128x32xf32> to vector<8x16x32xf32>
    %11 = arith.truncf %10 : vector<8x16x32xf32> to vector<8x16x32xbf16>
    %c0_13 = arith.constant 0 : index
    %c0_14 = arith.constant 0 : index
    %c0_15 = arith.constant 0 : index
    %12 = vector.load %arg7[%c0_13, %c0_14, %c0_15] : memref<8x16x32xbf16, #tpu.memory_space<vmem>>, vector<8x16x32xbf16>
    tpu.vector_store %arg7[%c0_13, %c0_14, %c0_15], %11 {strides = array<i32>} : memref<8x16x32xbf16, #tpu.memory_space<vmem>>, vector<8x16x32xbf16>,
    return
  }
  func.func @transform_0(%arg0: i32) -> (i32, i32) {
    %c0_i32 = arith.constant 0 : i32
    %c0_i32_0 = arith.constant 0 : i32
    return %arg0, %c0_i32 : i32, i32
  }
  func.func @transform_1(%arg0: i32) -> (i32, i32) {
    %c0_i32 = arith.constant 0 : i32
    %c0_i32_0 = arith.constant 0 : i32
    return %arg0, %c0_i32 : i32, i32
  }
  func.func @transform_2(%arg0: i32) -> (i32, i32, i32) {
    %c0_i32 = arith.constant 0 : i32
    %c0_i32_0 = arith.constant 0 : i32
    %c0_i32_1 = arith.constant 0 : i32
    return %arg0, %c0_i32, %c0_i32_0 : i32, i32, i32
  }
  func.func @transform_3(%arg0: i32) -> (i32, i32) {
    %c0_i32 = arith.constant 0 : i32
    %c0_i32_0 = arith.constant 0 : i32
    %c0_i32_1 = arith.constant 0 : i32
    return %c0_i32, %c0_i32_0 : i32, i32
  }
  func.func @transform_4(%arg0: i32) -> (i32, i32) {
    %c0_i32 = arith.constant 0 : i32
    %c0_i32_0 = arith.constant 0 : i32
    %c0_i32_1 = arith.constant 0 : i32
    return %c0_i32, %c0_i32_0 : i32, i32
  }
  func.func @transform_5(%arg0: i32) -> (i32, i32) {
    %c0_i32 = arith.constant 0 : i32
    %c0_i32_0 = arith.constant 0 : i32
    return %arg0, %c0_i32 : i32, i32
  }
  func.func @transform_6(%arg0: i32) -> (i32, i32, i32) {
    %c0_i32 = arith.constant 0 : i32
    %c0_i32_0 = arith.constant 0 : i32
    %c0_i32_1 = arith.constant 0 : i32
    return %arg0, %c0_i32, %c0_i32_0 : i32, i32, i32
  }
}

module attributes {stable_mosaic.version = 11 : i64} {
  func.func @head_kernel(%arg0: memref<16x32xf32, #tpu.memory_space<vmem>>, %arg1: memref<32x3xf32, #tpu.memory_space<vmem>>, %arg2: memref<1x3xf32, #tpu.memory_space<vmem>>, %arg3: memref<16x3xf32, #tpu.memory_space<vmem>>) attributes {dimension_semantics = [], scalar_prefetch = 0 : i64, scratch_operands = 0 : i64, tpu.core_type = #tpu.core_type<tc>} {
    %c0 = arith.constant 0 : index
    %c0_0 = arith.constant 0 : index
    %0 = vector.load %arg0[%c0, %c0_0] : memref<16x32xf32, #tpu.memory_space<vmem>>, vector<16x32xf32>
    %c0_1 = arith.constant 0 : index
    %c0_2 = arith.constant 0 : index
    %1 = vector.load %arg1[%c0_1, %c0_2] : memref<32x3xf32, #tpu.memory_space<vmem>>, vector<32x3xf32>
    %cst = arith.constant dense<0.000000e+00> : vector<16x3xf32>
    %2 = tpu.matmul %0, %1, %cst {dimension_numbers = #tpu.dot_dimension_numbers<[1], [0], [0], [1], [0, 0, 1, 1], [], []>} : vector<16x32xf32>, vector<32x3xf32>, vector<16x3xf32> -> vector<16x3xf32>
    %c0_3 = arith.constant 0 : index
    %c0_4 = arith.constant 0 : index
    %3 = vector.load %arg2[%c0_3, %c0_4] : memref<1x3xf32, #tpu.memory_space<vmem>>, vector<1x3xf32>
    %4 = vector.broadcast %3 : vector<1x3xf32> to vector<16x3xf32>
    %5 = arith.addf %2, %4 : vector<16x3xf32>
    %c0_5 = arith.constant 0 : index
    %c0_6 = arith.constant 0 : index
    %6 = vector.load %arg3[%c0_5, %c0_6] : memref<16x3xf32, #tpu.memory_space<vmem>>, vector<16x3xf32>
    tpu.vector_store %arg3[%c0_5, %c0_6], %5 {strides = array<i32>} : memref<16x3xf32, #tpu.memory_space<vmem>>, vector<16x3xf32>,
    return
  }
}

module attributes {stable_mosaic.version = 11 : i64} {
  func.func @grit_layer_kernel(%arg0: i32, %arg1: memref<8x32xf32, #tpu.memory_space<vmem>>, %arg2: memref<16x32xf32, #tpu.memory_space<vmem>>, %arg3: memref<16x32xbf16, #tpu.memory_space<vmem>>, %arg4: memref<8x32xf32, #tpu.memory_space<vmem>>, %arg5: memref<8x16x32xbf16, #tpu.memory_space<vmem>>, %arg6: memref<32x64xbf16, #tpu.memory_space<vmem>>, %arg7: memref<32x4xbf16, #tpu.memory_space<vmem>>, %arg8: memref<4x32xf32, #tpu.memory_space<vmem>>, %arg9: memref<32x32xf32, #tpu.memory_space<vmem>>, %arg10: memref<8x1xf32, #tpu.memory_space<vmem>>, %arg11: memref<32x32xf32, #tpu.memory_space<vmem>>, %arg12: memref<32x32xbf16, #tpu.memory_space<vmem>>, %arg13: memref<32x64xf32, #tpu.memory_space<vmem>>, %arg14: memref<1x64xf32, #tpu.memory_space<vmem>>, %arg15: memref<64x32xf32, #tpu.memory_space<vmem>>, %arg16: memref<16x32xf32, #tpu.memory_space<vmem>>, %arg17: memref<8x32xf32, #tpu.memory_space<vmem>>, %arg18: memref<8x16x32xbf16, #tpu.memory_space<vmem>>) attributes {dimension_semantics = [#tpu.dimension_semantics<parallel>], iteration_bounds = array<i64: 2>, scalar_prefetch = 0 : i64, scratch_operands = 0 : i64, tpu.core_type = #tpu.core_type<tc>, window_params = [{transform_indices = @transform_0, window_bounds = array<i64: 8, 32>}, {pipeline_mode = #tpu.pipeline_mode<synchronous>, transform_indices = @transform_1, window_bounds = array<i64: 16, 32>}, {pipeline_mode = #tpu.pipeline_mode<synchronous>, transform_indices = @transform_2, window_bounds = array<i64: 16, 32>}, {transform_indices = @transform_3, window_bounds = array<i64: 8, 32>}, {transform_indices = @transform_4, window_bounds = array<i64: 8, 16, 32>}, {pipeline_mode = #tpu.pipeline_mode<synchronous>, transform_indices = @transform_5, window_bounds = array<i64: 32, 64>}, {pipeline_mode = #tpu.pipeline_mode<synchronous>, transform_indices = @transform_6, window_bounds = array<i64: 32, 4>}, {pipeline_mode = #tpu.pipeline_mode<synchronous>, transform_indices = @transform_7, window_bounds = array<i64: 4, 32>}, {pipeline_mode = #tpu.pipeline_mode<synchronous>, transform_indices = @transform_8, window_bounds = array<i64: 32, 32>}, {transform_indices = @transform_9, window_bounds = array<i64: 8, 1>}, {pipeline_mode = #tpu.pipeline_mode<synchronous>, transform_indices = @transform_10, window_bounds = array<i64: 32, 32>}, {pipeline_mode = #tpu.pipeline_mode<synchronous>, transform_indices = @transform_11, window_bounds = array<i64: 32, 32>}, {pipeline_mode = #tpu.pipeline_mode<synchronous>, transform_indices = @transform_12, window_bounds = array<i64: 32, 64>}, {pipeline_mode = #tpu.pipeline_mode<synchronous>, transform_indices = @transform_13, window_bounds = array<i64: 1, 64>}, {pipeline_mode = #tpu.pipeline_mode<synchronous>, transform_indices = @transform_14, window_bounds = array<i64: 64, 32>}, {pipeline_mode = #tpu.pipeline_mode<synchronous>, transform_indices = @transform_15, window_bounds = array<i64: 16, 32>}, {transform_indices = @transform_16, window_bounds = array<i64: 8, 32>}, {transform_indices = @transform_17, window_bounds = array<i64: 8, 16, 32>}]} {
    %c0 = arith.constant 0 : index
    %c0_0 = arith.constant 0 : index
    %0 = vector.load %arg16[%c0, %c0_0] : memref<16x32xf32, #tpu.memory_space<vmem>>, vector<16x32xf32>
    %1 = vector.extract_strided_slice %0 {offsets = [1, 0], sizes = [1, 32], strides = [1, 1]} : vector<16x32xf32> to vector<1x32xf32>
    %2 = vector.extract_strided_slice %0 {offsets = [2, 0], sizes = [1, 32], strides = [1, 1]} : vector<16x32xf32> to vector<1x32xf32>
    %3 = vector.extract_strided_slice %0 {offsets = [3, 0], sizes = [1, 32], strides = [1, 1]} : vector<16x32xf32> to vector<1x32xf32>
    %4 = vector.extract_strided_slice %0 {offsets = [4, 0], sizes = [1, 32], strides = [1, 1]} : vector<16x32xf32> to vector<1x32xf32>
    %5 = vector.extract_strided_slice %0 {offsets = [5, 0], sizes = [1, 32], strides = [1, 1]} : vector<16x32xf32> to vector<1x32xf32>
    %6 = vector.extract_strided_slice %0 {offsets = [6, 0], sizes = [1, 32], strides = [1, 1]} : vector<16x32xf32> to vector<1x32xf32>
    %7 = vector.extract_strided_slice %0 {offsets = [7, 0], sizes = [1, 32], strides = [1, 1]} : vector<16x32xf32> to vector<1x32xf32>
    %8 = vector.extract_strided_slice %0 {offsets = [8, 0], sizes = [1, 32], strides = [1, 1]} : vector<16x32xf32> to vector<1x32xf32>
    %9 = vector.extract_strided_slice %0 {offsets = [9, 0], sizes = [1, 32], strides = [1, 1]} : vector<16x32xf32> to vector<1x32xf32>
    %10 = vector.extract_strided_slice %0 {offsets = [10, 0], sizes = [1, 32], strides = [1, 1]} : vector<16x32xf32> to vector<1x32xf32>
    %11 = vector.extract_strided_slice %0 {offsets = [11, 0], sizes = [1, 32], strides = [1, 1]} : vector<16x32xf32> to vector<1x32xf32>
    %12 = vector.extract_strided_slice %0 {offsets = [12, 0], sizes = [1, 32], strides = [1, 1]} : vector<16x32xf32> to vector<1x32xf32>
    %13 = vector.extract_strided_slice %0 {offsets = [13, 0], sizes = [1, 32], strides = [1, 1]} : vector<16x32xf32> to vector<1x32xf32>
    %c0_1 = arith.constant 0 : index
    %c0_2 = arith.constant 0 : index
    %14 = vector.load %arg1[%c0_1, %c0_2] : memref<8x32xf32, #tpu.memory_space<vmem>>, vector<8x32xf32>
    %c0_3 = arith.constant 0 : index
    %c0_4 = arith.constant 0 : index
    %15 = vector.load %arg2[%c0_3, %c0_4] : memref<16x32xf32, #tpu.memory_space<vmem>>, vector<16x32xf32>
    %c0_5 = arith.constant 0 : index
    %c0_6 = arith.constant 0 : index
    %16 = vector.load %arg3[%c0_5, %c0_6] : memref<16x32xbf16, #tpu.memory_space<vmem>>, vector<16x32xbf16>
    %c0_7 = arith.constant 0 : index
    %c0_8 = arith.constant 0 : index
    %17 = vector.load %arg4[%c0_7, %c0_8] : memref<8x32xf32, #tpu.memory_space<vmem>>, vector<8x32xf32>
    %c0_9 = arith.constant 0 : index
    %c0_10 = arith.constant 0 : index
    %c0_11 = arith.constant 0 : index
    %18 = vector.load %arg5[%c0_9, %c0_10, %c0_11] : memref<8x16x32xbf16, #tpu.memory_space<vmem>>, vector<8x16x32xbf16>
    %19 = vector.shape_cast %18 : vector<8x16x32xbf16> to vector<128x32xbf16>
    %c0_12 = arith.constant 0 : index
    %c0_13 = arith.constant 0 : index
    %20 = vector.load %arg6[%c0_12, %c0_13] : memref<32x64xbf16, #tpu.memory_space<vmem>>, vector<32x64xbf16>
    %cst = arith.constant dense<0.000000e+00> : vector<128x64xf32>
    %21 = tpu.matmul %19, %20, %cst {dimension_numbers = #tpu.dot_dimension_numbers<[1], [0], [0], [1], [0, 0, 1, 1], [], []>} : vector<128x32xbf16>, vector<32x64xbf16>, vector<128x64xf32> -> vector<128x64xf32>
    %22 = vector.shape_cast %21 : vector<128x64xf32> to vector<8x16x64xf32>
    %23 = vector.extract_strided_slice %22 {offsets = [0, 0, 0], sizes = [8, 16, 32], strides = [1, 1, 1]} : vector<8x16x64xf32> to vector<8x16x32xf32>
    %24 = vector.shape_cast %1 : vector<1x32xf32> to vector<1x1x32xf32>
    %25 = vector.broadcast %24 : vector<1x1x32xf32> to vector<8x16x32xf32>
    %26 = arith.addf %23, %25 : vector<8x16x32xf32>
    %27 = vector.extract_strided_slice %22 {offsets = [0, 0, 32], sizes = [8, 16, 32], strides = [1, 1, 1]} : vector<8x16x64xf32> to vector<8x16x32xf32>
    %28 = vector.shape_cast %2 : vector<1x32xf32> to vector<1x1x32xf32>
    %29 = vector.broadcast %28 : vector<1x1x32xf32> to vector<8x16x32xf32>
    %30 = arith.addf %27, %29 : vector<8x16x32xf32>
    %31 = vector.shape_cast %14 : vector<8x32xf32> to vector<8x1x32xf32>
    %32 = vector.shape_cast %15 : vector<16x32xf32> to vector<1x16x32xf32>
    %33 = vector.broadcast %31 : vector<8x1x32xf32> to vector<8x16x32xf32>
    %34 = vector.broadcast %32 : vector<1x16x32xf32> to vector<8x16x32xf32>
    %35 = arith.addf %33, %34 : vector<8x16x32xf32>
    %36 = arith.mulf %35, %26 : vector<8x16x32xf32>
    %37 = math.absf %36 : vector<8x16x32xf32>
    %38 = math.sqrt %37 : vector<8x16x32xf32>
    %cst_14 = arith.constant 0.000000e+00 : f32
    %39 = vector.broadcast %cst_14 : f32 to vector<8x16x32xf32>
    %40 = arith.cmpf oge, %36, %39 : vector<8x16x32xf32>
    %cst_15 = arith.constant 0.000000e+00 : f32
    %41 = vector.broadcast %cst_15 : f32 to vector<8x16x32xf32>
    %42 = arith.subf %41, %38 : vector<8x16x32xf32>
    %43 = arith.select %40, %38, %42 : vector<8x16x32xi1>, vector<8x16x32xf32>
    %44 = arith.addf %43, %30 : vector<8x16x32xf32>
    %cst_16 = arith.constant 0.000000e+00 : f32
    %45 = vector.broadcast %cst_16 : f32 to vector<8x16x32xf32>
    %46 = arith.maximumf %44, %45 : vector<8x16x32xf32>
    %47 = arith.truncf %46 : vector<8x16x32xf32> to vector<8x16x32xbf16>
    %48 = vector.shape_cast %47 : vector<8x16x32xbf16> to vector<128x32xbf16>
    %c0_17 = arith.constant 0 : index
    %c0_18 = arith.constant 0 : index
    %49 = vector.load %arg7[%c0_17, %c0_18] : memref<32x4xbf16, #tpu.memory_space<vmem>>, vector<32x4xbf16>
    %cst_19 = arith.constant dense<0.000000e+00> : vector<128x4xf32>
    %50 = tpu.matmul %48, %49, %cst_19 {dimension_numbers = #tpu.dot_dimension_numbers<[1], [0], [0], [1], [0, 0, 1, 1], [], []>} : vector<128x32xbf16>, vector<32x4xbf16>, vector<128x4xf32> -> vector<128x4xf32>
    %51 = vector.shape_cast %50 : vector<128x4xf32> to vector<8x16x4xf32>
    %cst_20 = arith.constant -5.000000e+00 : f32
    %cst_21 = arith.constant 5.000000e+00 : f32
    %52 = vector.broadcast %cst_20 : f32 to vector<8x16x4xf32>
    %53 = arith.maximumf %52, %51 : vector<8x16x4xf32>
    %54 = vector.broadcast %cst_21 : f32 to vector<8x16x4xf32>
    %55 = arith.minimumf %54, %53 : vector<8x16x4xf32>
    %56 = tpu.transpose %55, [0, 2, 1] : vector<8x16x4xf32> -> vector<8x4x16xf32>
    %cst_22 = arith.constant dense<0xFF800000> : vector<8x4xf32>
    %57 = vector.multi_reduction <maximumf>, %56, %cst_22 [2] : vector<8x4x16xf32> to vector<8x4xf32>
    %58 = vector.shape_cast %57 : vector<8x4xf32> to vector<8x4x1xf32>
    %59 = vector.broadcast %58 : vector<8x4x1xf32> to vector<8x4x16xf32>
    %60 = arith.subf %56, %59 : vector<8x4x16xf32>
    %61 = math.exp %60 : vector<8x4x16xf32>
    %cst_23 = arith.constant dense<0.000000e+00> : vector<8x4xf32>
    %62 = vector.multi_reduction <add>, %61, %cst_23 [2] : vector<8x4x16xf32> to vector<8x4xf32>
    %cst_24 = arith.constant 1.000000e-16 : f32
    %63 = vector.broadcast %cst_24 : f32 to vector<8x4xf32>
    %64 = arith.addf %62, %63 : vector<8x4xf32>
    %65 = arith.truncf %61 : vector<8x4x16xf32> to vector<8x4x16xbf16>
    %c0_25 = arith.constant 0 : index
    %c0_26 = arith.constant 0 : index
    %66 = vector.load %arg8[%c0_25, %c0_26] : memref<4x32xf32, #tpu.memory_space<vmem>>, vector<4x32xf32>
    %67 = vector.shape_cast %65 : vector<8x4x16xbf16> to vector<32x16xbf16>
    %cst_27 = arith.constant dense<0.000000e+00> : vector<32x32xf32>
    %68 = tpu.matmul %67, %16, %cst_27 {dimension_numbers = #tpu.dot_dimension_numbers<[1], [0], [0], [1], [0, 0, 1, 1], [], []>} : vector<32x16xbf16>, vector<16x32xbf16>, vector<32x32xf32> -> vector<32x32xf32>
    %69 = vector.shape_cast %68 : vector<32x32xf32> to vector<8x4x32xf32>
    "tpu.trace_start"() <{level = 10 : i32, message = "thn,tnd->thd"}> : () -> ()
    %cst_28 = arith.constant dense<0.000000e+00> : vector<8x4x32xf32>
    %70 = tpu.matmul %65, %47, %cst_28 {dimension_numbers = #tpu.dot_dimension_numbers<[2], [1], [1], [2], [0, 0, 0, 1, 1, 2], [0], [0]>} : vector<8x4x16xbf16>, vector<8x16x32xbf16>, vector<8x4x32xf32> -> vector<8x4x32xf32>
    "tpu.trace_stop"() : () -> ()
    %71 = vector.shape_cast %66 : vector<4x32xf32> to vector<1x4x32xf32>
    %72 = vector.broadcast %71 : vector<1x4x32xf32> to vector<8x4x32xf32>
    %73 = arith.mulf %69, %72 : vector<8x4x32xf32>
    %cst_29 = arith.constant dense<0.000000e+00> : vector<8x32xf32>
    %74 = vector.multi_reduction <add>, %73, %cst_29 [1] : vector<8x4x32xf32> to vector<8x32xf32>
    %75 = vector.shape_cast %66 : vector<4x32xf32> to vector<1x4x32xf32>
    %76 = vector.broadcast %75 : vector<1x4x32xf32> to vector<8x4x32xf32>
    %77 = arith.mulf %70, %76 : vector<8x4x32xf32>
    %cst_30 = arith.constant dense<0.000000e+00> : vector<8x32xf32>
    %78 = vector.multi_reduction <add>, %77, %cst_30 [1] : vector<8x4x32xf32> to vector<8x32xf32>
    %79 = tpu.reciprocal %64 {approx = true} : vector<8x4xf32> -> vector<8x4xf32>
    %cst_31 = arith.constant dense<0.000000e+00> : vector<8x32xf32>
    %80 = tpu.matmul %79, %66, %cst_31 {dimension_numbers = #tpu.dot_dimension_numbers<[1], [0], [0], [1], [0, 0, 1, 1], [], []>} : vector<8x4xf32>, vector<4x32xf32>, vector<8x32xf32> -> vector<8x32xf32>
    %81 = arith.mulf %74, %80 : vector<8x32xf32>
    %82 = arith.mulf %78, %80 : vector<8x32xf32>
    %c0_32 = arith.constant 0 : index
    %c0_33 = arith.constant 0 : index
    %83 = vector.load %arg9[%c0_32, %c0_33] : memref<32x32xf32, #tpu.memory_space<vmem>>, vector<32x32xf32>
    %cst_34 = arith.constant dense<0.000000e+00> : vector<8x32xf32>
    %84 = tpu.matmul %82, %83, %cst_34 {dimension_numbers = #tpu.dot_dimension_numbers<[1], [0], [0], [1], [0, 0, 1, 1], [], []>} : vector<8x32xf32>, vector<32x32xf32>, vector<8x32xf32> -> vector<8x32xf32>
    %85 = arith.addf %81, %84 : vector<8x32xf32>
    %c0_35 = arith.constant 0 : index
    %c0_36 = arith.constant 0 : index
    %86 = vector.load %arg10[%c0_35, %c0_36] : memref<8x1xf32, #tpu.memory_space<vmem>>, vector<8x1xf32>
    %87 = vector.broadcast %86 : vector<8x1xf32> to vector<8x32xf32>
    %88 = vector.broadcast %4 : vector<1x32xf32> to vector<8x32xf32>
    %89 = arith.mulf %87, %88 : vector<8x32xf32>
    %90 = vector.broadcast %3 : vector<1x32xf32> to vector<8x32xf32>
    %91 = arith.addf %90, %89 : vector<8x32xf32>
    %92 = arith.mulf %85, %91 : vector<8x32xf32>
    %c0_37 = arith.constant 0 : index
    %c0_38 = arith.constant 0 : index
    %93 = vector.load %arg11[%c0_37, %c0_38] : memref<32x32xf32, #tpu.memory_space<vmem>>, vector<32x32xf32>
    %cst_39 = arith.constant dense<0.000000e+00> : vector<8x32xf32>
    %94 = tpu.matmul %92, %93, %cst_39 {dimension_numbers = #tpu.dot_dimension_numbers<[1], [0], [0], [1], [0, 0, 1, 1], [], []>} : vector<8x32xf32>, vector<32x32xf32>, vector<8x32xf32> -> vector<8x32xf32>
    %95 = vector.broadcast %5 : vector<1x32xf32> to vector<8x32xf32>
    %96 = arith.addf %94, %95 : vector<8x32xf32>
    %97 = vector.shape_cast %47 : vector<8x16x32xbf16> to vector<128x32xbf16>
    %c0_40 = arith.constant 0 : index
    %c0_41 = arith.constant 0 : index
    %98 = vector.load %arg12[%c0_40, %c0_41] : memref<32x32xbf16, #tpu.memory_space<vmem>>, vector<32x32xbf16>
    %cst_42 = arith.constant dense<0.000000e+00> : vector<128x32xf32>
    %99 = tpu.matmul %97, %98, %cst_42 {dimension_numbers = #tpu.dot_dimension_numbers<[1], [0], [0], [1], [0, 0, 1, 1], [], []>} : vector<128x32xbf16>, vector<32x32xbf16>, vector<128x32xf32> -> vector<128x32xf32>
    %100 = vector.shape_cast %99 : vector<128x32xf32> to vector<8x16x32xf32>
    %101 = vector.shape_cast %6 : vector<1x32xf32> to vector<1x1x32xf32>
    %102 = vector.broadcast %101 : vector<1x1x32xf32> to vector<8x16x32xf32>
    %103 = arith.addf %100, %102 : vector<8x16x32xf32>
    %104 = arith.addf %17, %96 : vector<8x32xf32>
    %105 = arith.extf %18 : vector<8x16x32xbf16> to vector<8x16x32xf32>
    %106 = arith.addf %105, %103 : vector<8x16x32xf32>
    %107 = vector.broadcast %7 : vector<1x32xf32> to vector<8x32xf32>
    %108 = arith.mulf %104, %107 : vector<8x32xf32>
    %109 = vector.broadcast %8 : vector<1x32xf32> to vector<8x32xf32>
    %110 = arith.addf %108, %109 : vector<8x32xf32>
    %111 = vector.shape_cast %9 : vector<1x32xf32> to vector<1x1x32xf32>
    %112 = vector.broadcast %111 : vector<1x1x32xf32> to vector<8x16x32xf32>
    %113 = arith.mulf %106, %112 : vector<8x16x32xf32>
    %114 = vector.shape_cast %10 : vector<1x32xf32> to vector<1x1x32xf32>
    %115 = vector.broadcast %114 : vector<1x1x32xf32> to vector<8x16x32xf32>
    %116 = arith.addf %113, %115 : vector<8x16x32xf32>
    %c0_43 = arith.constant 0 : index
    %c0_44 = arith.constant 0 : index
    %117 = vector.load %arg13[%c0_43, %c0_44] : memref<32x64xf32, #tpu.memory_space<vmem>>, vector<32x64xf32>
    %cst_45 = arith.constant dense<0.000000e+00> : vector<8x64xf32>
    %118 = tpu.matmul %110, %117, %cst_45 {dimension_numbers = #tpu.dot_dimension_numbers<[1], [0], [0], [1], [0, 0, 1, 1], [], []>} : vector<8x32xf32>, vector<32x64xf32>, vector<8x64xf32> -> vector<8x64xf32>
    %c0_46 = arith.constant 0 : index
    %c0_47 = arith.constant 0 : index
    %119 = vector.load %arg14[%c0_46, %c0_47] : memref<1x64xf32, #tpu.memory_space<vmem>>, vector<1x64xf32>
    %120 = vector.broadcast %119 : vector<1x64xf32> to vector<8x64xf32>
    %121 = arith.addf %118, %120 : vector<8x64xf32>
    %cst_48 = arith.constant 0.000000e+00 : f32
    %122 = vector.broadcast %cst_48 : f32 to vector<8x64xf32>
    %123 = arith.maximumf %121, %122 : vector<8x64xf32>
    %c0_49 = arith.constant 0 : index
    %c0_50 = arith.constant 0 : index
    %124 = vector.load %arg15[%c0_49, %c0_50] : memref<64x32xf32, #tpu.memory_space<vmem>>, vector<64x32xf32>
    %cst_51 = arith.constant dense<0.000000e+00> : vector<8x32xf32>
    %125 = tpu.matmul %123, %124, %cst_51 {dimension_numbers = #tpu.dot_dimension_numbers<[1], [0], [0], [1], [0, 0, 1, 1], [], []>} : vector<8x64xf32>, vector<64x32xf32>, vector<8x32xf32> -> vector<8x32xf32>
    %126 = vector.broadcast %11 : vector<1x32xf32> to vector<8x32xf32>
    %127 = arith.addf %125, %126 : vector<8x32xf32>
    %128 = arith.addf %110, %127 : vector<8x32xf32>
    %129 = vector.broadcast %12 : vector<1x32xf32> to vector<8x32xf32>
    %130 = arith.mulf %128, %129 : vector<8x32xf32>
    %131 = vector.broadcast %13 : vector<1x32xf32> to vector<8x32xf32>
    %132 = arith.addf %130, %131 : vector<8x32xf32>
    %c0_52 = arith.constant 0 : index
    %c0_53 = arith.constant 0 : index
    %133 = vector.load %arg17[%c0_52, %c0_53] : memref<8x32xf32, #tpu.memory_space<vmem>>, vector<8x32xf32>
    tpu.vector_store %arg17[%c0_52, %c0_53], %132 {strides = array<i32>} : memref<8x32xf32, #tpu.memory_space<vmem>>, vector<8x32xf32>,
    %134 = arith.truncf %116 : vector<8x16x32xf32> to vector<8x16x32xbf16>
    %c0_54 = arith.constant 0 : index
    %c0_55 = arith.constant 0 : index
    %c0_56 = arith.constant 0 : index
    %135 = vector.load %arg18[%c0_54, %c0_55, %c0_56] : memref<8x16x32xbf16, #tpu.memory_space<vmem>>, vector<8x16x32xbf16>
    tpu.vector_store %arg18[%c0_54, %c0_55, %c0_56], %134 {strides = array<i32>} : memref<8x16x32xbf16, #tpu.memory_space<vmem>>, vector<8x16x32xbf16>,
    return
  }
  func.func @transform_0(%arg0: i32) -> (i32, i32) {
    %c0_i32 = arith.constant 0 : i32
    %c0_i32_0 = arith.constant 0 : i32
    return %arg0, %c0_i32 : i32, i32
  }
  func.func @transform_1(%arg0: i32) -> (i32, i32) {
    %c0_i32 = arith.constant 0 : i32
    %c0_i32_0 = arith.constant 0 : i32
    %c0_i32_1 = arith.constant 0 : i32
    return %c0_i32, %c0_i32_0 : i32, i32
  }
  func.func @transform_2(%arg0: i32) -> (i32, i32) {
    %c0_i32 = arith.constant 0 : i32
    %c0_i32_0 = arith.constant 0 : i32
    %c0_i32_1 = arith.constant 0 : i32
    return %c0_i32, %c0_i32_0 : i32, i32
  }
  func.func @transform_3(%arg0: i32) -> (i32, i32) {
    %c0_i32 = arith.constant 0 : i32
    %c0_i32_0 = arith.constant 0 : i32
    return %arg0, %c0_i32 : i32, i32
  }
  func.func @transform_4(%arg0: i32) -> (i32, i32, i32) {
    %c0_i32 = arith.constant 0 : i32
    %c0_i32_0 = arith.constant 0 : i32
    %c0_i32_1 = arith.constant 0 : i32
    return %arg0, %c0_i32, %c0_i32_0 : i32, i32, i32
  }
  func.func @transform_5(%arg0: i32) -> (i32, i32) {
    %c0_i32 = arith.constant 0 : i32
    %c0_i32_0 = arith.constant 0 : i32
    %c0_i32_1 = arith.constant 0 : i32
    return %c0_i32, %c0_i32_0 : i32, i32
  }
  func.func @transform_6(%arg0: i32) -> (i32, i32) {
    %c0_i32 = arith.constant 0 : i32
    %c0_i32_0 = arith.constant 0 : i32
    %c0_i32_1 = arith.constant 0 : i32
    return %c0_i32, %c0_i32_0 : i32, i32
  }
  func.func @transform_7(%arg0: i32) -> (i32, i32) {
    %c0_i32 = arith.constant 0 : i32
    %c0_i32_0 = arith.constant 0 : i32
    %c0_i32_1 = arith.constant 0 : i32
    return %c0_i32, %c0_i32_0 : i32, i32
  }
  func.func @transform_8(%arg0: i32) -> (i32, i32) {
    %c0_i32 = arith.constant 0 : i32
    %c0_i32_0 = arith.constant 0 : i32
    %c0_i32_1 = arith.constant 0 : i32
    return %c0_i32, %c0_i32_0 : i32, i32
  }
  func.func @transform_9(%arg0: i32) -> (i32, i32) {
    %c0_i32 = arith.constant 0 : i32
    %c0_i32_0 = arith.constant 0 : i32
    return %arg0, %c0_i32 : i32, i32
  }
  func.func @transform_10(%arg0: i32) -> (i32, i32) {
    %c0_i32 = arith.constant 0 : i32
    %c0_i32_0 = arith.constant 0 : i32
    %c0_i32_1 = arith.constant 0 : i32
    return %c0_i32, %c0_i32_0 : i32, i32
  }
  func.func @transform_11(%arg0: i32) -> (i32, i32) {
    %c0_i32 = arith.constant 0 : i32
    %c0_i32_0 = arith.constant 0 : i32
    %c0_i32_1 = arith.constant 0 : i32
    return %c0_i32, %c0_i32_0 : i32, i32
  }
  func.func @transform_12(%arg0: i32) -> (i32, i32) {
    %c0_i32 = arith.constant 0 : i32
    %c0_i32_0 = arith.constant 0 : i32
    %c0_i32_1 = arith.constant 0 : i32
    return %c0_i32, %c0_i32_0 : i32, i32
  }
  func.func @transform_13(%arg0: i32) -> (i32, i32) {
    %c0_i32 = arith.constant 0 : i32
    %c0_i32_0 = arith.constant 0 : i32
    %c0_i32_1 = arith.constant 0 : i32
    return %c0_i32, %c0_i32_0 : i32, i32
  }
  func.func @transform_14(%arg0: i32) -> (i32, i32) {
    %c0_i32 = arith.constant 0 : i32
    %c0_i32_0 = arith.constant 0 : i32
    %c0_i32_1 = arith.constant 0 : i32
    return %c0_i32, %c0_i32_0 : i32, i32
  }
  func.func @transform_15(%arg0: i32) -> (i32, i32) {
    %c0_i32 = arith.constant 0 : i32
    %c0_i32_0 = arith.constant 0 : i32
    %c0_i32_1 = arith.constant 0 : i32
    return %c0_i32, %c0_i32_0 : i32, i32
  }
  func.func @transform_16(%arg0: i32) -> (i32, i32) {
    %c0_i32 = arith.constant 0 : i32
    %c0_i32_0 = arith.constant 0 : i32
    return %arg0, %c0_i32 : i32, i32
  }
  func.func @transform_17(%arg0: i32) -> (i32, i32, i32) {
    %c0_i32 = arith.constant 0 : i32
    %c0_i32_0 = arith.constant 0 : i32
    %c0_i32_1 = arith.constant 0 : i32
    return %arg0, %c0_i32, %c0_i32_0 : i32, i32, i32
  }
}

</mosaic_0001>

<bundles_post_ra>
// kernel: _grit_embed_and_head.11
= control target key start
LH: loop header
LB: loop body
LE: loop exit
PB: predicated region body
PF: predicated region fallthrough
CT: control target
= control target key end

     0   :  { %vm27_vm0 = vcmask 261120   ;;  %vm109_vm1 = vcmask 23552   ;;  %s191_s1 = inlined_call_operand.vmem [shape: f32[32,3], index: 1, kind: input, shape index: {}]   ;;  %s192_s0 = inlined_call_operand.vmem [shape: f32[16,32], index: 0, kind: input, shape index: {}]   ;;  %s193_s2 = inlined_call_operand.vmem [shape: f32[1,3], index: 2, kind: input, shape index: {}]   ;;  %s194_s3 = inlined_call_operand.vmem [shape: f32[16,3], index: 3, kind: output, shape index: {}]  }
   0x1   :  { %v16_v0 = vld [vmem:[%s191_s1] sm:$0xff]  ;;  %v17_v1 = vld [vmem:[%s191_s1 + $0x8] sm:$0xff]  ;;  %v18_v2 = vld [vmem:[%s191_s1 + $0x10] sm:$0xff] }
   0x2   :  { %v136_v3 = vpack.c.bf16 %v17_v1, %v16_v0  ;;  %v19_v4 = vld [vmem:[%s191_s1 + $0x18] sm:$0xff]  ;;  %v14_v5 = vld [vmem:[%s192_s0] sm:$0xff]  ;;  %v15_v7 = vld [vmem:[%s192_s0 + $0x8] sm:$0xff] }
   0x3   :  { %v140_v6 = vpack.c.bf16 %v19_v4, %v18_v2  ;;  %133 = vmatprep.mubr.msk.f32.mxu0 %vm27_vm0, %v14_v5  ;;  %v116_v8 = vld [vmem:[%s193_s2] ss:$0 sm:$0xff] }
   0x4   :  { %137 = vmatprep.subr.bf16.mxu0 %v136_v3 }
   0x5   :  { %139 = vmatpush3.bf16.msra.mxu0 %v136_v3 }
   0x6   :  { %141 = vmatprep.subr.bf16.mxu0 %v140_v6 }
   0x9   :  { %143 = vmatpush3.bf16.msra.mxu0 %v140_v6 }
   0xc   :  { %134 = vmatmul.mubr.msk.f32.vlgmr.msra.gmra.mrb[0].mxu0 %vm27_vm0, %v15_v7 }
  0xdf   :  { %v135_v9 = vpop.f32.mrb[0].mxu0 }
  0xe0   :  { %v106_v10 = vadd.f32 %v135_v9, %v116_v8  ;;  %v100_v11 = vpop.f32.mrb[1].mxu0 }
  0xe1   :  { %v101_v12 = vadd.f32 %v116_v8, %v100_v11 }
  0xe2   :  { %111 = vst.msk [vmem:[%s194_s3 + $0x8] sm:$0xff] %vm109_vm1, %v106_v10 }
  0xe3   :  { %110 = vst.msk [vmem:[%s194_s3] sm:$0xff] %vm109_vm1, %v101_v12 }

// kernel: _grit_embed_and_head.7
= control target key start
LH: loop header
LB: loop body
LE: loop exit
PB: predicated region body
PF: predicated region fallthrough
CT: control target
= control target key end

     0   :  { %s789_s24 = smov 0   ;;  %s868_s0 = inlined_call_operand.vmem [shape: f32[16,32], index: 0, kind: input, shape index: {}]   ;;  %s869_s1 = inlined_call_operand.vmem [shape: f32[32,32], index: 1, kind: input, shape index: {}]   ;;  %s870_s2 = inlined_call_operand.vmem [shape: f32[32,32], index: 2, kind: input, shape index: {}]   ;;  %s871_s3 = inlined_call_operand.vmem [shape: f32[32,32], index: 3, kind: input, shape index: {}]   ;;  %s872_s4 = inlined_call_operand.vmem [shape: f32[16,32], index: 4, kind: input, shape index: {}]   ;;  %s873_s5 = inlined_call_operand.vmem [shape: f32[16,32], index: 5, kind: output, shape index: {0}]   ;;  %s874_s6 = inlined_call_operand.vmem [shape: f32[16,32], index: 6, kind: output, shape index: {1}]   ;;  %s875_s7 = inlined_call_operand.vmem [shape: bf16[16,32], index: 7, kind: output, shape index: {2}]  }
   0x1 LB: > { %s647_s25 = sadd.s32 4294967295, %s744_s24   ;;  %p651_p0 = scmp.ge.s32.totalorder %s744_s24, 1  ;;  %s744_s24 = sphi %s789_s24, %s18_s24  }
   0x2   : > { %p241_p1 = scmp.lt.s32.totalorder %s744_s24, 3 }
   0x4   : > { %p242_p2 = pnand %p651_p0, %p241_p1 }
   0x5   : > { %v297_v0 = vld [vmem:[%s869_s1] sm:$0xff] (!%p242_p2)  ;;  %v298_v1 = vld [vmem:[%s869_s1 + $0x8] sm:$0xff] (!%p242_p2)  ;;  %v299_v2 = vld [vmem:[%s869_s1 + $0x10] sm:$0xff] (!%p242_p2)  ;;  %v746_v3 = vmov (!%p242_p2), 0.0|0.0   ;;  %vm747_vm0 = vmmov (!%p242_p2), 0   ;;  %v748_v6 = vmov (!%p242_p2), 0.0   ;;  %v301_v21 = vlaneseq (!%p242_p2) }
   0x6   : > { %245 = sbr.rel (%p242_p2) target bundleno = 240 (0xf0), region = 40  ;;  %709 = vmatprep.subr.bf16.mxu0 (!%p242_p2), %v746_v3  ;;  %v710_v4 = vpack.c.bf16 (!%p242_p2), %v298_v1, %v297_v0  ;;  %v300_v5 = vld [vmem:[%s869_s1 + $0x18] sm:$0xff] (!%p242_p2)  ;;  %684 = vmatprep.mubr.msk.f32.mxu0 (!%p242_p2), %vm747_vm0, %v748_v6  ;;  %p279_p3 = scmp.lt.s32.totalorder (!%p242_p2), %s647_s25, 1  ;;  %v380_v7 = vld [vmem:[%s870_s2] sm:$0xff] (!%p242_p2)  ;;  %v381_v8 = vld [vmem:[%s870_s2 + $0x8] sm:$0xff] (!%p242_p2)  ;;  %vm305_vm1 = vcmask (!%p242_p2), 261120  }
   0x7   : > { %715 = vmatprep.subr.bf16.mxu1 (!%p242_p2), %v746_v3  ;;  %695 = vmatprep.mubr.msk.f32.mxu1 (!%p242_p2), %vm747_vm0, %v748_v6  ;;  %v713_v9 = vpack.c.bf16 (!%p242_p2), %v300_v5, %v299_v2  ;;  %v716_v10 = vpack.c.bf16 (!%p242_p2), %v381_v8, %v380_v7  ;;  %v382_v11 = vld [vmem:[%s870_s2 + $0x10] sm:$0xff] (!%p242_p2)  ;;  %v383_v12 = vld [vmem:[%s870_s2 + $0x18] sm:$0xff] (!%p242_p2)  ;;  %v455_v13 = vld [vmem:[%s871_s3] sm:$0xff] (!%p242_p2)  ;;  %v302_v22 = vshrl.u32 (!%p242_p2), %v301_v21, 7  ;;  %vm530_vm2 = vcmask (!%p242_p2), 257024  }
   0x8   : > { %711 = vmatpush3.bf16.msra.mxu0 (!%p242_p2), %v710_v4  ;;  %v456_v14 = vld [vmem:[%s871_s3 + $0x8] sm:$0xff] (!%p242_p2)  ;;  %v719_v15 = vpack.c.bf16 (!%p242_p2), %v383_v12, %v382_v11  ;;  %v457_v18 = vld [vmem:[%s871_s3 + $0x10] sm:$0xff] (!%p242_p2)  ;;  %v458_v19 = vld [vmem:[%s871_s3 + $0x18] sm:$0xff] (!%p242_p2) }
   0x9   : > { %712 = vmatprep.subr.bf16.mxu0 (!%p242_p2), %v746_v3  ;;  %717 = vmatpush3.bf16.msra.mxu1 (!%p242_p2), %v716_v10  ;;  %v722_v17 = vpack.c.bf16 (!%p242_p2), %v456_v14, %v455_v13  ;;  %v725_v20 = vpack.c.bf16 (!%p242_p2), %v458_v19, %v457_v18  ;;  %v303_v23 = vsub.s32 (!%p242_p2), 0, %v302_v22  ;;  %v296_v24 = vld [vmem:[%s872_s4] sm:$0xff] (!%p242_p2) }
   0xa   : > { %718 = vmatprep.subr.bf16.mxu1 (!%p242_p2), %v746_v3 }
   0xb   : > { %v304_v25 = vrot.slane (!%p242_p2), %v296_v24, %v303_v23 }
   0xc   : > { %714 = vmatpush3.bf16.msra.mxu0 (!%p242_p2), %v713_v9 }
   0xd   : > { %s877_s25 = smov (!%p279_p3, %s647_s25), 1  ;;  %721 = vmatprep.subr.bf16.mxu0 %v746_v3  ;;  %720 = vmatpush3.bf16.msra.mxu1 %v719_v15 }
   0xe   : > { %s832_s23 = sshll.u32 %s877_s25, 3  ;;  %s655_s18 = sshll.u32 %s877_s25, 2 }
   0xf   : > { %s282_s28 = scalar_lea.vmem %s868_s0, %s832_s23  ;;  %s286_s14 = scalar_lea.vmem %s873_s5, %s832_s23 }
  0x10   : > { %v295_v16 = vld [vmem:[%s282_s28] sm:$0xff]  ;;  %s290_s17 = scalar_lea.vmem %s874_s6, %s832_s23  ;;  %s294_s21 = scalar_lea.vmem %s875_s7, %s655_s18 }
  0x11   : > { %685 = vmatmul.mubr.msk.f32.vlgmr.msra.gmra.mrb[0].mxu0 %vm305_vm1, %v295_v16  ;;  %696 = vmatmul.mubr.msk.f32.vlgmr.msra.gmra.mrb[0].mxu1 %vm305_vm1, %v295_v16 }
  0x12   : > { %723 = vmatpush3.bf16.msra.mxu0 %v722_v17  ;;  %706 = vmatprep.mubr.msk.f32.mxu0 %vm747_vm0, %v748_v6 }
  0x13   : > { %724 = vmatprep.subr.bf16.mxu0 %v746_v3 }
  0x16   : > { %726 = vmatpush3.bf16.msra.mxu0 %v725_v20 }
  0x19   : > { %707 = vmatmul.mubr.msk.f32.vlgmr.msra.gmra.mrb[2].mxu0 %vm305_vm1, %v295_v16 }
  0xe4   : > { %v375_v26 = vpop.f32.mrb[0].mxu0  ;;  %v450_v29 = vpop.f32.mrb[0].mxu1 }
  0xe5   : > { %v376_v27 = vadd.f32 %v375_v26, %v304_v25  ;;  %v686_v28 = vpop.f32.mrb[1].mxu0  ;;  %454 = vst.msk [vmem:[%s290_s17] sm:$0xff] %vm305_vm1, %v450_v29  ;;  %v697_v30 = vpop.f32.mrb[1].mxu1 }
  0xe7   : > { %379 = vst.msk [vmem:[%s286_s14] sm:$0xff] %vm305_vm1, %v376_v27 }
  0xec   : > { %v525_v31 = vpop.f32.mrb[2].mxu0 }
  0xed   : > { %v529_v32 = vpack.c.bf16 %v525_v31, %v525_v31  ;;  %v708_v33 = vpop.f32.mrb[3].mxu0 }
  0xef   : > { %531 = vst.msk [vmem:[%s294_s21] sm:$0xf] %vm530_vm2, %v529_v32 }
  0xf0 PF: > { %s18_s24 = sadd.s32 1, %s744_s24  }
  0xf1   : > { %p15_p4 = scmp.ge.s32.totalorder %s18_s24, 4  }
  0xf3   :  { %17 = sbr.rel (!%p15_p4) target bundleno = 1 (0x1), region = 94 }

// kernel: _grit_embed_and_head.6
= control target key start
LH: loop header
LB: loop body
LE: loop exit
PB: predicated region body
PF: predicated region fallthrough
CT: control target
= control target key end

     0   :  { %s938_s21 = smov 0   ;;  %s1021_s0 = inlined_call_operand.vmem [shape: f32[16,32], index: 0, kind: input, shape index: {}]   ;;  %s1022_s1 = inlined_call_operand.vmem [shape: f32[16,5], index: 1, kind: input, shape index: {}]   ;;  %s1023_s2 = inlined_call_operand.vmem [shape: bf16[16,16,5], index: 2, kind: input, shape index: {}]   ;;  %s1024_s3 = inlined_call_operand.vmem [shape: f32[5,32], index: 3, kind: input, shape index: {}]   ;;  %s1025_s4 = inlined_call_operand.vmem [shape: bf16[5,32], index: 4, kind: input, shape index: {}]   ;;  %s1026_s5 = inlined_call_operand.vmem [shape: f32[16,32], index: 5, kind: output, shape index: {0}]   ;;  %s1027_s6 = inlined_call_operand.vmem [shape: bf16[16,16,32], index: 6, kind: output, shape index: {1}]  }
   0x1 LB: > { %s769_s22 = sadd.s32 4294967295, %s898_s21   ;;  %p773_p0 = scmp.ge.s32.totalorder %s898_s21, 1  ;;  %s898_s21 = sphi %s938_s21, %s17_s21  }
   0x2   : > { %p235_p1 = scmp.lt.s32.totalorder %s898_s21, 3 }
   0x4   : > { %p236_p2 = pnand %p773_p0, %p235_p1 }
   0x5   : > { %v406_v0 = vld [vmem:[%s1025_s4] sm:$0x7] (!%p236_p2)  ;;  %vm471_vm0 = vcmask (!%p236_p2), 1041408   ;;  %vm472_vm1 = vcmask (!%p236_p2), 1042432   ;;  %s776_s25 = sshll.u32 (!%p236_p2), %s769_s22, 3  ;;  %v900_v1 = vmov (!%p236_p2), 65535  }
   0x6   : > { %239 = sbr.rel (%p236_p2) target bundleno = 252 (0xfc), region = 40  ;;  %v473_v2 = vsel (!%p236_p2), %vm471_vm0, 4294967295, %v900_v1  ;;  %p288_p3 = scmp.lt.s32.totalorder (!%p236_p2), %s776_s25, 15  ;;  %v308_v3 = vld [vmem:[%s1024_s3] sm:$0x1f] (!%p236_p2)  ;;  %v901_v5 = vmov (!%p236_p2), 0.0  }
   0x7   : > { %v474_v4 = vsel (!%p236_p2), %vm472_vm1, %v473_v2, 0  ;;  %848 = vmatprep.subr.mxu0 (!%p236_p2), %v901_v5  ;;  %vm313_vm2 = vcmask (!%p236_p2), 1044480   ;;  %p279_p4 = scmp.lt.s32.totalorder (!%p236_p2), %s769_s22, 1  ;;  %vm902_vm3 = vmmov (!%p236_p2), 0   ;;  %vm309_vm4 = vcmask (!%p236_p2), 39936  }
   0x8   : > { %v476_v6 = vand.u32 (!%p236_p2), %v474_v4, %v406_v0  ;;  %849 = vmatpush3.msk.msra.mxu0 (!%p236_p2), %vm313_vm2, %v308_v3  ;;  %850 = vmatprep.mubr.msk.f32.mxu0 (!%p236_p2), %vm902_vm3, %v901_v5  ;;  %vm639_vm5 = vcmask (!%p236_p2), 257024   ;;  %vm388_vm6 = vcmask (!%p236_p2), 261120  }
   0xa   : > { %871 = vmatprep.subr.bf16.mxu1 (!%p236_p2), %v476_v6  ;;  %853 = vmatprep.subr.bf16.mxu0 (!%p236_p2), %v476_v6 }
   0xb   : > { %872 = vmatpush3.bf16.msra.mxu1 (!%p236_p2), %v476_v6 }
   0xd   : > { %s1029_s25 = smov (!%p288_p3, %s776_s25), 15  ;;  %s1031_s22 = smov (!%p279_p4, %s769_s22), 1 }
   0xe   : > { %s819_s28 = sshll.u32 %s1029_s25, 3  ;;  %s958_s8 = sshll.u32 %s1031_s22, 3 }
   0xf   : > { %s292_s7 = scalar_lea.vmem %s1023_s2, %s819_s28  ;;  %s286_s11 = scalar_lea.vmem %s1022_s1, %s958_s8 }
  0x10   : > { %v884_v7 = vld [vmem:[%s292_s7 + $0x10] sm:$0xff]   ;;  %v885_v8 = vld [vmem:[%s292_s7 + $0x18] sm:$0xff]   ;;  %v886_v9 = vld [vmem:[%s292_s7 + $0x20] sm:$0xff]   ;;  %s282_s14 = scalar_lea.vmem %s1021_s0, %s958_s8  ;;  %s980_s17 = scalar_lea.vmem %s1027_s6, %s819_s28 }
  0x11   : > { %859 = vmatprep.mubr.msk.bf16.mxu1 %vm309_vm4, %v884_v7  ;;  %v307_v10 = vld [vmem:[%s286_s11] sm:$0xff]  ;;  %v889_v12 = vld [vmem:[%s292_s7 + $0x8] sm:$0xff]   ;;  %v890_v14 = vld [vmem:[%s292_s7 + $0x30] sm:$0xff]   ;;  %s297_s20 = scalar_lea.vmem %s1026_s5, %s958_s8 }
  0x12   : > { %860 = vmatmul.mubr.msk.bf16.vlgmr.msra.gmra.mrb[0].mxu1 %vm309_vm4, %v885_v8  ;;  %851 = vmatmul.mubr.msk.f32.vlgmr.msra.gmra.mrb[0].mxu0 %vm309_vm4, %v307_v10  ;;  %v888_v11 = vld [vmem:[%s292_s7] sm:$0xff]   ;;  %v887_v13 = vld [vmem:[%s292_s7 + $0x28] sm:$0xff]   ;;  %v891_v15 = vld [vmem:[%s292_s7 + $0x38] sm:$0xff]  }
  0x13   : > { %863 = vmatprep.mubr.msk.bf16.mxu1 %vm309_vm4, %v886_v9  ;;  %854 = vmatpush3.bf16.msra.mxu0 %v476_v6  ;;  %v306_v17 = vld [vmem:[%s282_s14] sm:$0xff] }
  0x14   : > { %855 = vmatprep.mubr.msk.bf16.mxu0 %vm309_vm4, %v888_v11 }
  0x16   : > { %856 = vmatmul.mubr.msk.bf16.vlgmr.msra.gmra.mrb[4].mxu0 %vm309_vm4, %v889_v12 }
  0x1a   : > { %864 = vmatmul.mubr.msk.bf16.gmra.mrb[4].mxu1 %vm309_vm4, %v887_v13 }
  0x1b   : > { %867 = vmatprep.mubr.msk.bf16.mxu1 %vm309_vm4, %v890_v14 }
  0x22   : > { %868 = vmatmul.mubr.msk.bf16.gmra.mrb[8].mxu1 %vm309_vm4, %v891_v15 }
  0xe5   : > { %v861_v16 = vpop.f32.mrb[0].mxu1  ;;  %v383_v22 = vpop.f32.mrb[0].mxu0 }
  0xe6   : > { %v827_v18 = vpack.c.bf16 %v861_v16, %v861_v16  ;;  %v528_v19 = vpop.f32.mrb[1].mxu1  ;;  %v387_v25 = vadd.f32 %v383_v22, %v306_v17  ;;  %v852_v26 = vpop.f32.mrb[1].mxu0 }
  0xe7   : > { %v825_v20 = vpack.c.bf16 %v528_v19, %v528_v19  ;;  %v862_v21 = vpop.f32.mrb[2].mxu1 }
  0xe8   : > { %646 = vst.msk [vmem:[%s980_s17 + $0x18] sm:$0xf] %vm639_vm5, %v827_v18  ;;  %v828_v23 = vpack.c.bf16 %v862_v21, %v862_v21  ;;  %v531_v24 = vpop.f32.mrb[3].mxu1 }
  0xe9   : > { %644 = vst.msk [vmem:[%s980_s17 + $0x10] sm:$0xf] %vm639_vm5, %v825_v20  ;;  %v826_v27 = vpack.c.bf16 %v531_v24, %v531_v24  ;;  %v857_v28 = vpop.f32.mrb[4].mxu0 }
  0xea   : > { %647 = vst.msk [vmem:[%s980_s17 + $0x1c] sm:$0xf] %vm639_vm5, %v828_v23  ;;  %v823_v29 = vpack.c.bf16 %v857_v28, %v857_v28  ;;  %v512_v30 = vpop.f32.mrb[5].mxu0 }
  0xeb   : > { %389 = vst.msk [vmem:[%s297_s20] sm:$0xff] %vm388_vm6, %v387_v25  ;;  %v821_v32 = vpack.c.bf16 %v512_v30, %v512_v30  ;;  %v858_v33 = vpop.f32.mrb[6].mxu0 }
  0xec   : > { %645 = vst.msk [vmem:[%s980_s17 + $0x14] sm:$0xf] %vm639_vm5, %v826_v27  ;;  %642 = vst.msk [vmem:[%s980_s17 + $0x8] sm:$0xf] %vm639_vm5, %v823_v29  ;;  %v824_v36 = vpack.c.bf16 %v858_v33, %v858_v33  ;;  %v515_v37 = vpop.f32.mrb[7].mxu0 }
  0xed   : > { %v865_v31 = vpop.f32.mrb[4].mxu1  ;;  %640 = vst.msk [vmem:[%s980_s17] sm:$0xf] %vm639_vm5, %v821_v32  ;;  %v822_v40 = vpack.c.bf16 %v515_v37, %v515_v37 }
  0xee   : > { %v831_v34 = vpack.c.bf16 %v865_v31, %v865_v31  ;;  %v544_v35 = vpop.f32.mrb[5].mxu1  ;;  %643 = vst.msk [vmem:[%s980_s17 + $0xc] sm:$0xf] %vm639_vm5, %v824_v36 }
  0xef   : > { %v829_v38 = vpack.c.bf16 %v544_v35, %v544_v35  ;;  %v866_v39 = vpop.f32.mrb[6].mxu1  ;;  %641 = vst.msk [vmem:[%s980_s17 + $0x4] sm:$0xf] %vm639_vm5, %v822_v40 }
  0xf0   : > { %650 = vst.msk [vmem:[%s980_s17 + $0x28] sm:$0xf] %vm639_vm5, %v831_v34  ;;  %v832_v41 = vpack.c.bf16 %v866_v39, %v866_v39  ;;  %v547_v42 = vpop.f32.mrb[7].mxu1 }
  0xf1   : > { %648 = vst.msk [vmem:[%s980_s17 + $0x20] sm:$0xf] %vm639_vm5, %v829_v38  ;;  %v830_v43 = vpack.c.bf16 %v547_v42, %v547_v42 }
  0xf2   : > { %651 = vst.msk [vmem:[%s980_s17 + $0x2c] sm:$0xf] %vm639_vm5, %v832_v41 }
  0xf3   : > { %649 = vst.msk [vmem:[%s980_s17 + $0x24] sm:$0xf] %vm639_vm5, %v830_v43 }
  0xf5   : > { %v869_v44 = vpop.f32.mrb[8].mxu1 }
  0xf6   : > { %v835_v45 = vpack.c.bf16 %v869_v44, %v869_v44  ;;  %v560_v46 = vpop.f32.mrb[9].mxu1 }
  0xf7   : > { %v833_v47 = vpack.c.bf16 %v560_v46, %v560_v46  ;;  %v870_v48 = vpop.f32.mrb[10].mxu1 }
  0xf8   : > { %654 = vst.msk [vmem:[%s980_s17 + $0x38] sm:$0xf] %vm639_vm5, %v835_v45  ;;  %v836_v49 = vpack.c.bf16 %v870_v48, %v870_v48  ;;  %v563_v50 = vpop.f32.mrb[11].mxu1 }
  0xf9   : > { %652 = vst.msk [vmem:[%s980_s17 + $0x30] sm:$0xf] %vm639_vm5, %v833_v47  ;;  %v834_v51 = vpack.c.bf16 %v563_v50, %v563_v50 }
  0xfa   : > { %655 = vst.msk [vmem:[%s980_s17 + $0x3c] sm:$0xf] %vm639_vm5, %v836_v49 }
  0xfb   : > { %653 = vst.msk [vmem:[%s980_s17 + $0x34] sm:$0xf] %vm639_vm5, %v834_v51 }
  0xfc PF: > { %s17_s21 = sadd.s32 1, %s898_s21  }
  0xfd   : > { %p14_p5 = scmp.ge.s32.totalorder %s17_s21, 4  }
  0xff   :  { %16 = sbr.rel (!%p14_p5) target bundleno = 1 (0x1), region = 88 }

// kernel: _grit_embed_and_head.8
= control target key start
LH: loop header
LB: loop body
LE: loop exit
PB: predicated region body
PF: predicated region fallthrough
CT: control target
= control target key end

     0   :  { %s4032_s24 = smov 0   ;;  %s4979_s0 = inlined_call_operand.vmem [shape: f32[16,32], index: 0, kind: input, shape index: {}]   ;;  %s4980_s1 = inlined_call_operand.vmem [shape: f32[16,32], index: 1, kind: input, shape index: {}]   ;;  %s4981_s2 = inlined_call_operand.vmem [shape: bf16[16,32], index: 2, kind: input, shape index: {}]   ;;  %s4982_s3 = inlined_call_operand.vmem [shape: f32[16,32], index: 3, kind: input, shape index: {}]   ;;  %s4983_s4 = inlined_call_operand.vmem [shape: bf16[16,16,32], index: 4, kind: input, shape index: {}, may-alias: {4,17}]   ;;  %s4984_s5 = inlined_call_operand.vmem [shape: bf16[32,64], index: 5, kind: input, shape index: {}]   ;;  %s4985_s6 = inlined_call_operand.vmem [shape: bf16[32,4], index: 6, kind: input, shape index: {}]   ;;  %s4986_s7 = inlined_call_operand.vmem [shape: f32[4,32], index: 7, kind: input, shape index: {}]   ;;  %s4987_s8 = inlined_call_operand.vmem [shape: f32[32,32], index: 8, kind: input, shape index: {}]   ;;  %s4988_s9 = inlined_call_operand.vmem [shape: f32[16,1], index: 9, kind: input, shape index: {}]   ;;  %s4989_s10 = inlined_call_operand.vmem [shape: f32[32,32], index: 10, kind: input, shape index: {}]   ;;  %s4990_s11 = inlined_call_operand.vmem [shape: bf16[32,32], index: 11, kind: input, shape index: {}]   ;;  %s4991_s12 = inlined_call_operand.vmem [shape: f32[32,64], index: 12, kind: input, shape index: {}]   ;;  %s4992_s13 = inlined_call_operand.vmem [shape: f32[1,64], index: 13, kind: input, shape index: {}]   ;;  %s4993_s14 = inlined_call_operand.vmem [shape: f32[64,32], index: 14, kind: input, shape index: {}]   ;;  %s4994_s15 = inlined_call_operand.vmem [shape: f32[16,32], index: 15, kind: input, shape index: {}]   ;;  %s4995_s16 = inlined_call_operand.vmem [shape: f32[16,32], index: 16, kind: output, shape index: {0}]   ;;  %s4996_s17 = inlined_call_operand.vmem [shape: bf16[16,16,32], index: 17, kind: output, shape index: {1}, may-alias: {4,17}]  }
   0x1   :  { %5004 = sst [smem:[#allocation2_spill]] %s4979_s0 }
   0x2   :  { %5005 = sst [smem:[#allocation3_spill]] %s4980_s1 }
   0x3 LB: > { %s4038_s25 = sadd.s32 4294967295, %s3932_s24   ;;  %p3417_p0 = scmp.ge.s32.totalorder %s3932_s24, 1  ;;  %s3932_s24 = sphi %s4032_s24, %s28_s24  }
   0x4   : > { %p519_p1 = scmp.lt.s32.totalorder %s3932_s24, 3 }
   0x6   : > { %p520_p2 = pnand %p3417_p0, %p519_p1 }
   0x7   : > { %v3833_v0 = vld [vmem:[%s4984_s5] sm:$0xff] (!%p520_p2)   ;;  %s3420_s28 = sshll.u32 (!%p520_p2), %s4038_s25, 3  ;;  %v822_v1 = vlaneseq (!%p520_p2)  ;;  %v3834_v2 = vld [vmem:[%s4984_s5 + $0x8] sm:$0xff] (!%p520_p2)   ;;  %vm700_vm0 = vcmask (!%p520_p2), 261120   ;;  %s3934_s22 = smov (!%p520_p2), 32   ;;  %v4998_v25 = vmov (!%p520_p2), 0.0  }
   0x8   : > { %523 = sbr.rel (%p520_p2) target bundleno = 2158 (0x86e), region = 84  ;;  %p598_p3 = scmp.lt.s32.totalorder (!%p520_p2), %s3420_s28, 15  ;;  %3615 = vmatprep.subr.bf16.mxu0 (!%p520_p2), %v3833_v0  ;;  %v4057_v4 = vld [vmem:[%s4994_s15] sm:$0xff] (!%p520_p2)  ;;  %v3845_v19 = vld [vmem:[%s4985_s6 + $0x8] sm:$0xff] (!%p520_p2)   ;;  %v3937_v51 = vmov (!%p520_p2), 1966171168  }
   0x9   : > { %v4050_v3 = vshrl.u32 (!%p520_p2), %v822_v1, 7  ;;  %3616 = vmatpush3.bf16.msra.mxu0 (!%p520_p2), %v3833_v0  ;;  %v3844_v15 = vld [vmem:[%s4985_s6] sm:$0xff] (!%p520_p2)   ;;  %s3935_s0 = smov (!%p520_p2), 96   ;;  %p589_p4 = scmp.lt.s32.totalorder (!%p520_p2), %s4038_s25, 1  ;;  %v869_v52 = vunpack.c.l.s4 (!%p520_p2), %v3937_v51 }
   0xa   : > { %3617 = vmatprep.subr.bf16.mxu0 (!%p520_p2), %v3834_v2  ;;  %3635 = vmatprep.subr.bf16.mxu1 (!%p520_p2), %v3844_v15  ;;  %s5006_s20 = sld [smem:[#allocation2_spill]] (!%p520_p2)  ;;  %s5007_s26 = sld [smem:[#allocation3_spill]] (!%p520_p2) }
   0xb   : > { %v5000_v5 = vsub.s32 (!%p520_p2), 2, %v4050_v3  ;;  %3636 = vmatpush3.bf16.msra.mxu1 (!%p520_p2), %v3844_v15  ;;  %v870_v53 = vunpack.c.0.s8 (!%p520_p2), %v869_v52  ;;  %v5001_v58 = vsub.s32 (!%p520_p2), 1, %v4050_v3  ;;  %v4181_v60 = vsub.s32 (!%p520_p2), 0, %v4050_v3 }
   0xc   : > { %3637 = vmatprep.subr.bf16.mxu1 (!%p520_p2), %v3845_v19 }
   0xd   : > { %v845_v6 = vrot.slane (!%p520_p2), %v4057_v4, %v5000_v5  ;;  %3618 = vmatpush3.bf16.msra.mxu0 (!%p520_p2), %v3834_v2  ;;  %v873_v54 = vsub.s32 (!%p520_p2), %v870_v53, %v4050_v3  ;;  %v4186_v62 = vrot.slane (!%p520_p2), %v4057_v4, %v5001_v58 }
   0xe   : > { %3667 = vmatprep.subr.bf16.mxu0 (!%p520_p2), %v4998_v25 }
   0xf   : > { %s5013_s28 = smov (!%p598_p3, %s3420_s28), 15  ;;  %847 = vrot.lane.b32.xlu0 %v845_v6, %s3934_s22  ;;  %3638 = vmatpush3.bf16.msra.mxu1 %v3845_v19  ;;  %s5015_s25 = smov (!%p589_p4, %s4038_s25), 1 }
  0x10   : > { %s3522_s19 = sshll.u32 %s5013_s28, 3  ;;  %s4172_s30 = sshll.u32 %s5015_s25, 3  ;;  %v623_v0 = vld [vmem:[%s5007_s26] sm:$0xff] }
  0x11   : > { %s4066_s21 = scalar_lea.vmem %s4983_s4, %s3522_s19  ;;  %s592_s22 = scalar_lea.vmem %s5006_s20, %s4172_s30 }
  0x12   : > { %v628_v7 = vld [vmem:[%s4066_s21] sm:$0xff]   ;;  %v630_v8 = vld [vmem:[%s4066_s21 + $0x8] sm:$0xff]   ;;  %v632_v9 = vld [vmem:[%s4066_s21 + $0x10] sm:$0xff]   ;;  %s607_s27 = scalar_lea.vmem %s4988_s9, %s4172_s30  ;;  %s4821_s23 = scalar_lea.vmem %s4996_s17, %s3522_s19 }
  0x13   : > { %3619 = vmatprep.mubr.msk.bf16.mxu0 %vm700_vm0, %v628_v7  ;;  %v634_v10 = vld [vmem:[%s4066_s21 + $0x18] sm:$0xff]   ;;  %v4079_v11 = vld [vmem:[%s4066_s21 + $0x20] sm:$0xff]   ;;  %v4085_v12 = vld [vmem:[%s4066_s21 + $0x28] sm:$0xff]   ;;  %s596_s25 = scalar_lea.vmem %s4982_s3, %s4172_s30  ;;  %s611_s1 = scalar_lea.vmem %s4995_s16, %s4172_s30 }
  0x14   : > { %3620 = vmatmul.mubr.msk.bf16.vlgmr.msra.gmra.mrb[0].mxu0 %vm700_vm0, %v630_v8  ;;  %v4088_v13 = vld [vmem:[%s4066_s21 + $0x30] sm:$0xff]   ;;  %v4095_v14 = vld [vmem:[%s4066_s21 + $0x38] sm:$0xff]   ;;  %v622_v55 = vld [vmem:[%s592_s22] sm:$0xff] }
  0x15   : > { %3623 = vmatprep.mubr.msk.bf16.mxu0 %vm700_vm0, %v632_v9  ;;  %v874_v56 = vrot.slane %v622_v55, %v873_v54  ;;  %v624_v7 = vld [vmem:[%s5007_s26 + $0x8] sm:$0xff] }
  0x17   : > { %v882_v57 = vcombine.high %v874_v56, %v874_v56  ;;  %v890_v61 = vrot.slane %v874_v56, %v873_v54 }
  0x19   : > { %v904_v59 = vrot.slane %v882_v57, %v873_v54  ;;  %v919_v2 = vrot.slane %v890_v61, %v4181_v60  ;;  %v912_v6 = vcombine.high %v890_v61, %v890_v61 }
  0x1b   : > { %v923_v63 = vrot.slane %v904_v59, %v4181_v60  ;;  %v956_v15 = vadd.f32 %v919_v2, %v623_v0  ;;  %v957_v19 = vadd.f32 %v919_v2, %v624_v7 }
  0x1c   : > { %3624 = vmatmul.mubr.msk.bf16.gmra.mrb[4].mxu0 %vm700_vm0, %v634_v10  ;;  %v867_v10 = vcombine.high %v622_v55, %v622_v55 }
  0x1d   : > { %3627 = vmatprep.mubr.msk.bf16.mxu0 %vm700_vm0, %v4079_v11  ;;  %v958_v9 = vadd.f32 %v923_v63, %v623_v0 }
  0x24   : > { %3628 = vmatmul.mubr.msk.bf16.gmra.mrb[8].mxu0 %vm700_vm0, %v4085_v12 }
  0x25   : > { %3631 = vmatprep.mubr.msk.bf16.mxu0 %vm700_vm0, %v4088_v13 }
  0x2c   : > { %3632 = vmatmul.mubr.msk.bf16.gmra.mrb[12].mxu0 %vm700_vm0, %v4095_v14 }
  0x81   : > { %v848_v16 = vpop.permute.xlu0 %847 }
  0xe7   : > { %v4102_v17 = vpop.f32.mrb[0].mxu0 }
  0xe8   : > { %v4104_v18 = vpop.f32.mrb[1].mxu0  ;;  %v852_v26 = vadd.f32 %v4102_v17, %v848_v16  ;;  %v828_v8 = vadd.f32 %v4102_v17, %v4186_v62 }
  0xe9   : > { %v850_v20 = vadd.f32 %v848_v16, %v4104_v18  ;;  %v4110_v21 = vpop.f32.mrb[2].mxu0  ;;  %v826_v4 = vadd.f32 %v4186_v62, %v4104_v18 }
  0xea   : > { %v4112_v22 = vpop.f32.mrb[3].mxu0  ;;  %v853_v24 = vadd.f32 %v4110_v21, %v848_v16 }
  0xeb   : > { %1180 = vrot.lane.b32.xlu0 %v850_v20, %s3935_s0  ;;  %v851_v23 = vadd.f32 %v848_v16, %v4112_v22  ;;  %v927_v20 = vrot.slane %v912_v6, %v4181_v60  ;;  %v4207_v17 = vmul.f32 %v956_v15, %v826_v4 }
  0xed   : > { %1182 = vrot.lane.b32.xlu1 %v851_v23, %s3935_s0  ;;  %v829_v23 = vadd.f32 %v4110_v21, %v4186_v62  ;;  %vm1116_vm14 = vcmp.ge.f32.partialorder %v4207_v17, 0.0 }
  0xef   : > { %1186 = vrot.lane.b32.xlu0 %v853_v24, %s3935_s0  ;;  %v4121_v27 = vpop.f32.mrb[4].mxu0  ;;  %v959_v24 = vadd.f32 %v923_v63, %v624_v7 }
  0xf0   : > { %v4123_v28 = vpop.f32.mrb[5].mxu0  ;;  %v856_v33 = vadd.f32 %v4121_v27, %v848_v16  ;;  %v832_v57 = vadd.f32 %v4121_v27, %v4186_v62 }
  0xf1   : > { %1184 = vrot.lane.b32.xlu1 %v852_v26, %s3935_s0  ;;  %v4126_v29 = vpop.f32.mrb[6].mxu0  ;;  %v854_v31 = vadd.f32 %v848_v16, %v4123_v28  ;;  %v4205_v26 = vmul.f32 %v958_v9, %v828_v8  ;;  %v830_v18 = vadd.f32 %v4186_v62, %v4123_v28 }
  0xf2   : > { %v4128_v30 = vpop.f32.mrb[7].mxu0  ;;  %v857_v34 = vadd.f32 %v4126_v29, %v848_v16  ;;  %v833_v6 = vadd.f32 %v4126_v29, %v4186_v62 }
  0xf3   : > { %v855_v32 = vadd.f32 %v848_v16, %v4128_v30  ;;  %v4218_v21 = vand.u32 2147483647, %v4205_v26  ;;  %vm1118_vm11 = vcmp.ge.f32.partialorder %v4205_v26, 0.0 }
  0xf5   : > { %1188 = vrot.lane.b32.xlu1 %v854_v31, %s3935_s0  ;;  %1190 = vrot.lane.b32.xlu0 %v855_v32, %s3935_s0  ;;  %v881_v31 = vrot.slane %v867_v10, %v873_v54  ;;  %3857 = vrsqrt.f32 %v4218_v21  ;;  %vm1020_vm2 = vcmp.eq.f32.partialorder %v4218_v21, inf  ;;  %vm1022_vm8 = vcmp.eq.f32.partialorder %v4218_v21, 0.0 }
  0xf7   : > { %v4136_v35 = vpop.f32.mrb[8].mxu0 }
  0xf8   : > { %v4138_v36 = vpop.f32.mrb[9].mxu0  ;;  %v860_v41 = vadd.f32 %v4136_v35, %v848_v16 }
  0xf9   : > { %1192 = vrot.lane.b32.xlu1 %v856_v33, %s3935_s0  ;;  %1194 = vrot.lane.b32.xlu0 %v857_v34, %s3935_s0  ;;  %v4142_v37 = vpop.f32.mrb[10].mxu0  ;;  %v858_v39 = vadd.f32 %v848_v16, %v4138_v36  ;;  %v960_v33 = vadd.f32 %v927_v20, %v623_v0  ;;  %v4213_v34 = vmul.f32 %v959_v24, %v829_v23 }
  0xfa   : > { %v4144_v38 = vpop.f32.mrb[11].mxu0  ;;  %v861_v42 = vadd.f32 %v4142_v37, %v848_v16 }
  0xfb   : > { %v859_v40 = vadd.f32 %v848_v16, %v4144_v38  ;;  %v4229_v28 = vand.u32 2147483647, %v4213_v34  ;;  %v835_v29 = vadd.f32 %v4186_v62, %v4144_v38  ;;  %v836_v38 = vadd.f32 %v4136_v35, %v4186_v62 }
  0xfd   : > { %1196 = vrot.lane.b32.xlu1 %v858_v39, %s3935_s0  ;;  %1198 = vrot.lane.b32.xlu0 %v859_v40, %s3935_s0  ;;  %v961_v39 = vadd.f32 %v927_v20, %v624_v7  ;;  %v883_v40 = vcombine.high %v881_v31, %v881_v31  ;;  %vm1027_vm6 = vcmp.eq.f32.partialorder %v4229_v28, inf  ;;  %vm1029_vm7 = vcmp.eq.f32.partialorder %v4229_v28, 0.0 }
  0xff   : > { %v4152_v43 = vpop.f32.mrb[12].mxu0 }
 0x100   : > { %v4154_v44 = vpop.f32.mrb[13].mxu0  ;;  %v864_v49 = vadd.f32 %v4152_v43, %v848_v16 }
 0x101   : > { %1200 = vrot.lane.b32.xlu1 %v860_v41, %s3935_s0  ;;  %1202 = vrot.lane.b32.xlu0 %v861_v42, %s3935_s0  ;;  %v4158_v45 = vpop.f32.mrb[14].mxu0  ;;  %v862_v47 = vadd.f32 %v848_v16, %v4154_v44  ;;  %v4221_v41 = vand.u32 2147483647, %v4207_v17  ;;  %v914_v42 = vcombine.high %v904_v59, %v904_v59 }
 0x102   : > { %v4160_v46 = vpop.f32.mrb[15].mxu0  ;;  %v865_v50 = vadd.f32 %v4158_v45, %v848_v16 }
 0x103   : > { %v863_v48 = vadd.f32 %v848_v16, %v4160_v46  ;;  %v827_v16 = vadd.f32 %v4186_v62, %v4112_v22  ;;  %v831_v22 = vadd.f32 %v4186_v62, %v4128_v30  ;;  %v911_v30 = vrot.slane %v883_v40, %v873_v54 }
 0x104   : > { %v931_v51 = vrot.slane %v914_v42, %v4181_v60  ;;  %3859 = vrsqrt.f32 %v4221_v41  ;;  %vm1006_vm1 = vcmp.eq.f32.partialorder %v4221_v41, inf  ;;  %vm1008_vm3 = vcmp.eq.f32.partialorder %v4221_v41, 0.0 }
 0x105   : > { %1204 = vrot.lane.b32.xlu1 %v862_v47, %s3935_s0  ;;  %1206 = vrot.lane.b32.xlu0 %v863_v48, %s3935_s0  ;;  %v4209_v32 = vmul.f32 %v957_v19, %v827_v16  ;;  %v4226_v48 = vmul.f32 %v960_v33, %v830_v18  ;;  %v915_v53 = vcombine.high %v911_v30, %v911_v30  ;;  %v3858_v16 = vpop.eup %3857 }
 0x106   : > { %v962_v59 = vadd.f32 %v931_v51, %v623_v0  ;;  %v963_v8 = vadd.f32 %v931_v51, %v624_v7  ;;  %v834_v19 = vadd.f32 %v4186_v62, %v4138_v36  ;;  %v1009_v36 = vand.u32 2147483648, %v4221_v41 }
 0x107   : > { %v4224_v47 = vand.u32 2147483647, %v4209_v32  ;;  %v4237_v52 = vand.u32 2147483647, %v4226_v48  ;;  %v947_v63 = vrot.slane %v915_v53, %v4181_v60  ;;  %v837_v42 = vadd.f32 %v4142_v37, %v4186_v62 }
 0x108   : > { %v4254_v10 = vmul.f32 %v962_v59, %v832_v57  ;;  %v1030_v37 = vand.u32 2147483648, %v4229_v28  ;;  %vm1117_vm15 = vcmp.ge.f32.partialorder %v4209_v32, 0.0 }
 0x109   : > { %1208 = vrot.lane.b32.xlu1 %v864_v49, %s3935_s0  ;;  %1210 = vrot.lane.b32.xlu0 %v865_v50, %s3935_s0  ;;  %v4231_v49 = vmul.f32 %v961_v39, %v831_v22  ;;  %v897_v50 = vrot.slane %v881_v31, %v873_v54  ;;  %3861 = vrsqrt.f32 %v4224_v47  ;;  %v939_v54 = vrot.slane %v911_v30, %v4181_v60 }
 0x10a   : > { %3863 = vrsqrt.f32 %v4229_v28  ;;  %v4258_v20 = vadd.f32 %v947_v63, %v623_v0  ;;  %v4260_v24 = vadd.f32 %v947_v63, %v624_v7  ;;  %v4266_v22 = vmul.f32 %v963_v8, %v833_v6 }
 0x10b   : > { %v913_v55 = vcombine.high %v897_v50, %v897_v50  ;;  %v4241_v56 = vand.u32 2147483647, %v4231_v49  ;;  %v935_v61 = vrot.slane %v897_v50, %v4181_v60  ;;  %3865 = vrsqrt.f32 %v4237_v52 }
 0x10c   : > { %v966_v9 = vadd.f32 %v939_v54, %v623_v0  ;;  %v967_v27 = vadd.f32 %v939_v54, %v624_v7  ;;  %vm1013_vm4 = vcmp.eq.f32.partialorder %v4224_v47, inf  ;;  %v4272_v39 = vand.u32 2147483647, %v4254_v10 }
 0x10d   : > { %v943_v2 = vrot.slane %v913_v55, %v4181_v60  ;;  %3867 = vrsqrt.f32 %v4241_v56  ;;  %v964_v4 = vadd.f32 %v935_v61, %v623_v0  ;;  %v965_v15 = vadd.f32 %v935_v61, %v624_v7 }
 0x10e   : > { %v3860_v31 = vpop.eup %3859  ;;  %vm1015_vm5 = vcmp.eq.f32.partialorder %v4224_v47, 0.0  ;;  %v1019_v50 = vmul.f32 %v3858_v16, %v4218_v21  ;;  %v4290_v55 = vand.u32 2147483647, %v4266_v22  ;;  %v4295_v59 = vmul.f32 %v966_v9, %v836_v38 }
 0x10f   : > { %v968_v23 = vadd.f32 %v943_v2, %v623_v0  ;;  %v969_v18 = vadd.f32 %v943_v2, %v624_v7  ;;  %v1016_v7 = vand.u32 2147483648, %v4224_v47  ;;  %v4278_v40 = vmul.f32 %v964_v4, %v834_v19 }
 0x110   : > { %v1005_v30 = vmul.f32 %v3860_v31, %v4221_v41  ;;  %v4284_v51 = vmul.f32 %v965_v15, %v835_v29  ;;  %v1023_v61 = vand.u32 2147483648, %v4218_v21  ;;  %vm1034_vm9 = vcmp.eq.f32.partialorder %v4237_v52, inf }
 0x111   : > { %v1037_v63 = vand.u32 2147483648, %v4237_v52  ;;  %v4301_v2 = vand.u32 2147483647, %v4278_v40  ;;  %v4303_v6 = vmul.f32 %v967_v27, %v837_v42  ;;  %v1021_v9 = vsel %vm1020_vm2, %v4218_v21, %v1019_v50 }
 0x112   : > { %v1007_v8 = vsel %vm1006_vm1, %v4221_v41, %v1005_v30  ;;  %vm1036_vm10 = vcmp.eq.f32.partialorder %v4237_v52, 0.0  ;;  %v4313_v4 = vand.u32 2147483647, %v4284_v51  ;;  %v838_v15 = vadd.f32 %v4186_v62, %v4154_v44 }
 0x113   : > { %v3862_v33 = vpop.eup %3861  ;;  %3869 = vrsqrt.f32 %v4272_v39  ;;  %v4328_v29 = vand.u32 2147483647, %v4295_v59  ;;  %v839_v44 = vadd.f32 %v4186_v62, %v4160_v46  ;;  %v4337_v38 = vand.u32 2147483647, %v4303_v6 }
 0x114   : > { %v3864_v0 = vpop.eup %3863  ;;  %v1012_v53 = vmul.f32 %v3862_v33, %v4224_v47  ;;  %3871 = vrsqrt.f32 %v4290_v55  ;;  %v1010_v33 = vsel %vm1008_vm3, %v1009_v36, %v1007_v8  ;;  %v840_v42 = vadd.f32 %v4152_v43, %v4186_v62 }
 0x115   : > { %v3866_v35 = vpop.eup %3865  ;;  %v1026_v54 = vmul.f32 %v3864_v0, %v4229_v28  ;;  %v1024_v0 = vsel %vm1022_vm8, %v1023_v61, %v1021_v9  ;;  %v841_v30 = vadd.f32 %v4158_v45, %v4186_v62  ;;  %v4346_v46 = vmul.f32 %v968_v23, %v838_v15 }
 0x116   : > { %v1014_v27 = vsel %vm1013_vm4, %v4224_v47, %v1012_v53  ;;  %v1033_v19 = vmul.f32 %v3866_v35, %v4237_v52  ;;  %vm1041_vm12 = vcmp.eq.f32.partialorder %v4241_v56, inf  ;;  %3873 = vrsqrt.f32 %v4301_v2 }
 0x117   : > { %v3868_v57 = vpop.eup %3867  ;;  %v1028_v16 = vsel %vm1027_vm6, %v4229_v28, %v1026_v54  ;;  %v1017_v50 = vsel %vm1015_vm5, %v1016_v7, %v1014_v27  ;;  %v1132_v41 = vsub.f32 0.0, %v1010_v33  ;;  %3875 = vrsqrt.f32 %v4313_v4 }
 0x118   : > { %v1040_v31 = vmul.f32 %v3868_v57, %v4241_v56  ;;  %v1031_v21 = vsel %vm1029_vm7, %v1030_v37, %v1028_v16  ;;  %v1035_v43 = vsel %vm1034_vm9, %v4237_v52, %v1033_v19  ;;  %v4357_v62 = vmul.f32 %v969_v18, %v839_v44 }
 0x119   : > { %v1133_v47 = vsub.f32 0.0, %v1017_v50  ;;  %v1134_v23 = vsub.f32 0.0, %v1024_v0  ;;  %v1044_v28 = vand.u32 2147483648, %v4241_v56  ;;  %v4361_v36 = vmul.f32 %v4258_v20, %v840_v42 }
 0x11a   : > { %v1042_v45 = vsel %vm1041_vm12, %v4241_v56, %v1040_v31  ;;  %v4364_v7 = vmul.f32 %v4260_v24, %v841_v30  ;;  %v1135_v53 = vsub.f32 0.0, %v1031_v21  ;;  %vm1043_vm13 = vcmp.eq.f32.partialorder %v4241_v56, 0.0 }
 0x11b   : > { %v4368_v35 = vand.u32 2147483647, %v4346_v46  ;;  %v1038_v18 = vsel %vm1036_vm10, %v1037_v63, %v1035_v43  ;;  %v1045_v54 = vsel %vm1043_vm13, %v1044_v28, %v1042_v45  ;;  %3877 = vrsqrt.f32 %v4328_v29 }
 0x11c   : > { %vm1119_vm1 = vcmp.ge.f32.partialorder %v4213_v34, 0.0  ;;  %3879 = vrsqrt.f32 %v4337_v38  ;;  %v4378_v56 = vand.u32 2147483647, %v4357_v62  ;;  %v1148_v24 = vsel %vm1116_vm14, %v1010_v33, %v1132_v41 }
 0x11d   : > { %v3870_v20 = vpop.eup %3869  ;;  %vm1120_vm2 = vcmp.ge.f32.partialorder %v4226_v48, 0.0  ;;  %vm1121_vm3 = vcmp.ge.f32.partialorder %v4231_v49, 0.0  ;;  %v4383_v37 = vand.u32 2147483647, %v4361_v36  ;;  %v1149_v17 = vsel %vm1117_vm15, %v1017_v50, %v1133_v47 }
 0x11e   : > { %v3872_v52 = vpop.eup %3871  ;;  %v1136_v57 = vsub.f32 0.0, %v1038_v18  ;;  %v1137_v32 = vsub.f32 0.0, %v1045_v54  ;;  %v4386_v34 = vand.u32 2147483647, %v4364_v7  ;;  %v1151_v61 = vsel %vm1119_vm1, %v1031_v21, %v1135_v53 }
 0x11f   : > { %v1150_v63 = vsel %vm1118_vm11, %v1024_v0, %v1134_v23  ;;  %3881 = vrsqrt.f32 %v4368_v35  ;;  %v1047_v8 = vmul.f32 %v3870_v20, %v4272_v39  ;;  %vm1048_vm4 = vcmp.eq.f32.partialorder %v4272_v39, inf }
 0x120   : > { %vm1050_vm5 = vcmp.eq.f32.partialorder %v4272_v39, 0.0  ;;  %v1051_v9 = vand.u32 2147483648, %v4272_v39  ;;  %v3874_v15 = vpop.eup %3873  ;;  %v1054_v27 = vmul.f32 %v3872_v52, %v4290_v55  ;;  %vm1055_vm6 = vcmp.eq.f32.partialorder %v4290_v55, inf }
 0x121   : > { %vm1057_vm7 = vcmp.eq.f32.partialorder %v4290_v55, 0.0  ;;  %3883 = vrsqrt.f32 %v4378_v56  ;;  %v3876_v26 = vpop.eup %3875  ;;  %v1152_v19 = vsel %vm1120_vm2, %v1038_v18, %v1136_v57  ;;  %v1153_v31 = vsel %vm1121_vm3, %v1045_v54, %v1137_v32 }
 0x122   : > { %v1058_v44 = vand.u32 2147483648, %v4290_v55  ;;  %vm1062_vm8 = vcmp.eq.f32.partialorder %v4301_v2, inf  ;;  %vm1064_vm9 = vcmp.eq.f32.partialorder %v4301_v2, 0.0  ;;  %v1065_v0 = vand.u32 2147483648, %v4301_v2 }
 0x123   : > { %3885 = vrsqrt.f32 %v4383_v37  ;;  %v1049_v48 = vsel %vm1048_vm4, %v4272_v39, %v1047_v8  ;;  %v1061_v30 = vmul.f32 %v3874_v15, %v4301_v2  ;;  %vm1069_vm10 = vcmp.eq.f32.partialorder %v4313_v4, inf }
 0x124   : > { %vm1071_vm11 = vcmp.eq.f32.partialorder %v4313_v4, 0.0  ;;  %vm1122_vm12 = vcmp.ge.f32.partialorder %v4254_v10, 0.0  ;;  %v1056_v21 = vsel %vm1055_vm6, %v4290_v55, %v1054_v27  ;;  %v1068_v41 = vmul.f32 %v3876_v26, %v4313_v4 }
 0x125   : > { %v3878_v49 = vpop.eup %3877  ;;  %3887 = vrsqrt.f32 %v4386_v34  ;;  %vm1123_vm13 = vcmp.ge.f32.partialorder %v4266_v22, 0.0  ;;  %v1072_v47 = vand.u32 2147483648, %v4313_v4  ;;  %vm1076_vm14 = vcmp.eq.f32.partialorder %v4328_v29, inf }
 0x126   : > { %v3880_v43 = vpop.eup %3879  ;;  %v1079_v23 = vand.u32 2147483648, %v4328_v29  ;;  %vm1083_vm15 = vcmp.eq.f32.partialorder %v4337_v38, inf  ;;  %v1052_v54 = vsel %vm1050_vm5, %v1051_v9, %v1049_v48  ;;  %vm1078_vm1 = vcmp.eq.f32.partialorder %v4328_v29, 0.0 }
 0x127   : > { %v1063_v52 = vsel %vm1062_vm8, %v4301_v2, %v1061_v30  ;;  %vm1085_vm2 = vcmp.eq.f32.partialorder %v4337_v38, 0.0  ;;  %v1070_v39 = vsel %vm1069_vm10, %v4313_v4, %v1068_v41  ;;  %v1082_v8 = vmul.f32 %v3880_v43, %v4337_v38 }
 0x128   : > { %v1138_v55 = vsub.f32 0.0, %v1052_v54  ;;  %vm1124_vm3 = vcmp.ge.f32.partialorder %v4278_v40, 0.0  ;;  %v1086_v9 = vand.u32 2147483648, %v4337_v38  ;;  %vm1090_vm4 = vcmp.eq.f32.partialorder %v4368_v35, inf }
 0x129   : > { %v3882_v57 = vpop.eup %3881  ;;  %v1093_v15 = vand.u32 2147483648, %v4368_v35  ;;  %vm1125_vm5 = vcmp.ge.f32.partialorder %v4284_v51, 0.0  ;;  %vm1092_vm6 = vcmp.eq.f32.partialorder %v4368_v35, 0.0  ;;  %v1073_v48 = vsel %vm1071_vm11, %v1072_v47, %v1070_v39 }
 0x12a   : > { %v1154_v2 = vsel %vm1122_vm12, %v1052_v54, %v1138_v55  ;;  %vm1126_vm8 = vcmp.ge.f32.partialorder %v4295_v59, 0.0  ;;  %vm1127_vm10 = vcmp.ge.f32.partialorder %v4303_v6, 0.0  ;;  %v1141_v54 = vsub.f32 0.0, %v1073_v48 }
 0x12b   : > { %v3884_v27 = vpop.eup %3883  ;;  %vm1104_vm11 = vcmp.eq.f32.partialorder %v4383_v37, inf  ;;  %vm1111_vm12 = vcmp.eq.f32.partialorder %v4386_v34, inf }
 0x12c   : > { %v1096_v4 = vmul.f32 %v3884_v27, %v4378_v56 }
 0x15d   : > { %v1181_v16 = vpop.permute.xlu0 %1180 }
 0x15e   : > { %v1228_v33 = vadd.f32 %v1181_v16, %v1148_v24  ;;  %v1059_v24 = vsel %vm1057_vm7, %v1058_v44, %v1056_v21  ;;  %vm1097_vm7 = vcmp.eq.f32.partialorder %v4378_v56, inf }
 0x15f   : > { %v1183_v42 = vpop.permute.xlu1 %1182 }
 0x160   : > { %v1229_v50 = vadd.f32 %v1183_v42, %v1149_v17  ;;  %v1244_v28 = vmax.f32 %v1228_v33, 0.0  ;;  %v1075_v17 = vmul.f32 %v3878_v49, %v4328_v29  ;;  %v1066_v42 = vsel %vm1064_vm9, %v1065_v0, %v1063_v52 }
 0x161   : > { %v1187_v45 = vpop.permute.xlu0 %1186  ;;  %v1089_v49 = vmul.f32 %v3882_v57, %v4368_v35  ;;  %vm1099_vm9 = vcmp.eq.f32.partialorder %v4378_v56, 0.0  ;;  %v1100_v0 = vand.u32 2147483648, %v4378_v56 }
 0x162   : > { %v1245_v53 = vmax.f32 %v1229_v50, 0.0  ;;  %v1231_v18 = vadd.f32 %v1187_v45, %v1151_v61  ;;  %v1077_v30 = vsel %vm1076_vm14, %v4328_v29, %v1075_v17  ;;  %v3886_v50 = vpop.eup %3885  ;;  %v1084_v45 = vsel %vm1083_vm15, %v4337_v38, %v1082_v8 }
 0x163   : > { %v1185_v20 = vpop.permute.xlu1 %1184  ;;  %v3888_v47 = vpop.eup %3887  ;;  %v1087_v52 = vsel %vm1085_vm2, %v1086_v9, %v1084_v45  ;;  %v1103_v17 = vmul.f32 %v3886_v50, %v4383_v37  ;;  %v1098_v29 = vsel %vm1097_vm7, %v4378_v56, %v1096_v4  ;;  %vm1113_vm14 = vcmp.eq.f32.partialorder %v4386_v34, 0.0 }
 0x164   : > { %v4435_v32 = vpack.c.bf16 %v1245_v53, %v1244_v28  ;;  %v1230_v61 = vadd.f32 %v1185_v20, %v1150_v63  ;;  %v1247_v26 = vmax.f32 %v1231_v18, 0.0  ;;  %v1139_v63 = vsub.f32 0.0, %v1059_v24 }
 0x165   : > { %v1080_v20 = vsel %vm1078_vm1, %v1079_v23, %v1077_v30  ;;  %v1110_v38 = vmul.f32 %v3888_v47, %v4386_v34  ;;  %v1101_v40 = vsel %vm1099_vm9, %v1100_v0, %v1098_v29  ;;  %v1114_v56 = vand.u32 2147483648, %v4386_v34 }
 0x166   : > { %v1246_v16 = vmax.f32 %v1230_v61, 0.0  ;;  %3639 = vmatprep.mubr.msk.bf16.mxu1 %vm700_vm0, %v4435_v32  ;;  %v1155_v10 = vsel %vm1123_vm13, %v1059_v24, %v1139_v63  ;;  %v1091_v61 = vsel %vm1090_vm4, %v4368_v35, %v1089_v49  ;;  %v1142_v55 = vsub.f32 0.0, %v1080_v20 }
 0x167   : > { %v1189_v44 = vpop.permute.xlu1 %1188  ;;  %v1191_v33 = vpop.permute.xlu0 %1190  ;;  %v1094_v63 = vsel %vm1092_vm6, %v1093_v15, %v1091_v61  ;;  %vm1106_vm13 = vcmp.eq.f32.partialorder %v4383_v37, 0.0  ;;  %v1112_v51 = vsel %vm1111_vm12, %v4386_v34, %v1110_v38  ;;  %v1145_v45 = vsub.f32 0.0, %v1101_v40 }
 0x168   : > { %v4458_v21 = vpack.c.bf16 %v1247_v26, %v1246_v16  ;;  %v1232_v41 = vadd.f32 %v1189_v44, %v1152_v19  ;;  %v1233_v43 = vadd.f32 %v1191_v33, %v1153_v31  ;;  %v1140_v19 = vsub.f32 0.0, %v1066_v42 }
 0x169   : > { %v1157_v26 = vsel %vm1125_vm5, %v1073_v48, %v1141_v54  ;;  %v1143_v16 = vsub.f32 0.0, %v1087_v52  ;;  %v1105_v44 = vsel %vm1104_vm11, %v4383_v37, %v1103_v17  ;;  %v1158_v48 = vsel %vm1126_vm8, %v1080_v20, %v1142_v55 }
 0x16a   : > { %v1248_v28 = vmax.f32 %v1232_v41, 0.0  ;;  %v1249_v53 = vmax.f32 %v1233_v43, 0.0  ;;  %3640 = vmatmul.mubr.msk.bf16.vlgmr.msra.gmra.mrb[0].mxu1 %vm700_vm0, %v4458_v21  ;;  %3668 = vmatpush3.bf16.msra.mxu0 %v4458_v21  ;;  %v1156_v8 = vsel %vm1124_vm3, %v1066_v42, %v1140_v19  ;;  %v1107_v42 = vand.u32 2147483648, %v4383_v37 }
 0x16b   : > { %v1193_v31 = vpop.permute.xlu1 %1192  ;;  %v1195_v18 = vpop.permute.xlu0 %1194  ;;  %3679 = vmatprep.subr.bf16.mxu0 %v4998_v25  ;;  %v1159_v37 = vsel %vm1127_vm10, %v1087_v52, %v1143_v16  ;;  %v1144_v43 = vsub.f32 0.0, %v1094_v63  ;;  %vm1128_vm15 = vcmp.ge.f32.partialorder %v4346_v46, 0.0  ;;  %vm1129_vm1 = vcmp.ge.f32.partialorder %v4357_v62, 0.0 }
 0x16c   : > { %v4481_v57 = vpack.c.bf16 %v1249_v53, %v1248_v28  ;;  %v1234_v22 = vadd.f32 %v1193_v31, %v1154_v2  ;;  %v1235_v24 = vadd.f32 %v1195_v18, %v1155_v10  ;;  %v1108_v2 = vsel %vm1106_vm13, %v1107_v42, %v1105_v44 }
 0x16d   : > { %v1115_v28 = vsel %vm1113_vm14, %v1114_v56, %v1112_v51  ;;  %v1160_v6 = vsel %vm1128_vm15, %v1094_v63, %v1144_v43  ;;  %v1161_v19 = vsel %vm1129_vm1, %v1101_v40, %v1145_v45  ;;  %v1146_v31 = vsub.f32 0.0, %v1108_v2 }
 0x16e   : > { %v1250_v23 = vmax.f32 %v1234_v22, 0.0  ;;  %v1251_v39 = vmax.f32 %v1235_v24, 0.0  ;;  %3643 = vmatprep.mubr.msk.bf16.mxu1 %vm700_vm0, %v4481_v57  ;;  %v1147_v18 = vsub.f32 0.0, %v1115_v28  ;;  %vm1130_vm2 = vcmp.ge.f32.partialorder %v4361_v36, 0.0 }
 0x16f   : > { %v1197_v9 = vpop.permute.xlu1 %1196  ;;  %v1199_v27 = vpop.permute.xlu0 %1198  ;;  %vm1131_vm3 = vcmp.ge.f32.partialorder %v4364_v7, 0.0  ;;  %v1162_v62 = vsel %vm1130_vm2, %v1108_v2, %v1146_v31  ;;  %vm1693_vm4 = vcmask 125952   ;;  %vm3938_vm5 = vmmov 0  }
 0x170   : > { %v4501_v33 = vpack.c.bf16 %v1251_v39, %v1250_v23  ;;  %v1236_v30 = vadd.f32 %v1197_v9, %v1156_v8  ;;  %v1237_v49 = vadd.f32 %v1199_v27, %v1157_v26  ;;  %v1163_v61 = vsel %vm1131_vm3, %v1115_v28, %v1147_v18  ;;  %3669 = vmatprep.mubr.msk.bf16.mxu0 %vm3938_vm5, %v4998_v25 }
 0x171   : > { %vm1831_vm6 = vcmask 130048   ;;  %vm2439_vm7 = vcmask 1043456   ;;  %vm2422_vm8 = vcmask 1041409   ;;  %vm2424_vm9 = vcmask 1042434  }
 0x172   : > { %v1252_v35 = vmax.f32 %v1236_v30, 0.0  ;;  %v1253_v15 = vmax.f32 %v1237_v49, 0.0  ;;  %3644 = vmatmul.mubr.msk.bf16.gmra.mrb[4].mxu1 %vm700_vm0, %v4501_v33  ;;  %vm2426_vm10 = vcmask 1043459   ;;  %vm2428_vm11 = vcmask 1044484  }
 0x173   : > { %v1201_v50 = vpop.permute.xlu1 %1200  ;;  %v1203_v41 = vpop.permute.xlu0 %1202  ;;  %vm2430_vm12 = vcmask 1045509   ;;  %vm2432_vm13 = vcmask 1046534   ;;  %vm2434_vm14 = vcmask 1047559   ;;  %vm2436_vm15 = vcmask 31744  }
 0x174   : > { %v4518_v4 = vpack.c.bf16 %v1253_v15, %v1252_v35  ;;  %v1238_v0 = vadd.f32 %v1201_v50, %v1158_v48  ;;  %v1239_v47 = vadd.f32 %v1203_v41, %v1159_v37  ;;  %vm2251_vm1 = vcmask 257024  }
 0x175   : > { %vm3122_vm2 = vcmask 523264  }
 0x176   : > { %v1254_v53 = vmax.f32 %v1238_v0, 0.0  ;;  %v1255_v10 = vmax.f32 %v1239_v47, 0.0  ;;  %3647 = vmatprep.mubr.msk.bf16.mxu1 %vm700_vm0, %v4518_v4 }
 0x177   : > { %v1205_v59 = vpop.permute.xlu1 %1204  ;;  %v1207_v34 = vpop.permute.xlu0 %1206 }
 0x178   : > { %v4524_v54 = vpack.c.bf16 %v1255_v10, %v1254_v53  ;;  %v1240_v20 = vadd.f32 %v1205_v59, %v1160_v6  ;;  %v1241_v52 = vadd.f32 %v1207_v34, %v1161_v19 }
 0x17a   : > { %v1256_v17 = vmax.f32 %v1240_v20, 0.0  ;;  %v1257_v22 = vmax.f32 %v1241_v52, 0.0  ;;  %3648 = vmatmul.mubr.msk.bf16.gmra.mrb[8].mxu1 %vm700_vm0, %v4524_v54 }
 0x17b   : > { %v1209_v46 = vpop.permute.xlu1 %1208  ;;  %v1211_v24 = vpop.permute.xlu0 %1210 }
 0x17c   : > { %v4530_v29 = vpack.c.bf16 %v1257_v22, %v1256_v17  ;;  %v1242_v38 = vadd.f32 %v1209_v46, %v1162_v62  ;;  %v1243_v23 = vadd.f32 %v1211_v24, %v1163_v61 }
 0x17e   : > { %v1258_v39 = vmax.f32 %v1242_v38, 0.0  ;;  %v1259_v8 = vmax.f32 %v1243_v23, 0.0  ;;  %3651 = vmatprep.mubr.msk.bf16.mxu1 %vm700_vm0, %v4530_v29 }
 0x180   : > { %v4534_v55 = vpack.c.bf16 %v1259_v8, %v1258_v39 }
 0x182   : > { %3652 = vmatmul.mubr.msk.bf16.gmra.mrb[12].mxu1 %vm700_vm0, %v4534_v55 }
 0x23d   : > { %v3641_v36 = vpop.f32.mrb[0].mxu1 }
 0x23e   : > { %v3458_v7 = vclamps-f32 %v3641_v36, 5.0  ;;  %v1342_v9 = vpop.f32.mrb[1].mxu1 }
 0x23f   : > { %v3456_v27 = vclamps-f32 %v1342_v9, 5.0  ;;  %v3642_v26 = vpop.f32.mrb[2].mxu1  ;;  %v3846_v9 = vld [vmem:[%s4981_s2] sm:$0xff]  }
 0x240   : > { %1469 = vxpose.xlu0.b32.start [1/2] (short) (narrow) %v3458_v7, 8  ;;  %v1345_v16 = vpop.f32.mrb[3].mxu1  ;;  %v3459_v63 = vclamps-f32 %v3642_v26, 5.0  ;;  %3655 = vmatprep.subr.bf16.mxu1 %v3846_v9 }
 0x241   : > { %1437 = vxpose.xlu1.b32.start [1/2] (short) (narrow) %v3456_v27, 8  ;;  %v3457_v44 = vclamps-f32 %v1345_v16, 5.0  ;;  %3656 = vmatpush3.bf16.msra.mxu1 %v3846_v9 }
 0x242   : > { %3661 = vmatprep.subr.bf16.mxu1 %v4998_v25 }
 0x244   : > { %1470 = vxpose.xlu0.b32.end [2/2] (short) (narrow) %v3459_v63, 8 }
 0x245   : > { %1438 = vxpose.xlu1.b32.end [2/2] (short) (narrow) %v3457_v44, 8  ;;  %v3645_v30 = vpop.f32.mrb[4].mxu1 }
 0x246   : > { %v3462_v49 = vclamps-f32 %v3645_v30, 5.0  ;;  %v1358_v40 = vpop.f32.mrb[5].mxu1 }
 0x247   : > { %v3460_v42 = vclamps-f32 %v1358_v40, 5.0  ;;  %v3646_v51 = vpop.f32.mrb[6].mxu1 }
 0x248   : > { %v1361_v35 = vpop.f32.mrb[7].mxu1  ;;  %v3463_v15 = vclamps-f32 %v3646_v51, 5.0 }
 0x249   : > { %1533 = vxpose.xlu1.b32.start [1/2] (short) (narrow) %v3462_v49, 8  ;;  %1501 = vxpose.xlu0.b32.start [1/2] (short) (narrow) %v3460_v42, 8  ;;  %v3461_v48 = vclamps-f32 %v1361_v35, 5.0 }
 0x24d   : > { %1534 = vxpose.xlu1.b32.end [2/2] (short) (narrow) %v3463_v15, 8  ;;  %1502 = vxpose.xlu0.b32.end [2/2] (short) (narrow) %v3461_v48, 8  ;;  %v3649_v56 = vpop.f32.mrb[8].mxu1 }
 0x24e   : > { %v3466_v50 = vclamps-f32 %v3649_v56, 5.0  ;;  %v1374_v41 = vpop.f32.mrb[9].mxu1 }
 0x24f   : > { %v3464_v37 = vclamps-f32 %v1374_v41, 5.0  ;;  %v3650_v43 = vpop.f32.mrb[10].mxu1 }
 0x250   : > { %v1377_v45 = vpop.f32.mrb[11].mxu1  ;;  %v3467_v2 = vclamps-f32 %v3650_v43, 5.0 }
 0x251   : > { %1597 = vxpose.xlu1.b32.start [1/2] (short) (narrow) %v3466_v50, 8  ;;  %1565 = vxpose.xlu0.b32.start [1/2] (short) (narrow) %v3464_v37, 8  ;;  %v3465_v0 = vclamps-f32 %v1377_v45, 5.0  ;;  %v3939_v37 = vmov 1983009808  }
 0x252   : > { %v1794_v43 = vunpack.c.l.s4 %v3939_v37  ;;  %v4616_v37 = vld [vmem:[%s4986_s7] sm:$0xf] }
 0x255   : > { %1598 = vxpose.xlu1.b32.end [2/2] (short) (narrow) %v3467_v2, 8  ;;  %1566 = vxpose.xlu0.b32.end [2/2] (short) (narrow) %v3465_v0, 8  ;;  %v3653_v47 = vpop.f32.mrb[12].mxu1 }
 0x256   : > { %v3470_v28 = vclamps-f32 %v3653_v47, 5.0  ;;  %v1390_v53 = vpop.f32.mrb[13].mxu1 }
 0x257   : > { %v3468_v10 = vclamps-f32 %v1390_v53, 5.0  ;;  %v3654_v59 = vpop.f32.mrb[14].mxu1 }
 0x258   : > { %v1393_v6 = vpop.f32.mrb[15].mxu1  ;;  %v3471_v34 = vclamps-f32 %v3654_v59, 5.0  ;;  %v1795_v59 = vunpack.c.0.s8 %v1794_v43 }
 0x259   : > { %1661 = vxpose.xlu1.b32.start [1/2] (short) (narrow) %v3470_v28, 8  ;;  %1629 = vxpose.xlu0.b32.start [1/2] (short) (narrow) %v3468_v10, 8  ;;  %v3469_v19 = vclamps-f32 %v1393_v6, 5.0 }
 0x25d   : > { %1662 = vxpose.xlu1.b32.end [2/2] (short) (narrow) %v3471_v34, 8  ;;  %1630 = vxpose.xlu0.b32.end [2/2] (short) (narrow) %v3469_v19, 8  ;;  %v1798_v19 = vsub.s32 %v1795_v59, %v4050_v3 }
 0x2c0   : > { %v1485_v31 = vpop.trf.xlu0 }
 0x2c1   : > { %v1453_v18 = vpop.trf.xlu1  ;;  %v1697_v20 = vsel %vm1693_vm4, %v1485_v31, -inf }
 0x2c2   : > { %1698 = vmax.xlane.f32.xlu1 %v1697_v20  ;;  %v1694_v52 = vsel %vm1693_vm4, %v1453_v18, -inf }
 0x2c3   : > { %1695 = vmax.xlane.f32.xlu0 %v1694_v52 }
 0x2c9   : > { %v1549_v17 = vpop.trf.xlu1  ;;  %v1517_v22 = vpop.trf.xlu0 }
 0x2ca   : > { %v1703_v46 = vsel %vm1693_vm4, %v1549_v17, -inf  ;;  %v1700_v62 = vsel %vm1693_vm4, %v1517_v22, -inf }
 0x2cb   : > { %1704 = vmax.xlane.f32.xlu1 %v1703_v46  ;;  %1701 = vmax.xlane.f32.xlu0 %v1700_v62 }
 0x2d1   : > { %v1613_v24 = vpop.trf.xlu1  ;;  %v1581_v61 = vpop.trf.xlu0 }
 0x2d2   : > { %v1709_v38 = vsel %vm1693_vm4, %v1613_v24, -inf  ;;  %v1706_v23 = vsel %vm1693_vm4, %v1581_v61, -inf }
 0x2d3   : > { %1710 = vmax.xlane.f32.xlu1 %v1709_v38  ;;  %1707 = vmax.xlane.f32.xlu0 %v1706_v23 }
 0x2d9   : > { %v4544_v39 = vpop.trf.xlu1  ;;  %v4546_v8 = vpop.trf.xlu0 }
 0x2da   : > { %v1715_v36 = vsel %vm1693_vm4, %v4544_v39, -inf  ;;  %v1712_v7 = vsel %vm1693_vm4, %v4546_v8, -inf }
 0x2db   : > { %1716 = vmax.xlane.f32.xlu1 %v1715_v36  ;;  %1713 = vmax.xlane.f32.xlu0 %v1712_v7 }
 0x34f   : > { %v1699_v27 = vpop.xlane.xlu1 %1698 }
 0x350   : > { %v1719_v26 = vsub.f32 %v1485_v31, %v1699_v27  ;;  %v1696_v16 = vpop.xlane.xlu0 %1695 }
 0x351   : > { %v1718_v63 = vsub.f32 %v1453_v18, %v1696_v16 }
 0x352   : > { %v1728_v44 = vmul.f32 1.442695, %v1719_v26 }
 0x353   : > { %v1726_v30 = vmul.f32 1.442695, %v1718_v63 }
 0x354   : > { %3889 = vpow2.f32 %v1728_v44 }
 0x355   : > { %3891 = vpow2.f32 %v1726_v30 }
 0x358   : > { %v1705_v49 = vpop.xlane.xlu1 %1704  ;;  %v1702_v40 = vpop.xlane.xlu0 %1701 }
 0x359   : > { %v1721_v42 = vsub.f32 %v1549_v17, %v1705_v49  ;;  %v1720_v51 = vsub.f32 %v1517_v22, %v1702_v40 }
 0x35b   : > { %v1732_v35 = vmul.f32 1.442695, %v1721_v42  ;;  %v1730_v15 = vmul.f32 1.442695, %v1720_v51 }
 0x35d   : > { %3893 = vpow2.f32 %v1732_v35 }
 0x35e   : > { %v3890_v48 = vpop.eup %3889  ;;  %3895 = vpow2.f32 %v1730_v15 }
 0x35f   : > { %v4558_v56 = vpop.eup %3891  ;;  %v1745_v50 = vsel %vm1693_vm4, %v3890_v48, 0.0  ;;  %v1775_v41 = vpack.c.bf16 %v3890_v48, %v3890_v48 }
 0x360   : > { %1746 = vadd.xlane.f32.xlu1 %v1745_v50  ;;  %v1711_v45 = vpop.xlane.xlu1 %1710  ;;  %v1708_v2 = vpop.xlane.xlu0 %1707  ;;  %v1742_v0 = vsel %vm1693_vm4, %v4558_v56, 0.0  ;;  %v3472_v34 = vpack.c.bf16 %v3890_v48, %v4558_v56  ;;  %v1774_v48 = vpack.c.bf16 %v4558_v56, %v4558_v56 }
 0x361   : > { %v1723_v47 = vsub.f32 %v1613_v24, %v1711_v45  ;;  %v1722_v28 = vsub.f32 %v1581_v61, %v1708_v2  ;;  %3670 = vmatmul.mubr.msk.bf16.vlgmr.msra.gmra.mrb[16].mxu0 %vm1831_vm6, %v1775_v41  ;;  %1743 = vadd.xlane.f32.xlu0 %v1742_v0 }
 0x362   : > { %3680 = vmatpush3.bf16.msra.mxu0 %v4501_v33  ;;  %3681 = vmatprep.mubr.msk.bf16.mxu0 %vm3938_vm5, %v4998_v25  ;;  %v1799_v23 = vrot.slane %v3472_v34, %v1798_v19 }
 0x363   : > { %v1736_v53 = vmul.f32 1.442695, %v1723_v47  ;;  %v1734_v10 = vmul.f32 1.442695, %v1722_v28  ;;  %3691 = vmatprep.subr.bf16.mxu0 %v4998_v25 }
 0x365   : > { %3897 = vpow2.f32 %v1736_v53 }
 0x366   : > { %3899 = vpow2.f32 %v1734_v10 }
 0x367   : > { %v3894_v6 = vpop.eup %3893 }
 0x368   : > { %v3896_v31 = vpop.eup %3895  ;;  %v1717_v18 = vpop.xlane.xlu1 %1716  ;;  %v1751_v52 = vsel %vm1693_vm4, %v3894_v6, 0.0  ;;  %v1777_v17 = vpack.c.bf16 %v3894_v6, %v3894_v6 }
 0x369   : > { %v1714_v20 = vpop.xlane.xlu0 %1713  ;;  %v1725_v22 = vsub.f32 %v4544_v39, %v1717_v18  ;;  %1752 = vadd.xlane.f32.xlu1 %v1751_v52  ;;  %v1748_v62 = vsel %vm1693_vm4, %v3896_v31, 0.0  ;;  %v3473_v24 = vpack.c.bf16 %v3894_v6, %v3896_v31  ;;  %v1776_v50 = vpack.c.bf16 %v3896_v31, %v3896_v31 }
 0x36a   : > { %v1724_v46 = vsub.f32 %v4546_v8, %v1714_v20  ;;  %1749 = vadd.xlane.f32.xlu0 %v1748_v62  ;;  %3682 = vmatmul.mubr.msk.bf16.vlgmr.msra.gmra.mrb[20].mxu0 %vm1831_vm6, %v1777_v17  ;;  %v2389_v31 = vand.u32 127, %v822_v1 }
 0x36b   : > { %v1740_v61 = vmul.f32 1.442695, %v1725_v22  ;;  %3692 = vmatpush3.bf16.msra.mxu0 %v4524_v54  ;;  %v1806_v36 = vrot.slane %v3473_v24, %v1798_v19  ;;  %3693 = vmatprep.mubr.msk.bf16.mxu0 %vm3938_vm5, %v4998_v25 }
 0x36c   : > { %v1738_v38 = vmul.f32 1.442695, %v1724_v46  ;;  %3703 = vmatprep.subr.bf16.mxu0 %v4998_v25  ;;  %v2392_v20 = vsub.s32 %v2389_v31, %v4050_v3 }
 0x36d   : > { %3901 = vpow2.f32 %v1740_v61  ;;  %v1807_v39 = vcombine.low %v1799_v23, %v1806_v36 }
 0x36e   : > { %3903 = vpow2.f32 %v1738_v38 }
 0x36f   : > { %v3898_v8 = vpop.eup %3897  ;;  %3657 = vmatprep.mubr.msk.bf16.mxu1 %vm1831_vm6, %v1807_v39 }
 0x370   : > { %v3900_v7 = vpop.eup %3899  ;;  %v1757_v9 = vsel %vm1693_vm4, %v3898_v8, 0.0  ;;  %v1779_v27 = vpack.c.bf16 %v3898_v8, %v3898_v8 }
 0x371   : > { %1758 = vadd.xlane.f32.xlu1 %v1757_v9  ;;  %v1754_v26 = vsel %vm1693_vm4, %v3900_v7, 0.0  ;;  %v3474_v63 = vpack.c.bf16 %v3898_v8, %v3900_v7  ;;  %v1778_v56 = vpack.c.bf16 %v3900_v7, %v3900_v7 }
 0x372   : > { %1755 = vadd.xlane.f32.xlu0 %v1754_v26  ;;  %3694 = vmatmul.mubr.msk.bf16.vlgmr.msra.gmra.mrb[24].mxu0 %vm1831_vm6, %v1779_v27 }
 0x373   : > { %3704 = vmatpush3.bf16.msra.mxu0 %v4534_v55  ;;  %3705 = vmatprep.mubr.msk.bf16.mxu0 %vm3938_vm5, %v4998_v25  ;;  %v1816_v51 = vrot.slane %v3474_v63, %v1798_v19 }
 0x377   : > { %v3902_v16 = vpop.eup %3901 }
 0x378   : > { %v3904_v44 = vpop.eup %3903  ;;  %v1763_v30 = vsel %vm1693_vm4, %v3902_v16, 0.0  ;;  %v1781_v49 = vpack.c.bf16 %v3902_v16, %v3902_v16 }
 0x379   : > { %1764 = vadd.xlane.f32.xlu1 %v1763_v30  ;;  %v1760_v40 = vsel %vm1693_vm4, %v3904_v44, 0.0  ;;  %v3475_v42 = vpack.c.bf16 %v3902_v16, %v3904_v44  ;;  %v1780_v41 = vpack.c.bf16 %v3904_v44, %v3904_v44 }
 0x37a   : > { %1761 = vadd.xlane.f32.xlu0 %v1760_v40  ;;  %3706 = vmatmul.mubr.msk.bf16.vlgmr.msra.gmra.mrb[28].mxu0 %vm1831_vm6, %v1781_v49 }
 0x37b   : > { %v1823_v35 = vrot.slane %v3475_v42, %v1798_v19  ;;  %3722 = vmatprep.mubr.msk.f32.mxu0 %vm3938_vm5, %v4998_v25 }
 0x37d   : > { %v1824_v15 = vcombine.low %v1816_v51, %v1823_v35 }
 0x37f   : > { %3658 = vmatmul.mubr.msk.bf16.vlgmr.msra.gmra.mrb[16].mxu1 %vm1831_vm6, %v1824_v15 }
 0x380   : > { %3662 = vmatpush3.bf16.msra.mxu1 %v4435_v32  ;;  %3663 = vmatprep.mubr.msk.bf16.mxu1 %vm3938_vm5, %v4998_v25 }
 0x381   : > { %3673 = vmatprep.subr.bf16.mxu1 %v4998_v25 }
 0x387   : > { %3664 = vmatmul.mubr.msk.bf16.vlgmr.msra.gmra.mrb[20].mxu1 %vm1831_vm6, %v1774_v48 }
 0x388   : > { %3674 = vmatpush3.bf16.msra.mxu1 %v4481_v57  ;;  %3675 = vmatprep.mubr.msk.bf16.mxu1 %vm3938_vm5, %v4998_v25 }
 0x389   : > { %3685 = vmatprep.subr.bf16.mxu1 %v4998_v25 }
 0x38f   : > { %3676 = vmatmul.mubr.msk.bf16.vlgmr.msra.gmra.mrb[24].mxu1 %vm1831_vm6, %v1776_v50 }
 0x390   : > { %3686 = vmatpush3.bf16.msra.mxu1 %v4518_v4  ;;  %3687 = vmatprep.mubr.msk.bf16.mxu1 %vm3938_vm5, %v4998_v25 }
 0x391   : > { %3697 = vmatprep.subr.bf16.mxu1 %v4998_v25 }
 0x397   : > { %3688 = vmatmul.mubr.msk.bf16.vlgmr.msra.gmra.mrb[28].mxu1 %vm1831_vm6, %v1778_v56 }
 0x398   : > { %3698 = vmatpush3.bf16.msra.mxu1 %v4530_v29  ;;  %3699 = vmatprep.mubr.msk.bf16.mxu1 %vm3938_vm5, %v4998_v25 }
 0x399   : > { %3709 = vmatprep.subr.mxu1 %v4998_v25 }
 0x39f   : > { %3700 = vmatmul.mubr.msk.bf16.vlgmr.msra.gmra.mrb[32].mxu1 %vm1831_vm6, %v1780_v41 }
 0x3a0   : > { %3710 = vmatpush3.msk.msra.mxu1 %vm2439_vm7, %v4616_v37  ;;  %3711 = vmatprep.mubr.msk.f32.mxu1 %vm3938_vm5, %v4998_v25 }
 0x3ed   : > { %v1747_v45 = vpop.xlane.xlu1 %1746 }
 0x3ee   : > { %v1744_v43 = vpop.xlane.xlu0 %1743  ;;  %v1767_v0 = vadd.f32 1e-16, %v1747_v45 }
 0x3ef   : > { %v1766_v47 = vadd.f32 1e-16, %v1744_v43 }
 0x3f0   : > { %3905 = vrcp.f32 %v1767_v0 }
 0x3f1   : > { %3907 = vrcp.f32 %v1766_v47 }
 0x3f6   : > { %v1753_v28 = vpop.xlane.xlu1 %1752 }
 0x3f7   : > { %v1750_v2 = vpop.xlane.xlu0 %1749  ;;  %v1769_v10 = vadd.f32 1e-16, %v1753_v28 }
 0x3f8   : > { %v1768_v53 = vadd.f32 1e-16, %v1750_v2 }
 0x3fa   : > { %3909 = vrcp.f32 %v1768_v53  ;;  %v3906_v18 = vpop.eup %3905 }
 0x3fb   : > { %3911 = vrcp.f32 %v1769_v10  ;;  %v3908_v17 = vpop.eup %3907  ;;  %v2397_v61 = vrot.slane %v3906_v18, %v2392_v20 }
 0x3fc   : > { %v2393_v38 = vrot.slane %v3908_v17, %v2392_v20 }
 0x3fe   : > { %v1759_v59 = vpop.xlane.xlu1 %1758  ;;  %v2423_v1 = vsel %vm2422_vm8, %v2397_v61, %v2393_v38 }
 0x3ff   : > { %v1756_v6 = vpop.xlane.xlu0 %1755  ;;  %v1771_v19 = vadd.f32 1e-16, %v1759_v59 }
 0x400   : > { %v1770_v34 = vadd.f32 1e-16, %v1756_v6 }
 0x402   : > { %3913 = vrcp.f32 %v1770_v34 }
 0x403   : > { %3915 = vrcp.f32 %v1771_v19 }
 0x404   : > { %v3910_v62 = vpop.eup %3909 }
 0x405   : > { %v3912_v23 = vpop.eup %3911  ;;  %v2401_v36 = vrot.slane %v3910_v62, %v2392_v20 }
 0x406   : > { %v1765_v52 = vpop.xlane.xlu1 %1764  ;;  %v2405_v8 = vrot.slane %v3912_v23, %v2392_v20 }
 0x407   : > { %v1773_v22 = vadd.f32 1e-16, %v1765_v52  ;;  %v1762_v46 = vpop.xlane.xlu0 %1761  ;;  %v2425_v9 = vsel %vm2424_vm9, %v2401_v36, %v2423_v1 }
 0x408   : > { %v1772_v24 = vadd.f32 1e-16, %v1762_v46  ;;  %v2427_v16 = vsel %vm2426_vm10, %v2405_v8, %v2425_v9  ;;  %v2545_v8 = vld [vmem:[%s4987_s8] sm:$0xff]  ;;  %v5002_v9 = vmov 0.0|0.0  }
 0x409   : > { %3917 = vrcp.f32 %v1773_v22  ;;  %3786 = vmatprep.subr.bf16.mxu0 %v5002_v9  ;;  %3792 = vmatprep.subr.bf16.mxu1 %v5002_v9 }
 0x40a   : > { %3919 = vrcp.f32 %v1772_v24 }
 0x40c   : > { %v3914_v39 = vpop.eup %3913 }
 0x40d   : > { %v3916_v7 = vpop.eup %3915  ;;  %v2409_v27 = vrot.slane %v3914_v39, %v2392_v20 }
 0x40e   : > { %v2413_v26 = vrot.slane %v3916_v7, %v2392_v20  ;;  %v2546_v7 = vld [vmem:[%s4987_s8 + $0x8] sm:$0xff] }
 0x40f   : > { %v2429_v44 = vsel %vm2428_vm11, %v2409_v27, %v2427_v16  ;;  %v3787_v27 = vpack.c.bf16 %v2546_v7, %v2545_v8  ;;  %v2548_v16 = vld [vmem:[%s4987_s8 + $0x18] sm:$0xff] }
 0x410   : > { %v2431_v42 = vsel %vm2430_vm12, %v2413_v26, %v2429_v44  ;;  %v2547_v26 = vld [vmem:[%s4987_s8 + $0x10] sm:$0xff]  ;;  %v4655_v44 = vld [vmem:[%s4990_s11] sm:$0xff]  }
 0x411   : > { %3788 = vmatpush3.bf16.msra.mxu0 %v3787_v27 }
 0x412   : > { %3789 = vmatprep.subr.bf16.mxu0 %v5002_v9 }
 0x413   : > { %v3918_v63 = vpop.eup %3917 }
 0x414   : > { %v3920_v30 = vpop.eup %3919  ;;  %v2421_v49 = vrot.slane %v3918_v63, %v2392_v20  ;;  %v3790_v63 = vpack.c.bf16 %v2548_v16, %v2547_v26 }
 0x415   : > { %v2417_v40 = vrot.slane %v3920_v30, %v2392_v20 }
 0x416   : > { %3791 = vmatpush3.bf16.msra.mxu0 %v3790_v63 }
 0x417   : > { %v2433_v51 = vsel %vm2432_vm13, %v2417_v40, %v2431_v42  ;;  %3736 = vmatprep.subr.bf16.mxu0 %v4655_v44 }
 0x418   : > { %v2435_v35 = vsel %vm2434_vm14, %v2421_v49, %v2433_v51  ;;  %v3941_v51 = vmov 0  }
 0x419   : > { %3712 = vmatmul.mubr.msk.f32.vlgmr.msra.gmra.mrb[36].mxu1 %vm2436_vm15, %v2435_v35  ;;  %3832 = vset.pattern.permute.xlu0 %v3941_v51  ;;  %v2667_v35 = vld [vmem:[%s607_s27] sm:$0xff] }
 0x41a   : > { %3733 = vmatprep.mubr.msk.f32.mxu1 %vm3938_vm5, %v4998_v25  ;;  %2670 = vperm.xlu0 %3832, %v2667_v35  }
 0x434   : > { %v1979_v15 = vpop.f32.mrb[16].mxu0 }
 0x435   : > { %v3671_v48 = vpop.f32.mrb[17].mxu0 }
 0x436   : > { %v1982_v50 = vpop.f32.mrb[18].mxu0 }
 0x437   : > { %v3672_v56 = vpop.f32.mrb[19].mxu0  ;;  %v2309_v50 = vmul.f32 %v1979_v15, %v4616_v37 }
 0x43d   : > { %v2065_v41 = vpop.f32.mrb[20].mxu0 }
 0x43e   : > { %v3683_v43 = vpop.f32.mrb[21].mxu0 }
 0x43f   : > { %v2068_v45 = vpop.f32.mrb[22].mxu0  ;;  %v2311_v43 = vmul.f32 %v2065_v41, %v4616_v37 }
 0x440   : > { %v3684_v2 = vpop.f32.mrb[23].mxu0 }
 0x445   : > { %v2151_v0 = vpop.f32.mrb[24].mxu0 }
 0x446   : > { %v3695_v47 = vpop.f32.mrb[25].mxu0  ;;  %v2313_v45 = vmul.f32 %v2151_v0, %v4616_v37  ;;  %v2337_v0 = vsel %vm2251_vm1, %v2311_v43, 0.0 }
 0x447   : > { %v2154_v28 = vpop.f32.mrb[26].mxu0 }
 0x448   : > { %v3696_v53 = vpop.f32.mrb[27].mxu0 }
 0x44d   : > { %v2237_v10 = vpop.f32.mrb[28].mxu0 }
 0x44e   : > { %v3707_v59 = vpop.f32.mrb[29].mxu0  ;;  %v2315_v2 = vmul.f32 %v2237_v10, %v4616_v37  ;;  %v2351_v10 = vsel %vm2251_vm1, %v2313_v45, 0.0 }
 0x44f   : > { %v2240_v6 = vpop.f32.mrb[30].mxu0  ;;  %v2323_v59 = vsel %vm2251_vm1, %v2309_v50, 0.0 }
 0x450   : > { %v3708_v34 = vpop.f32.mrb[31].mxu0 }
 0x451   : > { %v2365_v34 = vsel %vm2251_vm1, %v2315_v2, 0.0 }
 0x452   : > { %v3659_v19 = vpop.f32.mrb[16].mxu1  ;;  %v2366_v8 = vrot.slane %v2365_v34, 4 }
 0x453   : > { %v1872_v31 = vpop.f32.mrb[17].mxu1  ;;  %v1893_v48 = vcombine.high %v3659_v19, %v3659_v19  ;;  %v2247_v47 = vmul.f32 %v3659_v19, %v4616_v37 }
 0x454   : > { %v4633_v18 = vpop.f32.mrb[18].mxu1  ;;  %v1891_v56 = vcombine.high %v1872_v31, %v1872_v31  ;;  %v2243_v53 = vmul.f32 %v1872_v31, %v4616_v37 }
 0x455   : > { %v4635_v20 = vpop.f32.mrb[19].mxu1  ;;  %v2248_v28 = vmul.f32 %v1893_v48, %v4616_v37  ;;  %v1894_v15 = vcombine.high %v4633_v18, %v4633_v18  ;;  %v2249_v19 = vmul.f32 %v4633_v18, %v4616_v37 }
 0x456   : > { %v2244_v6 = vmul.f32 %v1891_v56, %v4616_v37  ;;  %v1892_v41 = vcombine.high %v4635_v20, %v4635_v20  ;;  %v2245_v18 = vmul.f32 %v4635_v20, %v4616_v37 }
 0x457   : > { %v2294_v7 = vsel %vm2251_vm1, %v2249_v19, 0.0 }
 0x458   : > { %v2295_v20 = vrot.slane %v2294_v7, 4  ;;  %v2266_v51 = vsel %vm2251_vm1, %v2245_v18, 0.0 }
 0x45a   : > { %v1936_v52 = vpop.f32.mrb[20].mxu1  ;;  %v2296_v19 = vadd.f32 %v2295_v20, %v2294_v7 }
 0x45b   : > { %v3665_v17 = vpop.f32.mrb[21].mxu1  ;;  %v2308_v31 = vmul.f32 %v1936_v52, %v4616_v37  ;;  %v2246_v52 = vmul.f32 %v1892_v41, %v4616_v37 }
 0x45c   : > { %v1939_v22 = vpop.f32.mrb[22].mxu1 }
 0x45d   : > { %v3666_v46 = vpop.f32.mrb[23].mxu1  ;;  %v2316_v27 = vsel %vm2251_vm1, %v2308_v31, 0.0  ;;  %v2273_v35 = vsel %vm2251_vm1, %v2246_v52, 0.0 }
 0x45e   : > { %v2317_v48 = vrot.slane %v2316_v27, 4 }
 0x462   : > { %v2022_v62 = vpop.f32.mrb[24].mxu1 }
 0x463   : > { %v3677_v24 = vpop.f32.mrb[25].mxu1  ;;  %v2310_v17 = vmul.f32 %v2022_v62, %v4616_v37  ;;  %v2338_v62 = vrot.slane %v2337_v0, 4 }
 0x464   : > { %v2025_v61 = vpop.f32.mrb[26].mxu1  ;;  %v2324_v24 = vrot.slane %v2323_v59, 4 }
 0x465   : > { %v3678_v38 = vpop.f32.mrb[27].mxu1  ;;  %v2280_v61 = vsel %vm2251_vm1, %v2247_v47, 0.0  ;;  %v2330_v26 = vsel %vm2251_vm1, %v2310_v17, 0.0  ;;  %v2339_v2 = vadd.f32 %v2338_v62, %v2337_v0  ;;  %v2267_v17 = vrot.slane %v2266_v51, 4 }
 0x466   : > { %v2287_v38 = vsel %vm2251_vm1, %v2248_v28, 0.0  ;;  %v2331_v50 = vrot.slane %v2330_v26, 4  ;;  %v2325_v45 = vadd.f32 %v2324_v24, %v2323_v59  ;;  %v2367_v28 = vadd.f32 %v2366_v8, %v2365_v34 }
 0x467   : > { %v2340_v5 = vrot.slane %v2339_v2, 2  ;;  %v2297_v24 = vrot.slane %v2296_v19, 2 }
 0x468   : > { %v2326_v25 = vrot.slane %v2325_v45, 2  ;;  %v2368_v9 = vrot.slane %v2367_v28, 2 }
 0x46a   : > { %v2108_v23 = vpop.f32.mrb[28].mxu1  ;;  %v2327_v7 = vadd.f32 %v2326_v25, %v2325_v45 }
 0x46b   : > { %v3689_v36 = vpop.f32.mrb[29].mxu1  ;;  %v2312_v22 = vmul.f32 %v2108_v23, %v4616_v37  ;;  %v2352_v23 = vrot.slane %v2351_v10, 4 }
 0x46c   : > { %v2111_v39 = vpop.f32.mrb[30].mxu1  ;;  %v2252_v36 = vsel %vm2251_vm1, %v2243_v53, 0.0 }
 0x46d   : > { %v3690_v1 = vpop.f32.mrb[31].mxu1  ;;  %v2259_v39 = vsel %vm2251_vm1, %v2244_v6, 0.0  ;;  %v2344_v16 = vsel %vm2251_vm1, %v2312_v22, 0.0  ;;  %v2353_v47 = vadd.f32 %v2352_v23, %v2351_v10  ;;  %v2274_v22 = vrot.slane %v2273_v35, 4 }
 0x46e   : > { %v2250_v1 = vmul.f32 %v1894_v15, %v4616_v37  ;;  %v2345_v56 = vrot.slane %v2344_v16, 4 }
 0x46f   : > { %v2354_v58 = vrot.slane %v2353_v47, 2 }
 0x470   : > { %v2346_v18 = vadd.f32 %v2345_v56, %v2344_v16  ;;  %v2369_v16 = vadd.f32 %v2368_v9, %v2367_v28 }
 0x472   : > { %v2194_v30 = vpop.f32.mrb[32].mxu1  ;;  %v2347_v23 = vrot.slane %v2346_v18, 2 }
 0x473   : > { %v3701_v49 = vpop.f32.mrb[33].mxu1  ;;  %v2314_v46 = vmul.f32 %v2194_v30, %v4616_v37  ;;  %v2281_v30 = vrot.slane %v2280_v61, 4  ;;  %v2301_v37 = vsel %vm2251_vm1, %v2250_v1, 0.0  ;;  %v2332_v1 = vadd.f32 %v2331_v50, %v2330_v26 }
 0x474   : > { %v2197_v40 = vpop.f32.mrb[34].mxu1  ;;  %v2288_v49 = vrot.slane %v2287_v38, 4  ;;  %v2302_v31 = vrot.slane %v2301_v37, 4  ;;  %v2355_v26 = vadd.f32 %v2354_v58, %v2353_v47 }
 0x475   : > { %v3702_v42 = vpop.f32.mrb[35].mxu1  ;;  %v2358_v63 = vsel %vm2251_vm1, %v2314_v46, 0.0  ;;  %v2253_v40 = vrot.slane %v2252_v36, 4  ;;  %v2282_v53 = vadd.f32 %v2281_v30, %v2280_v61  ;;  %v2318_v46 = vadd.f32 %v2317_v48, %v2316_v27 }
 0x476   : > { %v2260_v42 = vrot.slane %v2259_v39, 4  ;;  %v2359_v43 = vrot.slane %v2358_v63, 4  ;;  %v2289_v6 = vadd.f32 %v2288_v49, %v2287_v38  ;;  %v2303_v61 = vadd.f32 %v2302_v31, %v2301_v37 }
 0x477   : > { %v2254_v15 = vadd.f32 %v2253_v40, %v2252_v36  ;;  %v2283_v59 = vrot.slane %v2282_v53, 2  ;;  %v2268_v38 = vadd.f32 %v2267_v17, %v2266_v51  ;;  %v2275_v36 = vadd.f32 %v2274_v22, %v2273_v35 }
 0x478   : > { %v2261_v41 = vadd.f32 %v2260_v42, %v2259_v39  ;;  %v2360_v52 = vadd.f32 %v2359_v43, %v2358_v63  ;;  %v2290_v0 = vrot.slane %v2289_v6, 2  ;;  %v2319_v39 = vrot.slane %v2318_v46, 2 }
 0x479   : > { %v2255_v10 = vrot.slane %v2254_v15, 2  ;;  %v2333_v62 = vrot.slane %v2332_v1, 2  ;;  %v2341_v27 = vadd.f32 %v2340_v5, %v2339_v2  ;;  %v2284_v63 = vadd.f32 %v2283_v59, %v2282_v53 }
 0x47a   : > { %v2262_v34 = vrot.slane %v2261_v41, 2  ;;  %v2361_v8 = vrot.slane %v2360_v52, 2  ;;  %v2291_v30 = vadd.f32 %v2290_v0, %v2289_v6  ;;  %v2298_v42 = vadd.f32 %v2297_v24, %v2296_v19 }
 0x47b   : > { %v2256_v49 = vadd.f32 %v2255_v10, %v2254_v15  ;;  %v2304_v20 = vrot.slane %v2303_v61, 2  ;;  %v2269_v48 = vrot.slane %v2268_v38, 2  ;;  %v2276_v50 = vrot.slane %v2275_v36, 2 }
 0x47c   : > { %v2263_v40 = vadd.f32 %v2262_v34, %v2261_v41  ;;  %v2320_v56 = vadd.f32 %v2319_v39, %v2318_v46  ;;  %v2334_v37 = vadd.f32 %v2333_v62, %v2332_v1  ;;  %v2348_v51 = vadd.f32 %v2347_v23, %v2346_v18 }
 0x47d   : > { %v2362_v35 = vadd.f32 %v2361_v8, %v2360_v52  ;;  %v2328_v43 = vrot.slane %v2327_v7, 1  ;;  %v2342_v31 = vrot.slane %v2341_v27, 1  ;;  %v2356_v17 = vrot.slane %v2355_v26, 1 }
 0x47e   : > { %v2370_v22 = vrot.slane %v2369_v16, 1  ;;  %v2285_v25 = vrot.slane %v2284_v63, 1  ;;  %v2292_v5 = vrot.slane %v2291_v30, 1  ;;  %v2257_v58 = vrot.slane %v2256_v49, 1 }
 0x47f   : > { %v2264_v9 = vrot.slane %v2263_v40, 1  ;;  %v2299_v45 = vrot.slane %v2298_v42, 1  ;;  %v2305_v2 = vadd.f32 %v2304_v20, %v2303_v61  ;;  %v2270_v47 = vadd.f32 %v2269_v48, %v2268_v38 }
 0x480   : > { %v2277_v28 = vadd.f32 %v2276_v50, %v2275_v36  ;;  %v2321_v53 = vrot.slane %v2320_v56, 1  ;;  %v2335_v6 = vrot.slane %v2334_v37, 1  ;;  %v2349_v15 = vrot.slane %v2348_v51, 1 }
 0x481   : > { %v2363_v41 = vrot.slane %v2362_v35, 1  ;;  %v2329_v19 = vadd.f32 %v2328_v43, %v2327_v7  ;;  %v2343_v46 = vadd.f32 %v2342_v31, %v2341_v27  ;;  %v2357_v1 = vadd.f32 %v2356_v17, %v2355_v26 }
 0x482   : > { %v2371_v18 = vadd.f32 %v2370_v22, %v2369_v16  ;;  %v2286_v52 = vadd.f32 %v2285_v25, %v2284_v63  ;;  %v2293_v59 = vadd.f32 %v2292_v5, %v2291_v30  ;;  %v2258_v0 = vadd.f32 %v2257_v58, %v2256_v49 }
 0x483   : > { %v2265_v10 = vadd.f32 %v2264_v9, %v2263_v40  ;;  %v2300_v34 = vadd.f32 %v2299_v45, %v2298_v42  ;;  %v2306_v24 = vrot.slane %v2305_v2, 1  ;;  %v2271_v39 = vrot.slane %v2270_v47, 1 }
 0x484   : > { %v2278_v62 = vrot.slane %v2277_v28, 1  ;;  %v2322_v23 = vadd.f32 %v2321_v53, %v2320_v56  ;;  %v2336_v61 = vadd.f32 %v2335_v6, %v2334_v37  ;;  %v2350_v38 = vadd.f32 %v2349_v15, %v2348_v51 }
 0x485   : > { %v2364_v36 = vadd.f32 %v2363_v41, %v2362_v35  ;;  %v2272_v51 = vadd.f32 %v2271_v39, %v2270_v47  ;;  %v2307_v5 = vadd.f32 %v2306_v24, %v2305_v2 }
 0x486   : > { %v2279_v35 = vadd.f32 %v2278_v62, %v2277_v28  ;;  %v2680_v62 = vsub.s32 3, %v4050_v3 }
 0x4ec   : > { %v2509_v8 = vpop.f32.mrb[36].mxu1 }
 0x4ed   : > { %v2514_v20 = vrot.slane %v2509_v8, 1  ;;  %v3713_v48 = vpop.f32.mrb[37].mxu1  ;;  %v2515_v50 = vrot.slane %v2509_v8, 2  ;;  %v2516_v7 = vrot.slane %v2509_v8, 3  ;;  %v2517_v27 = vrot.slane %v2509_v8, 4 }
 0x4ee   : > { %v2518_v26 = vrot.slane %v2509_v8, 5  ;;  %v2519_v16 = vrot.slane %v2509_v8, 6  ;;  %v2520_v63 = vrot.slane %v2509_v8, 7  ;;  %v2537_v30 = vmul.f32 %v2509_v8, %v2322_v23  ;;  %v2671_v23 = vpop.permute.xlu0 %2670 }
 0x4ef   : > { %v2538_v49 = vmul.f32 %v2514_v20, %v2329_v19  ;;  %v2539_v40 = vmul.f32 %v2515_v50, %v2336_v61  ;;  %v2540_v42 = vmul.f32 %v2516_v7, %v2343_v46  ;;  %v2541_v43 = vmul.f32 %v2517_v27, %v2350_v38 }
 0x4f0   : > { %v2542_v31 = vmul.f32 %v2518_v26, %v2357_v1  ;;  %v2543_v17 = vmul.f32 %v2519_v16, %v2364_v36  ;;  %v2544_v56 = vmul.f32 %v2520_v63, %v2371_v18  ;;  %v4700_v37 = vmul.f32 %v2509_v8, %v2258_v0 }
 0x4f1   : > { %v2557_v22 = vrot.slane %v2538_v49, 7  ;;  %v2559_v25 = vrot.slane %v2539_v40, 6  ;;  %v2561_v58 = vrot.slane %v2540_v42, 5  ;;  %v2563_v9 = vrot.slane %v2541_v43, 4 }
 0x4f2   : > { %v4702_v45 = vmul.f32 %v2514_v20, %v2265_v10  ;;  %v4705_v6 = vmul.f32 %v2515_v50, %v2272_v51  ;;  %v4707_v15 = vmul.f32 %v2516_v7, %v2279_v35  ;;  %v4709_v41 = vmul.f32 %v2517_v27, %v2286_v52  ;;  %v4779_v51 = vld [vmem:[%s4994_s15 + $0x8] sm:$0xff] }
 0x4f3   : > { %v2558_v53 = vsel %vm2422_vm8, %v2557_v22, %v2537_v30  ;;  %v4712_v46 = vmul.f32 %v2518_v26, %v2293_v59  ;;  %v4714_v47 = vmul.f32 %v2519_v16, %v2300_v34  ;;  %v4716_v28 = vmul.f32 %v2520_v63, %v2307_v5  ;;  %v3848_v59 = vld [vmem:[%s4990_s11 + $0x8] sm:$0xff]  }
 0x4f4   : > { %v2560_v19 = vsel %vm2424_vm9, %v2559_v25, %v2558_v53  ;;  %v2565_v1 = vrot.slane %v2542_v31, 3  ;;  %v2567_v0 = vrot.slane %v2543_v17, 2  ;;  %v2569_v24 = vrot.slane %v2544_v56, 1 }
 0x4f5   : > { %v2562_v2 = vsel %vm2426_vm10, %v2561_v58, %v2560_v19  ;;  %v2924_v36 = vsub.s32 6, %v4050_v3 }
 0x4f6   : > { %v2564_v18 = vsel %vm2428_vm11, %v2563_v9, %v2562_v2 }
 0x4f7   : > { %v2566_v10 = vsel %vm2430_vm12, %v2565_v1, %v2564_v18 }
 0x4f8   : > { %v2568_v52 = vsel %vm2432_vm13, %v2567_v0, %v2566_v10 }
 0x4f9   : > { %v2570_v34 = vsel %vm2434_vm14, %v2569_v24, %v2568_v52 }
 0x4fa   : > { %3723 = vmatmul.mubr.msk.f32.vlgmr.msra.gmra.mrb[32].mxu0 %vm700_vm0, %v2570_v34  ;;  %v3923_v34 = vld [vmem:[%s4066_s21] sm:$0xff]  }
 0x4fb   : > { %3737 = vmatpush3.bf16.msra.mxu0 %v4655_v44  ;;  %3740 = vmatprep.mubr.msk.bf16.mxu0 %vm700_vm0, %v4435_v32  ;;  %v2707_v32 = vld [vmem:[%s4989_s10] sm:$0xff] }
 0x4fc   : > { %3738 = vmatprep.subr.bf16.mxu0 %v3848_v59  ;;  %v4762_v44 = vld [vmem:[%s4994_s15] sm:$0xff] }
 0x4fd   : > { %v2681_v61 = vrot.slane %v4762_v44, %v2680_v62  ;;  %v4773_v20 = vrot.slane %v4762_v44, %v2924_v36  ;;  %v2944_v36 = vunpack.c.h.bf16 %v3923_v34 }
 0x4ff   : > { %3739 = vmatpush3.bf16.msra.mxu0 %v3848_v59 }
 0x502   : > { %3741 = vmatmul.mubr.msk.bf16.vlgmr.msra.gmra.mrb[36].mxu0 %vm700_vm0, %v4458_v21  ;;  %v2708_v21 = vld [vmem:[%s4989_s10 + $0x8] sm:$0xff] }
 0x503   : > { %3744 = vmatprep.mubr.msk.bf16.mxu0 %vm700_vm0, %v4481_v57  ;;  %v3793_v57 = vpack.c.bf16 %v2708_v21, %v2707_v32  ;;  %v2943_v32 = vunpack.c.l.bf16 %v3923_v34 }
 0x505   : > { %3794 = vmatpush3.bf16.msra.mxu1 %v3793_v57 }
 0x50a   : > { %3745 = vmatmul.mubr.msk.bf16.gmra.mrb[40].mxu0 %vm700_vm0, %v4501_v33  ;;  %v2709_v33 = vld [vmem:[%s4989_s10 + $0x10] sm:$0xff] }
 0x50b   : > { %3748 = vmatprep.mubr.msk.bf16.mxu0 %vm700_vm0, %v4518_v4  ;;  %v2710_v4 = vld [vmem:[%s4989_s10 + $0x18] sm:$0xff] }
 0x512   : > { %3749 = vmatmul.mubr.msk.bf16.gmra.mrb[44].mxu0 %vm700_vm0, %v4524_v54  ;;  %v3796_v54 = vpack.c.bf16 %v2710_v4, %v2709_v33 }
 0x513   : > { %3752 = vmatprep.mubr.msk.bf16.mxu0 %vm700_vm0, %v4530_v29  ;;  %v5008_v29 = vmov 0.0|0.0  }
 0x514   : > { %3795 = vmatprep.subr.bf16.mxu1 %v5008_v29 }
 0x515   : > { %3797 = vmatpush3.bf16.msra.mxu1 %v3796_v54 }
 0x516   : > { %3798 = vmatprep.subr.bf16.mxu1 %v5008_v29 }
 0x51a   : > { %3753 = vmatmul.mubr.msk.bf16.gmra.mrb[48].mxu0 %vm700_vm0, %v4534_v55  ;;  %v2675_v55 = vsub.s32 4, %v4050_v3 }
 0x51c   : > { %v2676_v39 = vrot.slane %v4762_v44, %v2675_v55 }
 0x51e   : > { %v2677_v38 = vmul.f32 %v2676_v39, %v2671_v23 }
 0x520   : > { %v2682_v8 = vadd.f32 %v2681_v61, %v2677_v38 }
 0x522   : > { %v2684_v48 = vrot.slane %v2682_v8, 1  ;;  %v2685_v7 = vrot.slane %v2682_v8, 2  ;;  %v2686_v27 = vrot.slane %v2682_v8, 3  ;;  %v2687_v26 = vrot.slane %v2682_v8, 4 }
 0x523   : > { %v2688_v16 = vrot.slane %v2682_v8, 5  ;;  %v2689_v53 = vrot.slane %v2682_v8, 6  ;;  %v2690_v2 = vrot.slane %v2682_v8, 7 }
 0x5cd   : > { %v2639_v50 = vpop.f32.mrb[32].mxu0 }
 0x5ce   : > { %v2644_v63 = vrot.slane %v2639_v50, 1  ;;  %v2645_v30 = vrot.slane %v2639_v50, 2  ;;  %v2646_v49 = vrot.slane %v2639_v50, 3  ;;  %v2647_v40 = vrot.slane %v2639_v50, 4  ;;  %v3724_v42 = vpop.f32.mrb[33].mxu0 }
 0x5cf   : > { %v2659_v43 = vadd.f32 %v2639_v50, %v4700_v37  ;;  %v2648_v31 = vrot.slane %v2639_v50, 5  ;;  %v2649_v17 = vrot.slane %v2639_v50, 6  ;;  %v2650_v56 = vrot.slane %v2639_v50, 7 }
 0x5d0   : > { %v2660_v35 = vadd.f32 %v2644_v63, %v4702_v45  ;;  %v2661_v22 = vadd.f32 %v2645_v30, %v4705_v6  ;;  %v2662_v25 = vadd.f32 %v2646_v49, %v4707_v15  ;;  %v2663_v5 = vadd.f32 %v2647_v40, %v4709_v41  ;;  %v3922_v15 = vld [vmem:[%s4066_s21 + $0x8] sm:$0xff]  }
 0x5d1   : > { %v2664_v58 = vadd.f32 %v2648_v31, %v4712_v46  ;;  %v2665_v37 = vadd.f32 %v2649_v17, %v4714_v47  ;;  %v2666_v9 = vadd.f32 %v2650_v56, %v4716_v28  ;;  %v5009_v45 = vsub.s32 1, %v4050_v3 }
 0x5d2   : > { %v2700_v19 = vmul.f32 %v2684_v48, %v2660_v35  ;;  %v2701_v1 = vmul.f32 %v2685_v7, %v2661_v22  ;;  %v2702_v18 = vmul.f32 %v2686_v27, %v2662_v25  ;;  %v2945_v0 = vunpack.c.l.bf16 %v3922_v15 }
 0x5d3   : > { %v4791_v6 = vrot.slane %v4779_v51, %v5009_v45  ;;  %v2703_v41 = vmul.f32 %v2687_v26, %v2663_v5  ;;  %v2699_v10 = vmul.f32 %v2682_v8, %v2659_v43  ;;  %v2704_v46 = vmul.f32 %v2688_v16, %v2664_v58  ;;  %v3924_v58 = vld [vmem:[%s4066_s21 + $0x18] sm:$0xff]  }
 0x5d4   : > { %v2723_v24 = vrot.slane %v2700_v19, 7  ;;  %v2725_v47 = vrot.slane %v2701_v1, 6  ;;  %v5010_v28 = vsub.s32 2, %v4050_v3  ;;  %v2946_v21 = vunpack.c.h.bf16 %v3922_v15  ;;  %v3925_v1 = vld [vmem:[%s4066_s21 + $0x10] sm:$0xff]  }
 0x5d5   : > { %v3742_v59 = vpop.f32.mrb[36].mxu0  ;;  %v2705_v57 = vmul.f32 %v2689_v53, %v2665_v37  ;;  %v2706_v54 = vmul.f32 %v2690_v2, %v2666_v9  ;;  %v2727_v23 = vrot.slane %v2702_v18, 5  ;;  %v2729_v48 = vrot.slane %v2703_v41, 4 }
 0x5d6   : > { %v4797_v52 = vrot.slane %v4779_v51, %v5010_v28  ;;  %v2928_v33 = vadd.f32 %v3742_v59, %v4773_v20  ;;  %v2859_v4 = vpop.f32.mrb[37].mxu0  ;;  %v2724_v39 = vsel %vm2422_vm8, %v2723_v24, %v2699_v10  ;;  %v2731_v16 = vrot.slane %v2704_v46, 3 }
 0x5d7   : > { %v2926_v61 = vadd.f32 %v4773_v20, %v2859_v4  ;;  %v3743_v38 = vpop.f32.mrb[38].mxu0  ;;  %v2726_v8 = vsel %vm2424_vm9, %v2725_v47, %v2724_v39  ;;  %v2733_v40 = vrot.slane %v2705_v57, 2  ;;  %v2735_v17 = vrot.slane %v2706_v54, 1 }
 0x5d8   : > { %v2961_v50 = vadd.f32 %v2945_v0, %v2928_v33  ;;  %v2929_v7 = vadd.f32 %v3743_v38, %v4773_v20  ;;  %v2862_v27 = vpop.f32.mrb[39].mxu0  ;;  %v2728_v26 = vsel %vm2426_vm10, %v2727_v23, %v2726_v8  ;;  %v2949_v37 = vunpack.c.l.bf16 %v3924_v58 }
 0x5d9   : > { %v2959_v63 = vadd.f32 %v2943_v32, %v2926_v61  ;;  %v2927_v30 = vadd.f32 %v4773_v20, %v2862_v27  ;;  %v2730_v49 = vsel %vm2428_vm11, %v2729_v48, %v2728_v26  ;;  %v2947_v18 = vunpack.c.l.bf16 %v3925_v1 }
 0x5da   : > { %v2991_v42 = vmul.f32 %v4791_v6, %v2961_v50  ;;  %v2962_v43 = vadd.f32 %v2946_v21, %v2929_v7  ;;  %v2732_v31 = vsel %vm2430_vm12, %v2731_v16, %v2730_v49  ;;  %v2950_v10 = vunpack.c.h.bf16 %v3924_v58 }
 0x5db   : > { %v2989_v56 = vmul.f32 %v4791_v6, %v2959_v63  ;;  %v2960_v35 = vadd.f32 %v2944_v36, %v2927_v30  ;;  %v2734_v22 = vsel %vm2432_vm13, %v2733_v40, %v2732_v31  ;;  %v5011_v46 = vmov 0.0  }
 0x5dc   : > { %v3011_v25 = vadd.f32 %v4797_v52, %v2991_v42  ;;  %v2992_v5 = vmul.f32 %v4791_v6, %v2962_v43  ;;  %v2736_v9 = vsel %vm2434_vm14, %v2735_v17, %v2734_v22  ;;  %v2948_v34 = vunpack.c.h.bf16 %v3925_v1 }
 0x5dd   : > { %v3009_v53 = vadd.f32 %v4797_v52, %v2989_v56  ;;  %v2990_v19 = vmul.f32 %v4791_v6, %v2960_v35  ;;  %v3746_v2 = vpop.f32.mrb[40].mxu0  ;;  %3734 = vmatmul.mubr.msk.f32.vlgmr.msra.gmra.mrb[38].mxu1 %vm700_vm0, %v2736_v9  ;;  %v2953_v50 = vunpack.c.l.bf16 %v4085_v12  ;;  %v2951_v16 = vunpack.c.l.bf16 %v4079_v11 }
 0x5de   : > { %v3526_v45 = vpack.c.bf16 %v3011_v25, %v3011_v25  ;;  %v3012_v15 = vadd.f32 %v4797_v52, %v2992_v5  ;;  %v2932_v0 = vadd.f32 %v3746_v2, %v4773_v20  ;;  %v2875_v41 = vpop.f32.mrb[41].mxu0  ;;  %3764 = vmatprep.mubr.msk.f32.mxu1 %vm3938_vm5, %v5011_v46  ;;  %v2954_v42 = vunpack.c.h.bf16 %v4085_v12 }
 0x5df   : > { %v3524_v24 = vpack.c.bf16 %v3009_v53, %v3009_v53  ;;  %v3010_v47 = vadd.f32 %v4797_v52, %v2990_v19  ;;  %v2930_v28 = vadd.f32 %v4773_v20, %v2875_v41  ;;  %v3747_v59 = vpop.f32.mrb[42].mxu0  ;;  %v2952_v35 = vunpack.c.h.bf16 %v4079_v11 }
 0x5e0   : > { %3274 = vst.msk [vmem:[%s4821_s23 + $0x8] sm:$0xf] %vm2251_vm1, %v3526_v45  ;;  %v3527_v32 = vpack.c.bf16 %v3012_v15, %v3012_v15  ;;  %v2965_v21 = vadd.f32 %v2949_v37, %v2932_v0  ;;  %v2933_v57 = vadd.f32 %v3747_v59, %v4773_v20  ;;  %v2878_v33 = vpop.f32.mrb[43].mxu0  ;;  %v2957_v45 = vunpack.c.l.bf16 %v4095_v14 }
 0x5e1   : > { %3272 = vst.msk [vmem:[%s4821_s23] sm:$0xf] %vm2251_vm1, %v3524_v24  ;;  %v3525_v4 = vpack.c.bf16 %v3010_v47, %v3010_v47  ;;  %v2963_v54 = vadd.f32 %v2947_v18, %v2930_v28  ;;  %v2931_v39 = vadd.f32 %v4773_v20, %v2878_v33 }
 0x5e2   : > { %3275 = vst.msk [vmem:[%s4821_s23 + $0xc] sm:$0xf] %vm2251_vm1, %v3527_v32  ;;  %v2995_v23 = vmul.f32 %v4791_v6, %v2965_v21  ;;  %v2966_v61 = vadd.f32 %v2950_v10, %v2933_v57  ;;  %v2955_v10 = vunpack.c.l.bf16 %v4088_v13 }
 0x5e3   : > { %3273 = vst.msk [vmem:[%s4821_s23 + $0x4] sm:$0xf] %vm2251_vm1, %v3525_v4  ;;  %v2993_v38 = vmul.f32 %v4791_v6, %v2963_v54  ;;  %v2964_v36 = vadd.f32 %v2948_v34, %v2931_v39  ;;  %v2958_v34 = vunpack.c.h.bf16 %v4095_v14  ;;  %v2956_v4 = vunpack.c.h.bf16 %v4088_v13 }
 0x5e4   : > { %v3015_v8 = vadd.f32 %v4797_v52, %v2995_v23  ;;  %v2996_v48 = vmul.f32 %v4791_v6, %v2966_v61 }
 0x5e5   : > { %v3013_v7 = vadd.f32 %v4797_v52, %v2993_v38  ;;  %v2994_v27 = vmul.f32 %v4791_v6, %v2964_v36  ;;  %v3750_v26 = vpop.f32.mrb[44].mxu0 }
 0x5e6   : > { %v3530_v63 = vpack.c.bf16 %v3015_v8, %v3015_v8  ;;  %v3016_v30 = vadd.f32 %v4797_v52, %v2996_v48  ;;  %v2936_v49 = vadd.f32 %v3750_v26, %v4773_v20  ;;  %v2891_v40 = vpop.f32.mrb[45].mxu0 }
 0x5e7   : > { %v3528_v43 = vpack.c.bf16 %v3013_v7, %v3013_v7  ;;  %v3014_v31 = vadd.f32 %v4797_v52, %v2994_v27  ;;  %v2934_v17 = vadd.f32 %v4773_v20, %v2891_v40  ;;  %v3751_v56 = vpop.f32.mrb[46].mxu0 }
 0x5e8   : > { %3278 = vst.msk [vmem:[%s4821_s23 + $0x18] sm:$0xf] %vm2251_vm1, %v3530_v63  ;;  %v3531_v22 = vpack.c.bf16 %v3016_v30, %v3016_v30  ;;  %v2969_v25 = vadd.f32 %v2953_v50, %v2936_v49  ;;  %v2937_v5 = vadd.f32 %v3751_v56, %v4773_v20  ;;  %v2894_v58 = vpop.f32.mrb[47].mxu0 }
 0x5e9   : > { %3276 = vst.msk [vmem:[%s4821_s23 + $0x10] sm:$0xf] %vm2251_vm1, %v3528_v43  ;;  %v3529_v37 = vpack.c.bf16 %v3014_v31, %v3014_v31  ;;  %v2967_v12 = vadd.f32 %v2951_v16, %v2934_v17  ;;  %v2935_v9 = vadd.f32 %v4773_v20, %v2894_v58  ;;  %v3026_v43 = vld [vmem:[%s4991_s12 + $0x8] sm:$0xff]  ;;  %v3028_v17 = vld [vmem:[%s4991_s12 + $0x18] sm:$0xff] }
 0x5ea   : > { %3279 = vst.msk [vmem:[%s4821_s23 + $0x1c] sm:$0xf] %vm2251_vm1, %v3531_v22  ;;  %v2999_v53 = vmul.f32 %v4791_v6, %v2969_v25  ;;  %v2970_v19 = vadd.f32 %v2954_v42, %v2937_v5  ;;  %v2977_v25 = vsub.s32 7, %v4050_v3  ;;  %v627_v5 = vld [vmem:[%s596_s25] sm:$0xff] }
 0x5eb   : > { %3277 = vst.msk [vmem:[%s4821_s23 + $0x14] sm:$0xf] %vm2251_vm1, %v3529_v37  ;;  %v2997_v11 = vmul.f32 %v4791_v6, %v2967_v12  ;;  %v2968_v2 = vadd.f32 %v2952_v35, %v2935_v9  ;;  %v2713_v35 = vsub.s32 5, %v4050_v3 }
 0x5ec   : > { %v3019_v1 = vadd.f32 %v4797_v52, %v2999_v53  ;;  %v3000_v18 = vmul.f32 %v4791_v6, %v2970_v19  ;;  %v2978_v12 = vrot.slane %v4762_v44, %v2977_v25  ;;  %v2983_v19 = vrot.slane %v4779_v51, %v4181_v60 }
 0x5ed   : > { %v3017_v15 = vadd.f32 %v4797_v52, %v2997_v11  ;;  %v2998_v0 = vmul.f32 %v4791_v6, %v2968_v2  ;;  %v3754_v41 = vpop.f32.mrb[48].mxu0  ;;  %v2714_v22 = vrot.slane %v4762_v44, %v2713_v35  ;;  %v3110_v11 = vld [vmem:[%s4993_s14] sm:$0xff]  ;;  %v3111_v2 = vld [vmem:[%s4993_s14 + $0x8] sm:$0xff]  ;;  %v3112_v44 = vld [vmem:[%s4993_s14 + $0x10] sm:$0xff] }
 0x5ee   : > { %v3534_v24 = vpack.c.bf16 %v3019_v1, %v3019_v1  ;;  %v3020_v47 = vadd.f32 %v4797_v52, %v3000_v18  ;;  %v2940_v28 = vadd.f32 %v3754_v41, %v4773_v20  ;;  %v2907_v59 = vpop.f32.mrb[49].mxu0  ;;  %v3805_v18 = vpack.c.bf16 %v3111_v2, %v3110_v11  ;;  %v3115_v41 = vld [vmem:[%s4993_s14 + $0x28] sm:$0xff] }
 0x5ef   : > { %v3532_v32 = vpack.c.bf16 %v3017_v15, %v3017_v15  ;;  %v3018_v21 = vadd.f32 %v4797_v52, %v2998_v0  ;;  %v2938_v57 = vadd.f32 %v4773_v20, %v2907_v59  ;;  %v3755_v33 = vpop.f32.mrb[50].mxu0  ;;  %v3113_v15 = vld [vmem:[%s4993_s14 + $0x18] sm:$0xff]  ;;  %v3114_v0 = vld [vmem:[%s4993_s14 + $0x20] sm:$0xff] }
 0x5f0   : > { %3282 = vst.msk [vmem:[%s4821_s23 + $0x28] sm:$0xf] %vm2251_vm1, %v3534_v24  ;;  %v3535_v54 = vpack.c.bf16 %v3020_v47, %v3020_v47  ;;  %v2973_v39 = vadd.f32 %v2957_v45, %v2940_v28  ;;  %v2941_v23 = vadd.f32 %v3755_v33, %v4773_v20  ;;  %v2910_v61 = vpop.f32.mrb[51].mxu0  ;;  %v3808_v60 = vpack.c.bf16 %v3113_v15, %v3112_v44  ;;  %v3117_v24 = vld [vmem:[%s4993_s14 + $0x38] sm:$0xff]  ;;  %v3501_v28 = vld [vmem:[%s4992_s13] ss:$0 sm:$0xff] }
 0x5f1   : > { %3280 = vst.msk [vmem:[%s4821_s23 + $0x20] sm:$0xf] %vm2251_vm1, %v3532_v32  ;;  %v3533_v38 = vpack.c.bf16 %v3018_v21, %v3018_v21  ;;  %v2971_v14 = vadd.f32 %v2955_v10, %v2938_v57  ;;  %v2939_v36 = vadd.f32 %v4773_v20, %v2910_v61  ;;  %v3811_v10 = vpack.c.bf16 %v3115_v41, %v3114_v0 }
 0x5f2   : > { %3283 = vst.msk [vmem:[%s4821_s23 + $0x2c] sm:$0xf] %vm2251_vm1, %v3535_v54  ;;  %v3003_v8 = vmul.f32 %v4791_v6, %v2973_v39  ;;  %v2974_v13 = vadd.f32 %v2958_v34, %v2941_v23  ;;  %v3121_v21 = vrot.slane %v4779_v51, %v2680_v62  ;;  %v3205_v39 = vrot.slane %v4779_v51, %v2713_v35 }
 0x5f3   : > { %3281 = vst.msk [vmem:[%s4821_s23 + $0x24] sm:$0xf] %vm2251_vm1, %v3533_v38  ;;  %v3001_v48 = vmul.f32 %v4791_v6, %v2971_v14  ;;  %v2972_v50 = vadd.f32 %v2956_v4, %v2939_v36  ;;  %v3200_v4 = vrot.slane %v4779_v51, %v2675_v55 }
 0x5f4   : > { %v3023_v7 = vadd.f32 %v4797_v52, %v3003_v8  ;;  %v3004_v27 = vmul.f32 %v4791_v6, %v2974_v13 }
 0x5f5   : > { %v3021_v26 = vadd.f32 %v4797_v52, %v3001_v48  ;;  %v3002_v20 = vmul.f32 %v4791_v6, %v2972_v50  ;;  %v3025_v6 = vld [vmem:[%s4991_s12] sm:$0xff] }
 0x5f6   : > { %v3538_v16 = vpack.c.bf16 %v3023_v7, %v3023_v7  ;;  %v3024_v63 = vadd.f32 %v4797_v52, %v3004_v27  ;;  %v3799_v31 = vpack.c.bf16 %v3026_v43, %v3025_v6 }
 0x5f7   : > { %v3536_v30 = vpack.c.bf16 %v3021_v26, %v3021_v26  ;;  %v3022_v49 = vadd.f32 %v4797_v52, %v3002_v20  ;;  %v3027_v52 = vld [vmem:[%s4991_s12 + $0x10] sm:$0xff] }
 0x5f8   : > { %3286 = vst.msk [vmem:[%s4821_s23 + $0x38] sm:$0xf] %vm2251_vm1, %v3538_v16  ;;  %v3539_v40 = vpack.c.bf16 %v3024_v63, %v3024_v63  ;;  %3800 = vmatpush3.bf16.msra.mxu1 %v3799_v31  ;;  %v3802_v56 = vpack.c.bf16 %v3028_v17, %v3027_v52 }
 0x5f9   : > { %3284 = vst.msk [vmem:[%s4821_s23 + $0x30] sm:$0xf] %vm2251_vm1, %v3536_v30  ;;  %v3537_v42 = vpack.c.bf16 %v3022_v49, %v3022_v49  ;;  %3801 = vmatprep.subr.bf16.mxu1 %v5008_v29 }
 0x5fa   : > { %3287 = vst.msk [vmem:[%s4821_s23 + $0x3c] sm:$0xf] %vm2251_vm1, %v3539_v40 }
 0x5fb   : > { %3285 = vst.msk [vmem:[%s4821_s23 + $0x34] sm:$0xf] %vm2251_vm1, %v3537_v42 }
 0x5fc   : > { %3803 = vmatpush3.bf16.msra.mxu1 %v3802_v56 }
 0x5fd   : > { %3804 = vmatprep.subr.bf16.mxu1 %v5008_v29 }
 0x6b0   : > { %v2805_v58 = vpop.f32.mrb[38].mxu1 }
 0x6b1   : > { %v2806_v37 = vadd.f32 %v2805_v58, %v2714_v22  ;;  %v3735_v9 = vpop.f32.mrb[39].mxu1 }
 0x6b3   : > { %v2942_v53 = vadd.f32 %v2806_v37, %v627_v5 }
 0x6b5   : > { %v2979_v1 = vmul.f32 %v2978_v12, %v2942_v53 }
 0x6b7   : > { %v2984_v45 = vadd.f32 %v2983_v19, %v2979_v1 }
 0x6b9   : > { %3765 = vmatmul.mubr.msk.f32.vlgmr.msra.gmra.mrb[40].mxu1 %vm700_vm0, %v2984_v45 }
 0x6ba   : > { %3806 = vmatpush3.bf16.msra.mxu1 %v3805_v18  ;;  %3783 = vmatprep.mubr.msk.f32.mxu1 %vm3938_vm5, %v5011_v46  ;;  %v3116_v46 = vld [vmem:[%s4993_s14 + $0x30] sm:$0xff] }
 0x6bb   : > { %3807 = vmatprep.subr.bf16.mxu1 %v5008_v29  ;;  %v3814_v47 = vpack.c.bf16 %v3117_v24, %v3116_v46 }
 0x6be   : > { %3809 = vmatpush3.bf16.msra.mxu1 %v3808_v60 }
 0x6bf   : > { %3810 = vmatprep.subr.bf16.mxu1 %v5008_v29 }
 0x6c2   : > { %3812 = vmatpush3.bf16.msra.mxu1 %v3811_v10 }
 0x6c3   : > { %3813 = vmatprep.subr.bf16.mxu1 %v5008_v29 }
 0x6c6   : > { %3815 = vmatpush3.bf16.msra.mxu1 %v3814_v47 }
 0x78c   : > { %v3105_v59 = vpop.f32.mrb[40].mxu1 }
 0x78d   : > { %v3106_v34 = vadd.f32 %v3501_v28, %v3105_v59  ;;  %v3766_v32 = vpop.f32.mrb[41].mxu1 }
 0x78f   : > { %v3109_v29 = vmax.f32 %v3106_v34, 0.0 }
 0x791   : > { %3784 = vmatmul.mubr.msk.f32.vlgmr.msra.gmra.mrb[42].mxu1 %vm3122_vm2, %v3109_v29 }
 0x864   : > { %v3192_v57 = vpop.f32.mrb[42].mxu1 }
 0x865   : > { %v3193_v33 = vadd.f32 %v3192_v57, %v3121_v21  ;;  %v3785_v54 = vpop.f32.mrb[43].mxu1 }
 0x867   : > { %v3196_v23 = vadd.f32 %v3193_v33, %v2984_v45 }
 0x869   : > { %v3201_v61 = vmul.f32 %v3200_v4, %v3196_v23 }
 0x86b   : > { %v3206_v38 = vadd.f32 %v3205_v39, %v3201_v61 }
 0x86d   : > { %3207 = vst.msk [vmem:[%s611_s1] sm:$0xff] %vm700_vm0, %v3206_v38 }
 0x86e PF: > { %s28_s24 = sadd.s32 1, %s3932_s24  }
 0x86f   : > { %p25_p5 = scmp.ge.s32.totalorder %s28_s24, 4  }
 0x871   :  { %27 = sbr.rel (!%p25_p5) target bundleno = 3 (0x3), region = 135 }

</bundles_post_ra>
